<compile_context>
chip_gen: v5e
topology: v5e:2x2
jax: 0.10.0
libtpu: 0.0.40
codegen_flags: <defaults>
</compile_context>

<pallas_src>
import functools

import numpy as np
import jax
import jax.numpy as jnp
from jax import lax
from jax.experimental import pallas as pl
from jax.experimental.pallas import tpu as pltpu

# ----------------------------- small config ---------------------------------
B = 2            # batch
DIM = 32         # model_dim == dim
N_FRAMES = 8     # n_frames
BAND = 64        # band_size (upsample target)
N_CLUSTERS = 16
N_STEPS = 25
POS_CH = 33      # pos_encoded(..., 16) -> 1 + 2*16 channels
POS_CH_PAD = 48  # padded to a bf16 sublane-tile multiple (16)

MAXP_F = 3       # max halo for the frame-rate pad buffer (K=7 p=3 convs, dil<=3 blocks)
MAXP_B = 27      # max halo for the band-rate pad buffer (dil<=27 blocks)


# ----------------------------- fused Pallas kernel ---------------------------
def _fused_forward_kernel(w_ref, b_ref, pos_ref, emb_ref, ntap_ref, dtap_ref,
                          amp0w_ref, amp0b_ref, interp_ref, audw_ref, audb_ref,
                          out_ref, padf_ref, padb_ref, *, woffs, boffs):
    f32 = jnp.float32
    bf16 = jnp.bfloat16

    def W(name, k=0, rows=DIM):              # static, 16-row-aligned slab view
        o = woffs[name] + k * rows
        return w_ref[o:o + rows, :]

    def Bv(name):                            # (1, DIM) f32 bias row
        o = boffs[name]
        return b_ref[o:o + 1, :]

    def lrelu(v):
        return jnp.where(v >= 0, v, 0.2 * v)

    def mm(a, w):                            # bf16 operands -> f32 accumulation on the MXU
        return jnp.dot(a.astype(bf16), w.astype(bf16), preferred_element_type=f32)

    # ---- zero the pad buffers ONCE; halo rows are never written again --------
    padf_ref[...] = jnp.zeros((B, N_FRAMES + 2 * MAXP_F, DIM), f32)
    padb_ref[...] = jnp.zeros((B, BAND + 2 * MAXP_B, DIM), f32)

    def conv_frame(x, cin, wname, K, dil):
        # "same" conv at frame rate via K per-tap matmuls summed (no tap concat)
        padf_ref[:, MAXP_F:MAXP_F + N_FRAMES, :cin] = x.reshape(B, N_FRAMES, cin)
        p = dil * (K // 2)
        acc = None
        for k in range(K):
            r0 = MAXP_F - p + k * dil
            tap = padf_ref[:, r0:r0 + N_FRAMES, :cin].reshape(B * N_FRAMES, cin)
            y = mm(tap, W(wname, k, cin))
            acc = y if acc is None else acc + y
        return acc

    def conv_band(x, wname, dil):
        padb_ref[:, MAXP_B:MAXP_B + BAND, :] = x.reshape(B, BAND, DIM)
        acc = None
        for k in range(3):
            r0 = MAXP_B - dil + k * dil
            tap = padb_ref[:, r0:r0 + BAND, :].reshape(B * BAND, DIM)
            y = mm(tap, W(wname, k))
            acc = y if acc is None else acc + y
        return acc

    # DilatedBlock with wd@wc folded offline: y = lrelu(taps@(wd@wc) + (bd@wc+bc) + x)
    def dblock_frame(x, name, dil):
        h = mm(x, W(name)) if dil >= N_FRAMES else conv_frame(x, DIM, name, 3, dil)
        return lrelu(h + Bv(name + '_b') + x)

    def dblock_band(x, name, dil):
        h = mm(x, W(name)) if dil >= BAND else conv_band(x, name, dil)
        return lrelu(h + Bv(name + '_b') + x)

    # ---- StepEmbedding (last layer folded into sac0a; its bias folded into sac_b0) ----
    s = lrelu(mm(pos_ref[...], W('se0', rows=POS_CH_PAD)) + Bv('se_b0'))
    s = lrelu(mm(s, W('se1')) + Bv('se_b1'))
    pos_term = mm(s, W('se2a'))                                 # (1, DIM), broadcasts

    # ---- EmbedConditioning ----
    a = lrelu(mm(ntap_ref[...], amp0w_ref[...]) + amp0b_ref[...])          # (B*F, 16)
    a = lrelu(conv_frame(a, 16, 'amp1', 7, 1) + Bv('amp1_b'))              # (B*F, 32)
    amp_term = conv_frame(a, DIM, 'amp2b', 7, 1)     # amp2 folded with cr0b (no act between)
    c = lrelu(mm(emb_ref[...], W('cr0a')) + amp_term + Bv('cr_b0'))
    c = lrelu(mm(c, W('cr1')) + Bv('cr_b1'))
    cond_term = mm(c, W('cr2b'))                     # cr2 folded with sac0b

    # ---- StepAndConditioning ----
    x = lrelu(pos_term + cond_term + Bv('sac_b0'))
    x = lrelu(mm(x, W('sac1')) + Bv('sac_b1'))
    x = mm(x, W('sac2')) + Bv('sac_b2')                                    # (B*F, DIM)
    for i, d in enumerate((1, 3, 9)):
        x = dblock_frame(x, f'ctx{i}', d)

    # ---- DenoisingLayer: apply the 1x1 "n0a" at frame rate, THEN upsample (both linear) ----
    t = mm(x, W('n0a'))                                                    # (B*F, DIM)
    x = mm(interp_ref[...], t) + mm(dtap_ref[...], W('embn0b')) + Bv('n0_b')  # (B*BAND, DIM)
    for i, d in enumerate((1, 3, 9, 27, 81, 1)):
        x = dblock_band(x, f'net{i}', d)

    # to_audio 1x1 conv as an NT matmul -> lane-dense (1, B*BAND) output
    y = lax.dot_general(audw_ref[...], x.astype(bf16), (((1,), (1,)), ((), ())),
                        preferred_element_type=f32) + audb_ref[...]
    out_ref[...] = y


# ----------------------------- host-side packing (runs ONCE) -----------------
def pos_encoded_np(time, n_freqs):
    pos = np.linspace(-1.0, 1.0, time, dtype=np.float32)[:, None]
    freqs = (2.0 ** np.arange(n_freqs, dtype=np.float32))[None, :]
    scaled = pos * freqs * np.pi
    return np.concatenate([pos, np.sin(scaled), np.cos(scaled)], axis=-1)   # (time, 33)


def linear_interp_matrix(in_l, out_l):
    # F.interpolate(mode='linear', align_corners=False) as a dense (out_l, in_l) matrix
    j = np.arange(out_l)
    src = np.clip((j + 0.5) * (in_l / out_l) - 0.5, 0.0, in_l - 1)
    i0 = np.floor(src).astype(np.int64)
    i1 = np.minimum(i0 + 1, in_l - 1)
    w1 = (src - i0).astype(np.float32)
    m = np.zeros((out_l, in_l), np.float32)
    m[j, i0] += (1.0 - w1)
    m[j, i1] += w1
    return m


def pack_params(params):
    """Fold adjacent linears, pack everything into aligned slabs. Host-side, called once."""
    f32 = np.float32

    def n32(x):
        return np.asarray(x, f32)

    wparts, woffs = [], {}
    row = [0]

    def addw(name, arr):
        arr = n32(arr).reshape(-1, DIM)
        pad = (-arr.shape[0]) % 16                    # bf16 sublane-tile alignment
        if pad:
            arr = np.concatenate([arr, np.zeros((pad, DIM), f32)], 0)
        woffs[name] = row[0]
        wparts.append(arr)
        row[0] += arr.shape[0]

    bparts, boffs = [], {}

    def addb(name, vec):
        boffs[name] = len(bparts)
        bparts.append(n32(vec).reshape(1, DIM))

    (se0w, se0b), (se1w, se1b), (se2w, se2b) = params['step_embed']
    (cr0w, crb0), (cr1w, crb1), (cr2w, crb2) = params['cond_reduce']
    (sc0w, scb0), (sc1w, scb1), (sc2w, scb2) = params['sac_reduce']
    sac0a, sac0b = n32(sc0w)[:DIM], n32(sc0w)[DIM:]    # split for the [pos, cond] concat
    cr0a, cr0b = n32(cr0w)[:DIM], n32(cr0w)[DIM:]      # split for the [emb, amp] concat

    # step embedding (se0 padded 33->48 rows; se2 folded into sac0a)
    se0p = np.zeros((POS_CH_PAD, DIM), f32)
    se0p[:POS_CH] = n32(se0w)
    addw('se0', se0p); addb('se_b0', se0b)
    addw('se1', se1w); addb('se_b1', se1b)
    addw('se2a', n32(se2w) @ sac0a)

    # amp convs (conv0 is a separate 16-out-channel arg; amp2 folded with cr0b)
    addw('amp1', n32(params['amp1_w']).reshape(7 * 16, DIM)); addb('amp1_b', params['amp1_b'])
    addw('amp2b', n32(params['amp2_w']).reshape(7 * DIM, DIM) @ cr0b)

    # cond reduce (cr2 folded into sac0b; amp2 bias folded into cr_b0)
    addw('cr0a', cr0a)
    addb('cr_b0', n32(crb0) + n32(params['amp2_b']) @ cr0b)
    addw('cr1', cr1w); addb('cr_b1', crb1)
    addw('cr2b', n32(cr2w) @ sac0b)

    # sac reduce (se2/cr2 biases folded into sac_b0)
    addb('sac_b0', n32(scb0) + n32(se2b) @ sac0a + n32(crb2) @ sac0b)
    addw('sac1', sc1w); addb('sac_b1', scb1)
    addw('sac2', sc2w); addb('sac_b2', scb2)

    # dilated blocks: fold wd@wc (no nonlinearity between them in the reference)
    def add_dblock(name, p, dil, L):
        wd, wc = n32(p['wd']), n32(p['wc'])
        if dil >= L:                                    # outer taps read pure zero padding
            w = wd[1] @ wc
        else:
            w = np.concatenate([wd[k] @ wc for k in range(3)], axis=0)
        addw(name, w)
        addb(name + '_b', n32(p['bd']) @ wc + n32(p['bc']))

    for i, (p, d) in enumerate(zip(params['context'], (1, 3, 9))):
        add_dblock(f'ctx{i}', p, d, N_FRAMES)

    # denoising-layer head: split the 1x1 (2*DIM -> DIM) conv; fold embed-conv with n0b
    n0w = n32(params['net0_w']).reshape(2 * DIM, DIM)
    n0a, n0b = n0w[:DIM], n0w[DIM:]
    addw('n0a', n0a)
    # NOTE: real PyTorch Conv1d weights are (out, in, k); this synthetic init is k-major.
    emb_w = n32(params['embed_w']).reshape(25, DIM)
    embn0b = np.zeros((32, DIM), f32)
    embn0b[:25] = emb_w @ n0b                           # padded to 32 rows (dtaps 25->32 cols)
    addw('embn0b', embn0b)
    addb('n0_b', n32(params['net0_b']) + n32(params['embed_b']) @ n0b)

    for i, (p, d) in enumerate(zip(params['net_blocks'], (1, 3, 9, 27, 81, 1))):
        add_dblock(f'net{i}', p, d, BAND)

    w_slab = jnp.asarray(np.concatenate(wparts, 0), jnp.bfloat16)
    bstack = np.concatenate(bparts, 0)
    pad = (-bstack.shape[0]) % 8
    if pad:
        bstack = np.concatenate([bstack, np.zeros((pad, DIM), f32)], 0)
    b_slab = jnp.asarray(bstack)                        # f32: biases stay in f32

    amp0 = np.zeros((8, 16), f32)
    amp0[:7] = n32(params['amp0_w']).reshape(7, 16)

    pos_pad = np.zeros((N_STEPS, POS_CH_PAD), f32)
    pos_pad[:, :POS_CH] = params['pos']

    interp_big = np.kron(np.eye(B, dtype=f32), n32(params['interp_mat']))   # (B*BAND, B*F)

    arrays = dict(
        w_slab=w_slab, b_slab=b_slab,
        amp0_w=jnp.asarray(amp0, jnp.bfloat16),
        amp0_b=jnp.asarray(n32(params['amp0_b']).reshape(1, 16)),
        interp=jnp.asarray(interp_big, jnp.bfloat16),
        audio_w=jnp.asarray(n32(params['audio_w']).reshape(DIM, 1).T, jnp.bfloat16),
        audio_b=jnp.asarray(n32(params['audio_b']).reshape(1, 1)),
        pos_pad=jnp.asarray(pos_pad),
        cluster_emb=jnp.asarray(n32(params['cluster_emb'])),
    )
    return arrays, woffs, boffs


# ----------------------------- params ----------------------------------------
def init_params(key):
    keys = iter(jax.random.split(key, 128))

    def rnd(shape, scale=0.05):
        return np.asarray(jax.random.normal(next(keys), shape, jnp.float32)) * scale

    def lin_stack_params(in_ch, hidden, out_ch, n_hidden=2):
        layers, c = [], in_ch
        for _ in range(n_hidden):
            layers.append((rnd((c, hidden)), rnd((hidden,))))
            c = hidden
        layers.append((rnd((c, out_ch)), rnd((out_ch,))))
        return layers

    def dblock_params(c):
        return dict(wd=rnd((3, c, c)), bd=rnd((c,)), wc=rnd((c, c)), bc=rnd((c,)))

    return dict(
        pos=pos_encoded_np(N_STEPS, 16),                       # buffer pos_embeddings[:1]
        step_embed=lin_stack_params(POS_CH, DIM, DIM),         # LinearOutputStack(dim,2,in=33)
        cluster_emb=np.asarray(jax.random.normal(next(keys), (N_CLUSTERS, DIM), jnp.float32)),
        amp0_w=rnd((7, 1, 16)), amp0_b=rnd((16,)),
        amp1_w=rnd((7, 16, 32)), amp1_b=rnd((32,)),
        amp2_w=rnd((7, 32, DIM)), amp2_b=rnd((DIM,)),
        cond_reduce=lin_stack_params(2 * DIM, DIM, DIM),
        sac_reduce=lin_stack_params(2 * DIM, DIM, DIM),
        context=[dblock_params(DIM) for _ in range(3)],
        interp_mat=linear_interp_matrix(N_FRAMES, BAND),
        embed_w=rnd((25, 1, DIM)), embed_b=rnd((DIM,)),
        net0_w=rnd((1, 2 * DIM, DIM)), net0_b=rnd((DIM,)),
        net_blocks=[dblock_params(DIM) for _ in range(6)],
        audio_w=rnd((1, DIM, 1)), audio_b=rnd((1,)),
    )


# ----------------------------- forward builder --------------------------------
def make_forward(params):
    arrays, woffs, boffs = pack_params(params)              # host-side, ONCE

    kern = functools.partial(_fused_forward_kernel, woffs=woffs, boffs=boffs)
    call = pl.pallas_call(
        kern,
        out_shape=jax.ShapeDtypeStruct((1, B * BAND), jnp.float32),
        scratch_shapes=[
            pltpu.VMEM((B, N_FRAMES + 2 * MAXP_F, DIM), jnp.float32),   # frame pad buffer
            pltpu.VMEM((B, BAND + 2 * MAXP_B, DIM), jnp.float32),       # band pad buffer
        ],
    )

    @jax.jit
    def forward(arrs, degraded, indices, norms, step):
        """degraded: (B,1,BAND) NCW, indices: (B,N_FRAMES) int, norms: (B,N_FRAMES), step: int."""
        pos_step = lax.dynamic_slice_in_dim(arrs['pos_pad'], step, 1, axis=0)      # (1, 48)
        # nn.Embedding gather done in the wrapper (tiny table)
        emb16 = jnp.take(arrs['cluster_emb'], indices, axis=0).reshape(B * N_FRAMES, DIM)

        # im2col of the two raw 1-channel conv inputs, lane-padded (7->8, 25->32 taps)
        npad = jnp.pad(norms.astype(jnp.float32), ((0, 0), (3, 3)))
        ntaps = jnp.stack([npad[:, k:k + N_FRAMES] for k in range(7)], axis=-1)
        ntaps = jnp.pad(ntaps, ((0, 0), (0, 0), (0, 1))).reshape(B * N_FRAMES, 8)

        dpad = jnp.pad(degraded.reshape(B, BAND).astype(jnp.float32), ((0, 0), (12, 12)))
        dtaps = jnp.stack([dpad[:, k:k + BAND] for k in range(25)], axis=-1)
        dtaps = jnp.pad(dtaps, ((0, 0), (0, 0), (0, 7))).reshape(B * BAND, 32)

        y = call(arrs['w_slab'], arrs['b_slab'], pos_step, emb16, ntaps, dtaps,
                 arrs['amp0_w'], arrs['amp0_b'], arrs['interp'],
                 arrs['audio_w'], arrs['audio_b'])
        # (1, B*BAND) lane-dense kernel output -> NCW (B, 1, BAND)
        return y.reshape(B, BAND)[:, None, :]

    def fwd(degraded, indices, norms, step):
        return forward(arrays, degraded, indices, norms, step)

    return fwd


# ----------------------------- main -------------------------------------------
if __name__ == "__main__":
    key = jax.random.PRNGKey(0)
    pkey, dkey, ikey, nkey = jax.random.split(key, 4)

    params = init_params(pkey)
    fwd = make_forward(params)

    degraded = jax.random.normal(dkey, (B, 1, BAND), jnp.float32)
    indices = jax.random.randint(ikey, (B, N_FRAMES), 0, N_CLUSTERS)
    norms = jnp.abs(jax.random.normal(nkey, (B, N_FRAMES), jnp.float32))
    step = 3

    out = fwd(degraded, indices, norms, step)
    out = jax.block_until_ready(out)
    assert out.shape == (B, 1, BAND), out.shape
    assert out.dtype == jnp.float32
    print("KERNEL_OK")
</pallas_src>

<mosaic_0001>
module attributes {stable_mosaic.version = 11 : i64} {
  func.func @_fused_forward_kernel(%arg0: memref<1408x32xbf16, #tpu.memory_space<vmem>>, %arg1: memref<24x32xf32, #tpu.memory_space<vmem>>, %arg2: memref<1x48xf32, #tpu.memory_space<vmem>>, %arg3: memref<16x32xf32, #tpu.memory_space<vmem>>, %arg4: memref<16x8xf32, #tpu.memory_space<vmem>>, %arg5: memref<128x32xf32, #tpu.memory_space<vmem>>, %arg6: memref<8x16xbf16, #tpu.memory_space<vmem>>, %arg7: memref<1x16xf32, #tpu.memory_space<vmem>>, %arg8: memref<128x16xbf16, #tpu.memory_space<vmem>>, %arg9: memref<1x32xbf16, #tpu.memory_space<vmem>>, %arg10: memref<1x1xf32, #tpu.memory_space<vmem>>, %arg11: memref<1x128xf32, #tpu.memory_space<vmem>>, %arg12: memref<2x14x32xf32, #tpu.memory_space<vmem>>, %arg13: memref<2x118x32xf32, #tpu.memory_space<vmem>>) attributes {dimension_semantics = [], scalar_prefetch = 0 : i64, scratch_operands = 2 : i64, tpu.core_type = #tpu.core_type<tc>} {
    %cst = arith.constant 0.000000e+00 : f32
    %0 = vector.broadcast %cst : f32 to vector<2x14x32xf32>
    %c0 = arith.constant 0 : index
    %c0_0 = arith.constant 0 : index
    %c0_1 = arith.constant 0 : index
    %1 = vector.load %arg12[%c0, %c0_0, %c0_1] : memref<2x14x32xf32, #tpu.memory_space<vmem>>, vector<2x14x32xf32>
    tpu.vector_store %arg12[%c0, %c0_0, %c0_1], %0 {strides = array<i32>} : memref<2x14x32xf32, #tpu.memory_space<vmem>>, vector<2x14x32xf32>,
    %cst_2 = arith.constant 0.000000e+00 : f32
    %2 = vector.broadcast %cst_2 : f32 to vector<2x118x32xf32>
    %c0_3 = arith.constant 0 : index
    %c0_4 = arith.constant 0 : index
    %c0_5 = arith.constant 0 : index
    %3 = vector.load %arg13[%c0_3, %c0_4, %c0_5] : memref<2x118x32xf32, #tpu.memory_space<vmem>>, vector<2x118x32xf32>
    tpu.vector_store %arg13[%c0_3, %c0_4, %c0_5], %2 {strides = array<i32>} : memref<2x118x32xf32, #tpu.memory_space<vmem>>, vector<2x118x32xf32>,
    %c0_6 = arith.constant 0 : index
    %c0_7 = arith.constant 0 : index
    %4 = vector.load %arg2[%c0_6, %c0_7] : memref<1x48xf32, #tpu.memory_space<vmem>>, vector<1x48xf32>
    %c0_8 = arith.constant 0 : index
    %c0_9 = arith.constant 0 : index
    %5 = vector.load %arg0[%c0_8, %c0_9] : memref<1408x32xbf16, #tpu.memory_space<vmem>>, vector<48x32xbf16>
    %6 = arith.truncf %4 : vector<1x48xf32> to vector<1x48xbf16>
    %cst_10 = arith.constant dense<0.000000e+00> : vector<1x32xf32>
    %7 = tpu.matmul %6, %5, %cst_10 {dimension_numbers = #tpu.dot_dimension_numbers<[1], [0], [0], [1], [0, 0, 1, 1], [], []>} : vector<1x48xbf16>, vector<48x32xbf16>, vector<1x32xf32> -> vector<1x32xf32>
    %c0_11 = arith.constant 0 : index
    %c0_12 = arith.constant 0 : index
    %8 = vector.load %arg1[%c0_11, %c0_12] : memref<24x32xf32, #tpu.memory_space<vmem>>, vector<1x32xf32>
    %9 = arith.addf %7, %8 : vector<1x32xf32>
    %cst_13 = arith.constant 0.000000e+00 : f32
    %10 = vector.broadcast %cst_13 : f32 to vector<1x32xf32>
    %11 = arith.cmpf oge, %9, %10 : vector<1x32xf32>
    %cst_14 = arith.constant 2.000000e-01 : f32
    %12 = vector.broadcast %cst_14 : f32 to vector<1x32xf32>
    %13 = arith.mulf %12, %9 : vector<1x32xf32>
    %14 = arith.select %11, %9, %13 : vector<1x32xi1>, vector<1x32xf32>
    %c48 = arith.constant 48 : index
    %c0_15 = arith.constant 0 : index
    %15 = vector.load %arg0[%c48, %c0_15] : memref<1408x32xbf16, #tpu.memory_space<vmem>>, vector<32x32xbf16>
    %16 = arith.truncf %14 : vector<1x32xf32> to vector<1x32xbf16>
    %cst_16 = arith.constant dense<0.000000e+00> : vector<1x32xf32>
    %17 = tpu.matmul %16, %15, %cst_16 {dimension_numbers = #tpu.dot_dimension_numbers<[1], [0], [0], [1], [0, 0, 1, 1], [], []>} : vector<1x32xbf16>, vector<32x32xbf16>, vector<1x32xf32> -> vector<1x32xf32>
    %c1 = arith.constant 1 : index
    %c0_17 = arith.constant 0 : index
    %18 = vector.load %arg1[%c1, %c0_17] : memref<24x32xf32, #tpu.memory_space<vmem>>, vector<1x32xf32>
    %19 = arith.addf %17, %18 : vector<1x32xf32>
    %cst_18 = arith.constant 0.000000e+00 : f32
    %20 = vector.broadcast %cst_18 : f32 to vector<1x32xf32>
    %21 = arith.cmpf oge, %19, %20 : vector<1x32xf32>
    %cst_19 = arith.constant 2.000000e-01 : f32
    %22 = vector.broadcast %cst_19 : f32 to vector<1x32xf32>
    %23 = arith.mulf %22, %19 : vector<1x32xf32>
    %24 = arith.select %21, %19, %23 : vector<1x32xi1>, vector<1x32xf32>
    %c80 = arith.constant 80 : index
    %c0_20 = arith.constant 0 : index
    %25 = vector.load %arg0[%c80, %c0_20] : memref<1408x32xbf16, #tpu.memory_space<vmem>>, vector<32x32xbf16>
    %26 = arith.truncf %24 : vector<1x32xf32> to vector<1x32xbf16>
    %cst_21 = arith.constant dense<0.000000e+00> : vector<1x32xf32>
    %27 = tpu.matmul %26, %25, %cst_21 {dimension_numbers = #tpu.dot_dimension_numbers<[1], [0], [0], [1], [0, 0, 1, 1], [], []>} : vector<1x32xbf16>, vector<32x32xbf16>, vector<1x32xf32> -> vector<1x32xf32>
    %c0_22 = arith.constant 0 : index
    %c0_23 = arith.constant 0 : index
    %28 = vector.load %arg4[%c0_22, %c0_23] : memref<16x8xf32, #tpu.memory_space<vmem>>, vector<16x8xf32>
    %c0_24 = arith.constant 0 : index
    %c0_25 = arith.constant 0 : index
    %29 = vector.load %arg6[%c0_24, %c0_25] : memref<8x16xbf16, #tpu.memory_space<vmem>>, vector<8x16xbf16>
    %30 = arith.truncf %28 : vector<16x8xf32> to vector<16x8xbf16>
    %cst_26 = arith.constant dense<0.000000e+00> : vector<16x16xf32>
    %31 = tpu.matmul %30, %29, %cst_26 {dimension_numbers = #tpu.dot_dimension_numbers<[1], [0], [0], [1], [0, 0, 1, 1], [], []>} : vector<16x8xbf16>, vector<8x16xbf16>, vector<16x16xf32> -> vector<16x16xf32>
    %c0_27 = arith.constant 0 : index
    %c0_28 = arith.constant 0 : index
    %32 = vector.load %arg7[%c0_27, %c0_28] : memref<1x16xf32, #tpu.memory_space<vmem>>, vector<1x16xf32>
    %33 = vector.broadcast %32 : vector<1x16xf32> to vector<16x16xf32>
    %34 = arith.addf %31, %33 : vector<16x16xf32>
    %cst_29 = arith.constant 0.000000e+00 : f32
    %35 = vector.broadcast %cst_29 : f32 to vector<16x16xf32>
    %36 = arith.cmpf oge, %34, %35 : vector<16x16xf32>
    %cst_30 = arith.constant 2.000000e-01 : f32
    %37 = vector.broadcast %cst_30 : f32 to vector<16x16xf32>
    %38 = arith.mulf %37, %34 : vector<16x16xf32>
    %39 = arith.select %36, %34, %38 : vector<16x16xi1>, vector<16x16xf32>
    %40 = vector.shape_cast %39 : vector<16x16xf32> to vector<2x8x16xf32>
    %c0_31 = arith.constant 0 : index
    %c3 = arith.constant 3 : index
    %c0_32 = arith.constant 0 : index
    %41 = vector.load %arg12[%c0_31, %c3, %c0_32] : memref<2x14x32xf32, #tpu.memory_space<vmem>>, vector<2x8x16xf32>
    tpu.vector_store %arg12[%c0_31, %c3, %c0_32], %40 {strides = array<i32>} : memref<2x14x32xf32, #tpu.memory_space<vmem>>, vector<2x8x16xf32>,
    %c0_33 = arith.constant 0 : index
    %c0_34 = arith.constant 0 : index
    %c0_35 = arith.constant 0 : index
    %42 = vector.load %arg12[%c0_33, %c0_34, %c0_35] : memref<2x14x32xf32, #tpu.memory_space<vmem>>, vector<2x8x16xf32>
    %43 = vector.shape_cast %42 : vector<2x8x16xf32> to vector<16x16xf32>
    %c112 = arith.constant 112 : index
    %c0_36 = arith.constant 0 : index
    %44 = vector.load %arg0[%c112, %c0_36] : memref<1408x32xbf16, #tpu.memory_space<vmem>>, vector<16x32xbf16>
    %45 = arith.truncf %43 : vector<16x16xf32> to vector<16x16xbf16>
    %cst_37 = arith.constant dense<0.000000e+00> : vector<16x32xf32>
    %46 = tpu.matmul %45, %44, %cst_37 {dimension_numbers = #tpu.dot_dimension_numbers<[1], [0], [0], [1], [0, 0, 1, 1], [], []>} : vector<16x16xbf16>, vector<16x32xbf16>, vector<16x32xf32> -> vector<16x32xf32>
    %c0_38 = arith.constant 0 : index
    %c1_39 = arith.constant 1 : index
    %c0_40 = arith.constant 0 : index
    %47 = vector.load %arg12[%c0_38, %c1_39, %c0_40] : memref<2x14x32xf32, #tpu.memory_space<vmem>>, vector<2x8x16xf32>
    %48 = vector.shape_cast %47 : vector<2x8x16xf32> to vector<16x16xf32>
    %c128 = arith.constant 128 : index
    %c0_41 = arith.constant 0 : index
    %49 = vector.load %arg0[%c128, %c0_41] : memref<1408x32xbf16, #tpu.memory_space<vmem>>, vector<16x32xbf16>
    %50 = arith.truncf %48 : vector<16x16xf32> to vector<16x16xbf16>
    %cst_42 = arith.constant dense<0.000000e+00> : vector<16x32xf32>
    %51 = tpu.matmul %50, %49, %cst_42 {dimension_numbers = #tpu.dot_dimension_numbers<[1], [0], [0], [1], [0, 0, 1, 1], [], []>} : vector<16x16xbf16>, vector<16x32xbf16>, vector<16x32xf32> -> vector<16x32xf32>
    %52 = arith.addf %46, %51 : vector<16x32xf32>
    %c0_43 = arith.constant 0 : index
    %c2 = arith.constant 2 : index
    %c0_44 = arith.constant 0 : index
    %53 = vector.load %arg12[%c0_43, %c2, %c0_44] : memref<2x14x32xf32, #tpu.memory_space<vmem>>, vector<2x8x16xf32>
    %54 = vector.shape_cast %53 : vector<2x8x16xf32> to vector<16x16xf32>
    %c144 = arith.constant 144 : index
    %c0_45 = arith.constant 0 : index
    %55 = vector.load %arg0[%c144, %c0_45] : memref<1408x32xbf16, #tpu.memory_space<vmem>>, vector<16x32xbf16>
    %56 = arith.truncf %54 : vector<16x16xf32> to vector<16x16xbf16>
    %cst_46 = arith.constant dense<0.000000e+00> : vector<16x32xf32>
    %57 = tpu.matmul %56, %55, %cst_46 {dimension_numbers = #tpu.dot_dimension_numbers<[1], [0], [0], [1], [0, 0, 1, 1], [], []>} : vector<16x16xbf16>, vector<16x32xbf16>, vector<16x32xf32> -> vector<16x32xf32>
    %58 = arith.addf %52, %57 : vector<16x32xf32>
    %c0_47 = arith.constant 0 : index
    %c3_48 = arith.constant 3 : index
    %c0_49 = arith.constant 0 : index
    %59 = vector.load %arg12[%c0_47, %c3_48, %c0_49] : memref<2x14x32xf32, #tpu.memory_space<vmem>>, vector<2x8x16xf32>
    %60 = vector.shape_cast %59 : vector<2x8x16xf32> to vector<16x16xf32>
    %c160 = arith.constant 160 : index
    %c0_50 = arith.constant 0 : index
    %61 = vector.load %arg0[%c160, %c0_50] : memref<1408x32xbf16, #tpu.memory_space<vmem>>, vector<16x32xbf16>
    %62 = arith.truncf %60 : vector<16x16xf32> to vector<16x16xbf16>
    %cst_51 = arith.constant dense<0.000000e+00> : vector<16x32xf32>
    %63 = tpu.matmul %62, %61, %cst_51 {dimension_numbers = #tpu.dot_dimension_numbers<[1], [0], [0], [1], [0, 0, 1, 1], [], []>} : vector<16x16xbf16>, vector<16x32xbf16>, vector<16x32xf32> -> vector<16x32xf32>
    %64 = arith.addf %58, %63 : vector<16x32xf32>
    %c0_52 = arith.constant 0 : index
    %c4 = arith.constant 4 : index
    %c0_53 = arith.constant 0 : index
    %65 = vector.load %arg12[%c0_52, %c4, %c0_53] : memref<2x14x32xf32, #tpu.memory_space<vmem>>, vector<2x8x16xf32>
    %66 = vector.shape_cast %65 : vector<2x8x16xf32> to vector<16x16xf32>
    %c176 = arith.constant 176 : index
    %c0_54 = arith.constant 0 : index
    %67 = vector.load %arg0[%c176, %c0_54] : memref<1408x32xbf16, #tpu.memory_space<vmem>>, vector<16x32xbf16>
    %68 = arith.truncf %66 : vector<16x16xf32> to vector<16x16xbf16>
    %cst_55 = arith.constant dense<0.000000e+00> : vector<16x32xf32>
    %69 = tpu.matmul %68, %67, %cst_55 {dimension_numbers = #tpu.dot_dimension_numbers<[1], [0], [0], [1], [0, 0, 1, 1], [], []>} : vector<16x16xbf16>, vector<16x32xbf16>, vector<16x32xf32> -> vector<16x32xf32>
    %70 = arith.addf %64, %69 : vector<16x32xf32>
    %c0_56 = arith.constant 0 : index
    %c5 = arith.constant 5 : index
    %c0_57 = arith.constant 0 : index
    %71 = vector.load %arg12[%c0_56, %c5, %c0_57] : memref<2x14x32xf32, #tpu.memory_space<vmem>>, vector<2x8x16xf32>
    %72 = vector.shape_cast %71 : vector<2x8x16xf32> to vector<16x16xf32>
    %c192 = arith.constant 192 : index
    %c0_58 = arith.constant 0 : index
    %73 = vector.load %arg0[%c192, %c0_58] : memref<1408x32xbf16, #tpu.memory_space<vmem>>, vector<16x32xbf16>
    %74 = arith.truncf %72 : vector<16x16xf32> to vector<16x16xbf16>
    %cst_59 = arith.constant dense<0.000000e+00> : vector<16x32xf32>
    %75 = tpu.matmul %74, %73, %cst_59 {dimension_numbers = #tpu.dot_dimension_numbers<[1], [0], [0], [1], [0, 0, 1, 1], [], []>} : vector<16x16xbf16>, vector<16x32xbf16>, vector<16x32xf32> -> vector<16x32xf32>
    %76 = arith.addf %70, %75 : vector<16x32xf32>
    %c0_60 = arith.constant 0 : index
    %c6 = arith.constant 6 : index
    %c0_61 = arith.constant 0 : index
    %77 = vector.load %arg12[%c0_60, %c6, %c0_61] : memref<2x14x32xf32, #tpu.memory_space<vmem>>, vector<2x8x16xf32>
    %78 = vector.shape_cast %77 : vector<2x8x16xf32> to vector<16x16xf32>
    %c208 = arith.constant 208 : index
    %c0_62 = arith.constant 0 : index
    %79 = vector.load %arg0[%c208, %c0_62] : memref<1408x32xbf16, #tpu.memory_space<vmem>>, vector<16x32xbf16>
    %80 = arith.truncf %78 : vector<16x16xf32> to vector<16x16xbf16>
    %cst_63 = arith.constant dense<0.000000e+00> : vector<16x32xf32>
    %81 = tpu.matmul %80, %79, %cst_63 {dimension_numbers = #tpu.dot_dimension_numbers<[1], [0], [0], [1], [0, 0, 1, 1], [], []>} : vector<16x16xbf16>, vector<16x32xbf16>, vector<16x32xf32> -> vector<16x32xf32>
    %82 = arith.addf %76, %81 : vector<16x32xf32>
    %c2_64 = arith.constant 2 : index
    %c0_65 = arith.constant 0 : index
    %83 = vector.load %arg1[%c2_64, %c0_65] : memref<24x32xf32, #tpu.memory_space<vmem>>, vector<1x32xf32>
    %84 = vector.broadcast %83 : vector<1x32xf32> to vector<16x32xf32>
    %85 = arith.addf %82, %84 : vector<16x32xf32>
    %cst_66 = arith.constant 0.000000e+00 : f32
    %86 = vector.broadcast %cst_66 : f32 to vector<16x32xf32>
    %87 = arith.cmpf oge, %85, %86 : vector<16x32xf32>
    %cst_67 = arith.constant 2.000000e-01 : f32
    %88 = vector.broadcast %cst_67 : f32 to vector<16x32xf32>
    %89 = arith.mulf %88, %85 : vector<16x32xf32>
    %90 = arith.select %87, %85, %89 : vector<16x32xi1>, vector<16x32xf32>
    %91 = vector.shape_cast %90 : vector<16x32xf32> to vector<2x8x32xf32>
    %c0_68 = arith.constant 0 : index
    %c3_69 = arith.constant 3 : index
    %c0_70 = arith.constant 0 : index
    %92 = vector.load %arg12[%c0_68, %c3_69, %c0_70] : memref<2x14x32xf32, #tpu.memory_space<vmem>>, vector<2x8x32xf32>
    tpu.vector_store %arg12[%c0_68, %c3_69, %c0_70], %91 {strides = array<i32>} : memref<2x14x32xf32, #tpu.memory_space<vmem>>, vector<2x8x32xf32>,
    %c0_71 = arith.constant 0 : index
    %c0_72 = arith.constant 0 : index
    %c0_73 = arith.constant 0 : index
    %93 = vector.load %arg12[%c0_71, %c0_72, %c0_73] : memref<2x14x32xf32, #tpu.memory_space<vmem>>, vector<2x8x32xf32>
    %94 = vector.shape_cast %93 : vector<2x8x32xf32> to vector<16x32xf32>
    %c224 = arith.constant 224 : index
    %c0_74 = arith.constant 0 : index
    %95 = vector.load %arg0[%c224, %c0_74] : memref<1408x32xbf16, #tpu.memory_space<vmem>>, vector<32x32xbf16>
    %96 = arith.truncf %94 : vector<16x32xf32> to vector<16x32xbf16>
    %cst_75 = arith.constant dense<0.000000e+00> : vector<16x32xf32>
    %97 = tpu.matmul %96, %95, %cst_75 {dimension_numbers = #tpu.dot_dimension_numbers<[1], [0], [0], [1], [0, 0, 1, 1], [], []>} : vector<16x32xbf16>, vector<32x32xbf16>, vector<16x32xf32> -> vector<16x32xf32>
    %c0_76 = arith.constant 0 : index
    %c1_77 = arith.constant 1 : index
    %c0_78 = arith.constant 0 : index
    %98 = vector.load %arg12[%c0_76, %c1_77, %c0_78] : memref<2x14x32xf32, #tpu.memory_space<vmem>>, vector<2x8x32xf32>
    %99 = vector.shape_cast %98 : vector<2x8x32xf32> to vector<16x32xf32>
    %c256 = arith.constant 256 : index
    %c0_79 = arith.constant 0 : index
    %100 = vector.load %arg0[%c256, %c0_79] : memref<1408x32xbf16, #tpu.memory_space<vmem>>, vector<32x32xbf16>
    %101 = arith.truncf %99 : vector<16x32xf32> to vector<16x32xbf16>
    %cst_80 = arith.constant dense<0.000000e+00> : vector<16x32xf32>
    %102 = tpu.matmul %101, %100, %cst_80 {dimension_numbers = #tpu.dot_dimension_numbers<[1], [0], [0], [1], [0, 0, 1, 1], [], []>} : vector<16x32xbf16>, vector<32x32xbf16>, vector<16x32xf32> -> vector<16x32xf32>
    %103 = arith.addf %97, %102 : vector<16x32xf32>
    %c0_81 = arith.constant 0 : index
    %c2_82 = arith.constant 2 : index
    %c0_83 = arith.constant 0 : index
    %104 = vector.load %arg12[%c0_81, %c2_82, %c0_83] : memref<2x14x32xf32, #tpu.memory_space<vmem>>, vector<2x8x32xf32>
    %105 = vector.shape_cast %104 : vector<2x8x32xf32> to vector<16x32xf32>
    %c288 = arith.constant 288 : index
    %c0_84 = arith.constant 0 : index
    %106 = vector.load %arg0[%c288, %c0_84] : memref<1408x32xbf16, #tpu.memory_space<vmem>>, vector<32x32xbf16>
    %107 = arith.truncf %105 : vector<16x32xf32> to vector<16x32xbf16>
    %cst_85 = arith.constant dense<0.000000e+00> : vector<16x32xf32>
    %108 = tpu.matmul %107, %106, %cst_85 {dimension_numbers = #tpu.dot_dimension_numbers<[1], [0], [0], [1], [0, 0, 1, 1], [], []>} : vector<16x32xbf16>, vector<32x32xbf16>, vector<16x32xf32> -> vector<16x32xf32>
    %109 = arith.addf %103, %108 : vector<16x32xf32>
    %c0_86 = arith.constant 0 : index
    %c3_87 = arith.constant 3 : index
    %c0_88 = arith.constant 0 : index
    %110 = vector.load %arg12[%c0_86, %c3_87, %c0_88] : memref<2x14x32xf32, #tpu.memory_space<vmem>>, vector<2x8x32xf32>
    %111 = vector.shape_cast %110 : vector<2x8x32xf32> to vector<16x32xf32>
    %c320 = arith.constant 320 : index
    %c0_89 = arith.constant 0 : index
    %112 = vector.load %arg0[%c320, %c0_89] : memref<1408x32xbf16, #tpu.memory_space<vmem>>, vector<32x32xbf16>
    %113 = arith.truncf %111 : vector<16x32xf32> to vector<16x32xbf16>
    %cst_90 = arith.constant dense<0.000000e+00> : vector<16x32xf32>
    %114 = tpu.matmul %113, %112, %cst_90 {dimension_numbers = #tpu.dot_dimension_numbers<[1], [0], [0], [1], [0, 0, 1, 1], [], []>} : vector<16x32xbf16>, vector<32x32xbf16>, vector<16x32xf32> -> vector<16x32xf32>
    %115 = arith.addf %109, %114 : vector<16x32xf32>
    %c0_91 = arith.constant 0 : index
    %c4_92 = arith.constant 4 : index
    %c0_93 = arith.constant 0 : index
    %116 = vector.load %arg12[%c0_91, %c4_92, %c0_93] : memref<2x14x32xf32, #tpu.memory_space<vmem>>, vector<2x8x32xf32>
    %117 = vector.shape_cast %116 : vector<2x8x32xf32> to vector<16x32xf32>
    %c352 = arith.constant 352 : index
    %c0_94 = arith.constant 0 : index
    %118 = vector.load %arg0[%c352, %c0_94] : memref<1408x32xbf16, #tpu.memory_space<vmem>>, vector<32x32xbf16>
    %119 = arith.truncf %117 : vector<16x32xf32> to vector<16x32xbf16>
    %cst_95 = arith.constant dense<0.000000e+00> : vector<16x32xf32>
    %120 = tpu.matmul %119, %118, %cst_95 {dimension_numbers = #tpu.dot_dimension_numbers<[1], [0], [0], [1], [0, 0, 1, 1], [], []>} : vector<16x32xbf16>, vector<32x32xbf16>, vector<16x32xf32> -> vector<16x32xf32>
    %121 = arith.addf %115, %120 : vector<16x32xf32>
    %c0_96 = arith.constant 0 : index
    %c5_97 = arith.constant 5 : index
    %c0_98 = arith.constant 0 : index
    %122 = vector.load %arg12[%c0_96, %c5_97, %c0_98] : memref<2x14x32xf32, #tpu.memory_space<vmem>>, vector<2x8x32xf32>
    %123 = vector.shape_cast %122 : vector<2x8x32xf32> to vector<16x32xf32>
    %c384 = arith.constant 384 : index
    %c0_99 = arith.constant 0 : index
    %124 = vector.load %arg0[%c384, %c0_99] : memref<1408x32xbf16, #tpu.memory_space<vmem>>, vector<32x32xbf16>
    %125 = arith.truncf %123 : vector<16x32xf32> to vector<16x32xbf16>
    %cst_100 = arith.constant dense<0.000000e+00> : vector<16x32xf32>
    %126 = tpu.matmul %125, %124, %cst_100 {dimension_numbers = #tpu.dot_dimension_numbers<[1], [0], [0], [1], [0, 0, 1, 1], [], []>} : vector<16x32xbf16>, vector<32x32xbf16>, vector<16x32xf32> -> vector<16x32xf32>
    %127 = arith.addf %121, %126 : vector<16x32xf32>
    %c0_101 = arith.constant 0 : index
    %c6_102 = arith.constant 6 : index
    %c0_103 = arith.constant 0 : index
    %128 = vector.load %arg12[%c0_101, %c6_102, %c0_103] : memref<2x14x32xf32, #tpu.memory_space<vmem>>, vector<2x8x32xf32>
    %129 = vector.shape_cast %128 : vector<2x8x32xf32> to vector<16x32xf32>
    %c416 = arith.constant 416 : index
    %c0_104 = arith.constant 0 : index
    %130 = vector.load %arg0[%c416, %c0_104] : memref<1408x32xbf16, #tpu.memory_space<vmem>>, vector<32x32xbf16>
    %131 = arith.truncf %129 : vector<16x32xf32> to vector<16x32xbf16>
    %cst_105 = arith.constant dense<0.000000e+00> : vector<16x32xf32>
    %132 = tpu.matmul %131, %130, %cst_105 {dimension_numbers = #tpu.dot_dimension_numbers<[1], [0], [0], [1], [0, 0, 1, 1], [], []>} : vector<16x32xbf16>, vector<32x32xbf16>, vector<16x32xf32> -> vector<16x32xf32>
    %133 = arith.addf %127, %132 : vector<16x32xf32>
    %c0_106 = arith.constant 0 : index
    %c0_107 = arith.constant 0 : index
    %134 = vector.load %arg3[%c0_106, %c0_107] : memref<16x32xf32, #tpu.memory_space<vmem>>, vector<16x32xf32>
    %c448 = arith.constant 448 : index
    %c0_108 = arith.constant 0 : index
    %135 = vector.load %arg0[%c448, %c0_108] : memref<1408x32xbf16, #tpu.memory_space<vmem>>, vector<32x32xbf16>
    %136 = arith.truncf %134 : vector<16x32xf32> to vector<16x32xbf16>
    %cst_109 = arith.constant dense<0.000000e+00> : vector<16x32xf32>
    %137 = tpu.matmul %136, %135, %cst_109 {dimension_numbers = #tpu.dot_dimension_numbers<[1], [0], [0], [1], [0, 0, 1, 1], [], []>} : vector<16x32xbf16>, vector<32x32xbf16>, vector<16x32xf32> -> vector<16x32xf32>
    %138 = arith.addf %137, %133 : vector<16x32xf32>
    %c3_110 = arith.constant 3 : index
    %c0_111 = arith.constant 0 : index
    %139 = vector.load %arg1[%c3_110, %c0_111] : memref<24x32xf32, #tpu.memory_space<vmem>>, vector<1x32xf32>
    %140 = vector.broadcast %139 : vector<1x32xf32> to vector<16x32xf32>
    %141 = arith.addf %138, %140 : vector<16x32xf32>
    %cst_112 = arith.constant 0.000000e+00 : f32
    %142 = vector.broadcast %cst_112 : f32 to vector<16x32xf32>
    %143 = arith.cmpf oge, %141, %142 : vector<16x32xf32>
    %cst_113 = arith.constant 2.000000e-01 : f32
    %144 = vector.broadcast %cst_113 : f32 to vector<16x32xf32>
    %145 = arith.mulf %144, %141 : vector<16x32xf32>
    %146 = arith.select %143, %141, %145 : vector<16x32xi1>, vector<16x32xf32>
    %c480 = arith.constant 480 : index
    %c0_114 = arith.constant 0 : index
    %147 = vector.load %arg0[%c480, %c0_114] : memref<1408x32xbf16, #tpu.memory_space<vmem>>, vector<32x32xbf16>
    %148 = arith.truncf %146 : vector<16x32xf32> to vector<16x32xbf16>
    %cst_115 = arith.constant dense<0.000000e+00> : vector<16x32xf32>
    %149 = tpu.matmul %148, %147, %cst_115 {dimension_numbers = #tpu.dot_dimension_numbers<[1], [0], [0], [1], [0, 0, 1, 1], [], []>} : vector<16x32xbf16>, vector<32x32xbf16>, vector<16x32xf32> -> vector<16x32xf32>
    %c4_116 = arith.constant 4 : index
    %c0_117 = arith.constant 0 : index
    %150 = vector.load %arg1[%c4_116, %c0_117] : memref<24x32xf32, #tpu.memory_space<vmem>>, vector<1x32xf32>
    %151 = vector.broadcast %150 : vector<1x32xf32> to vector<16x32xf32>
    %152 = arith.addf %149, %151 : vector<16x32xf32>
    %cst_118 = arith.constant 0.000000e+00 : f32
    %153 = vector.broadcast %cst_118 : f32 to vector<16x32xf32>
    %154 = arith.cmpf oge, %152, %153 : vector<16x32xf32>
    %cst_119 = arith.constant 2.000000e-01 : f32
    %155 = vector.broadcast %cst_119 : f32 to vector<16x32xf32>
    %156 = arith.mulf %155, %152 : vector<16x32xf32>
    %157 = arith.select %154, %152, %156 : vector<16x32xi1>, vector<16x32xf32>
    %c512 = arith.constant 512 : index
    %c0_120 = arith.constant 0 : index
    %158 = vector.load %arg0[%c512, %c0_120] : memref<1408x32xbf16, #tpu.memory_space<vmem>>, vector<32x32xbf16>
    %159 = arith.truncf %157 : vector<16x32xf32> to vector<16x32xbf16>
    %cst_121 = arith.constant dense<0.000000e+00> : vector<16x32xf32>
    %160 = tpu.matmul %159, %158, %cst_121 {dimension_numbers = #tpu.dot_dimension_numbers<[1], [0], [0], [1], [0, 0, 1, 1], [], []>} : vector<16x32xbf16>, vector<32x32xbf16>, vector<16x32xf32> -> vector<16x32xf32>
    %161 = vector.broadcast %27 : vector<1x32xf32> to vector<16x32xf32>
    %162 = arith.addf %161, %160 : vector<16x32xf32>
    %c5_122 = arith.constant 5 : index
    %c0_123 = arith.constant 0 : index
    %163 = vector.load %arg1[%c5_122, %c0_123] : memref<24x32xf32, #tpu.memory_space<vmem>>, vector<1x32xf32>
    %164 = vector.broadcast %163 : vector<1x32xf32> to vector<16x32xf32>
    %165 = arith.addf %162, %164 : vector<16x32xf32>
    %cst_124 = arith.constant 0.000000e+00 : f32
    %166 = vector.broadcast %cst_124 : f32 to vector<16x32xf32>
    %167 = arith.cmpf oge, %165, %166 : vector<16x32xf32>
    %cst_125 = arith.constant 2.000000e-01 : f32
    %168 = vector.broadcast %cst_125 : f32 to vector<16x32xf32>
    %169 = arith.mulf %168, %165 : vector<16x32xf32>
    %170 = arith.select %167, %165, %169 : vector<16x32xi1>, vector<16x32xf32>
    %c544 = arith.constant 544 : index
    %c0_126 = arith.constant 0 : index
    %171 = vector.load %arg0[%c544, %c0_126] : memref<1408x32xbf16, #tpu.memory_space<vmem>>, vector<32x32xbf16>
    %172 = arith.truncf %170 : vector<16x32xf32> to vector<16x32xbf16>
    %cst_127 = arith.constant dense<0.000000e+00> : vector<16x32xf32>
    %173 = tpu.matmul %172, %171, %cst_127 {dimension_numbers = #tpu.dot_dimension_numbers<[1], [0], [0], [1], [0, 0, 1, 1], [], []>} : vector<16x32xbf16>, vector<32x32xbf16>, vector<16x32xf32> -> vector<16x32xf32>
    %c6_128 = arith.constant 6 : index
    %c0_129 = arith.constant 0 : index
    %174 = vector.load %arg1[%c6_128, %c0_129] : memref<24x32xf32, #tpu.memory_space<vmem>>, vector<1x32xf32>
    %175 = vector.broadcast %174 : vector<1x32xf32> to vector<16x32xf32>
    %176 = arith.addf %173, %175 : vector<16x32xf32>
    %cst_130 = arith.constant 0.000000e+00 : f32
    %177 = vector.broadcast %cst_130 : f32 to vector<16x32xf32>
    %178 = arith.cmpf oge, %176, %177 : vector<16x32xf32>
    %cst_131 = arith.constant 2.000000e-01 : f32
    %179 = vector.broadcast %cst_131 : f32 to vector<16x32xf32>
    %180 = arith.mulf %179, %176 : vector<16x32xf32>
    %181 = arith.select %178, %176, %180 : vector<16x32xi1>, vector<16x32xf32>
    %c576 = arith.constant 576 : index
    %c0_132 = arith.constant 0 : index
    %182 = vector.load %arg0[%c576, %c0_132] : memref<1408x32xbf16, #tpu.memory_space<vmem>>, vector<32x32xbf16>
    %183 = arith.truncf %181 : vector<16x32xf32> to vector<16x32xbf16>
    %cst_133 = arith.constant dense<0.000000e+00> : vector<16x32xf32>
    %184 = tpu.matmul %183, %182, %cst_133 {dimension_numbers = #tpu.dot_dimension_numbers<[1], [0], [0], [1], [0, 0, 1, 1], [], []>} : vector<16x32xbf16>, vector<32x32xbf16>, vector<16x32xf32> -> vector<16x32xf32>
    %c7 = arith.constant 7 : index
    %c0_134 = arith.constant 0 : index
    %185 = vector.load %arg1[%c7, %c0_134] : memref<24x32xf32, #tpu.memory_space<vmem>>, vector<1x32xf32>
    %186 = vector.broadcast %185 : vector<1x32xf32> to vector<16x32xf32>
    %187 = arith.addf %184, %186 : vector<16x32xf32>
    %188 = vector.shape_cast %187 : vector<16x32xf32> to vector<2x8x32xf32>
    %c0_135 = arith.constant 0 : index
    %c3_136 = arith.constant 3 : index
    %c0_137 = arith.constant 0 : index
    %189 = vector.load %arg12[%c0_135, %c3_136, %c0_137] : memref<2x14x32xf32, #tpu.memory_space<vmem>>, vector<2x8x32xf32>
    tpu.vector_store %arg12[%c0_135, %c3_136, %c0_137], %188 {strides = array<i32>} : memref<2x14x32xf32, #tpu.memory_space<vmem>>, vector<2x8x32xf32>,
    %c0_138 = arith.constant 0 : index
    %c2_139 = arith.constant 2 : index
    %c0_140 = arith.constant 0 : index
    %190 = vector.load %arg12[%c0_138, %c2_139, %c0_140] : memref<2x14x32xf32, #tpu.memory_space<vmem>>, vector<2x8x32xf32>
    %191 = vector.shape_cast %190 : vector<2x8x32xf32> to vector<16x32xf32>
    %c608 = arith.constant 608 : index
    %c0_141 = arith.constant 0 : index
    %192 = vector.load %arg0[%c608, %c0_141] : memref<1408x32xbf16, #tpu.memory_space<vmem>>, vector<32x32xbf16>
    %193 = arith.truncf %191 : vector<16x32xf32> to vector<16x32xbf16>
    %cst_142 = arith.constant dense<0.000000e+00> : vector<16x32xf32>
    %194 = tpu.matmul %193, %192, %cst_142 {dimension_numbers = #tpu.dot_dimension_numbers<[1], [0], [0], [1], [0, 0, 1, 1], [], []>} : vector<16x32xbf16>, vector<32x32xbf16>, vector<16x32xf32> -> vector<16x32xf32>
    %c0_143 = arith.constant 0 : index
    %c3_144 = arith.constant 3 : index
    %c0_145 = arith.constant 0 : index
    %195 = vector.load %arg12[%c0_143, %c3_144, %c0_145] : memref<2x14x32xf32, #tpu.memory_space<vmem>>, vector<2x8x32xf32>
    %196 = vector.shape_cast %195 : vector<2x8x32xf32> to vector<16x32xf32>
    %c640 = arith.constant 640 : index
    %c0_146 = arith.constant 0 : index
    %197 = vector.load %arg0[%c640, %c0_146] : memref<1408x32xbf16, #tpu.memory_space<vmem>>, vector<32x32xbf16>
    %198 = arith.truncf %196 : vector<16x32xf32> to vector<16x32xbf16>
    %cst_147 = arith.constant dense<0.000000e+00> : vector<16x32xf32>
    %199 = tpu.matmul %198, %197, %cst_147 {dimension_numbers = #tpu.dot_dimension_numbers<[1], [0], [0], [1], [0, 0, 1, 1], [], []>} : vector<16x32xbf16>, vector<32x32xbf16>, vector<16x32xf32> -> vector<16x32xf32>
    %200 = arith.addf %194, %199 : vector<16x32xf32>
    %c0_148 = arith.constant 0 : index
    %c4_149 = arith.constant 4 : index
    %c0_150 = arith.constant 0 : index
    %201 = vector.load %arg12[%c0_148, %c4_149, %c0_150] : memref<2x14x32xf32, #tpu.memory_space<vmem>>, vector<2x8x32xf32>
    %202 = vector.shape_cast %201 : vector<2x8x32xf32> to vector<16x32xf32>
    %c672 = arith.constant 672 : index
    %c0_151 = arith.constant 0 : index
    %203 = vector.load %arg0[%c672, %c0_151] : memref<1408x32xbf16, #tpu.memory_space<vmem>>, vector<32x32xbf16>
    %204 = arith.truncf %202 : vector<16x32xf32> to vector<16x32xbf16>
    %cst_152 = arith.constant dense<0.000000e+00> : vector<16x32xf32>
    %205 = tpu.matmul %204, %203, %cst_152 {dimension_numbers = #tpu.dot_dimension_numbers<[1], [0], [0], [1], [0, 0, 1, 1], [], []>} : vector<16x32xbf16>, vector<32x32xbf16>, vector<16x32xf32> -> vector<16x32xf32>
    %206 = arith.addf %200, %205 : vector<16x32xf32>
    %c8 = arith.constant 8 : index
    %c0_153 = arith.constant 0 : index
    %207 = vector.load %arg1[%c8, %c0_153] : memref<24x32xf32, #tpu.memory_space<vmem>>, vector<1x32xf32>
    %208 = vector.broadcast %207 : vector<1x32xf32> to vector<16x32xf32>
    %209 = arith.addf %206, %208 : vector<16x32xf32>
    %210 = arith.addf %209, %187 : vector<16x32xf32>
    %cst_154 = arith.constant 0.000000e+00 : f32
    %211 = vector.broadcast %cst_154 : f32 to vector<16x32xf32>
    %212 = arith.cmpf oge, %210, %211 : vector<16x32xf32>
    %cst_155 = arith.constant 2.000000e-01 : f32
    %213 = vector.broadcast %cst_155 : f32 to vector<16x32xf32>
    %214 = arith.mulf %213, %210 : vector<16x32xf32>
    %215 = arith.select %212, %210, %214 : vector<16x32xi1>, vector<16x32xf32>
    %216 = vector.shape_cast %215 : vector<16x32xf32> to vector<2x8x32xf32>
    %c0_156 = arith.constant 0 : index
    %c3_157 = arith.constant 3 : index
    %c0_158 = arith.constant 0 : index
    %217 = vector.load %arg12[%c0_156, %c3_157, %c0_158] : memref<2x14x32xf32, #tpu.memory_space<vmem>>, vector<2x8x32xf32>
    tpu.vector_store %arg12[%c0_156, %c3_157, %c0_158], %216 {strides = array<i32>} : memref<2x14x32xf32, #tpu.memory_space<vmem>>, vector<2x8x32xf32>,
    %c0_159 = arith.constant 0 : index
    %c0_160 = arith.constant 0 : index
    %c0_161 = arith.constant 0 : index
    %218 = vector.load %arg12[%c0_159, %c0_160, %c0_161] : memref<2x14x32xf32, #tpu.memory_space<vmem>>, vector<2x8x32xf32>
    %219 = vector.shape_cast %218 : vector<2x8x32xf32> to vector<16x32xf32>
    %c704 = arith.constant 704 : index
    %c0_162 = arith.constant 0 : index
    %220 = vector.load %arg0[%c704, %c0_162] : memref<1408x32xbf16, #tpu.memory_space<vmem>>, vector<32x32xbf16>
    %221 = arith.truncf %219 : vector<16x32xf32> to vector<16x32xbf16>
    %cst_163 = arith.constant dense<0.000000e+00> : vector<16x32xf32>
    %222 = tpu.matmul %221, %220, %cst_163 {dimension_numbers = #tpu.dot_dimension_numbers<[1], [0], [0], [1], [0, 0, 1, 1], [], []>} : vector<16x32xbf16>, vector<32x32xbf16>, vector<16x32xf32> -> vector<16x32xf32>
    %c0_164 = arith.constant 0 : index
    %c3_165 = arith.constant 3 : index
    %c0_166 = arith.constant 0 : index
    %223 = vector.load %arg12[%c0_164, %c3_165, %c0_166] : memref<2x14x32xf32, #tpu.memory_space<vmem>>, vector<2x8x32xf32>
    %224 = vector.shape_cast %223 : vector<2x8x32xf32> to vector<16x32xf32>
    %c736 = arith.constant 736 : index
    %c0_167 = arith.constant 0 : index
    %225 = vector.load %arg0[%c736, %c0_167] : memref<1408x32xbf16, #tpu.memory_space<vmem>>, vector<32x32xbf16>
    %226 = arith.truncf %224 : vector<16x32xf32> to vector<16x32xbf16>
    %cst_168 = arith.constant dense<0.000000e+00> : vector<16x32xf32>
    %227 = tpu.matmul %226, %225, %cst_168 {dimension_numbers = #tpu.dot_dimension_numbers<[1], [0], [0], [1], [0, 0, 1, 1], [], []>} : vector<16x32xbf16>, vector<32x32xbf16>, vector<16x32xf32> -> vector<16x32xf32>
    %228 = arith.addf %222, %227 : vector<16x32xf32>
    %c0_169 = arith.constant 0 : index
    %c6_170 = arith.constant 6 : index
    %c0_171 = arith.constant 0 : index
    %229 = vector.load %arg12[%c0_169, %c6_170, %c0_171] : memref<2x14x32xf32, #tpu.memory_space<vmem>>, vector<2x8x32xf32>
    %230 = vector.shape_cast %229 : vector<2x8x32xf32> to vector<16x32xf32>
    %c768 = arith.constant 768 : index
    %c0_172 = arith.constant 0 : index
    %231 = vector.load %arg0[%c768, %c0_172] : memref<1408x32xbf16, #tpu.memory_space<vmem>>, vector<32x32xbf16>
    %232 = arith.truncf %230 : vector<16x32xf32> to vector<16x32xbf16>
    %cst_173 = arith.constant dense<0.000000e+00> : vector<16x32xf32>
    %233 = tpu.matmul %232, %231, %cst_173 {dimension_numbers = #tpu.dot_dimension_numbers<[1], [0], [0], [1], [0, 0, 1, 1], [], []>} : vector<16x32xbf16>, vector<32x32xbf16>, vector<16x32xf32> -> vector<16x32xf32>
    %234 = arith.addf %228, %233 : vector<16x32xf32>
    %c9 = arith.constant 9 : index
    %c0_174 = arith.constant 0 : index
    %235 = vector.load %arg1[%c9, %c0_174] : memref<24x32xf32, #tpu.memory_space<vmem>>, vector<1x32xf32>
    %236 = vector.broadcast %235 : vector<1x32xf32> to vector<16x32xf32>
    %237 = arith.addf %234, %236 : vector<16x32xf32>
    %238 = arith.addf %237, %215 : vector<16x32xf32>
    %cst_175 = arith.constant 0.000000e+00 : f32
    %239 = vector.broadcast %cst_175 : f32 to vector<16x32xf32>
    %240 = arith.cmpf oge, %238, %239 : vector<16x32xf32>
    %cst_176 = arith.constant 2.000000e-01 : f32
    %241 = vector.broadcast %cst_176 : f32 to vector<16x32xf32>
    %242 = arith.mulf %241, %238 : vector<16x32xf32>
    %243 = arith.select %240, %238, %242 : vector<16x32xi1>, vector<16x32xf32>
    %c800 = arith.constant 800 : index
    %c0_177 = arith.constant 0 : index
    %244 = vector.load %arg0[%c800, %c0_177] : memref<1408x32xbf16, #tpu.memory_space<vmem>>, vector<32x32xbf16>
    %245 = arith.truncf %243 : vector<16x32xf32> to vector<16x32xbf16>
    %cst_178 = arith.constant dense<0.000000e+00> : vector<16x32xf32>
    %246 = tpu.matmul %245, %244, %cst_178 {dimension_numbers = #tpu.dot_dimension_numbers<[1], [0], [0], [1], [0, 0, 1, 1], [], []>} : vector<16x32xbf16>, vector<32x32xbf16>, vector<16x32xf32> -> vector<16x32xf32>
    %c10 = arith.constant 10 : index
    %c0_179 = arith.constant 0 : index
    %247 = vector.load %arg1[%c10, %c0_179] : memref<24x32xf32, #tpu.memory_space<vmem>>, vector<1x32xf32>
    %248 = vector.broadcast %247 : vector<1x32xf32> to vector<16x32xf32>
    %249 = arith.addf %246, %248 : vector<16x32xf32>
    %250 = arith.addf %249, %243 : vector<16x32xf32>
    %cst_180 = arith.constant 0.000000e+00 : f32
    %251 = vector.broadcast %cst_180 : f32 to vector<16x32xf32>
    %252 = arith.cmpf oge, %250, %251 : vector<16x32xf32>
    %cst_181 = arith.constant 2.000000e-01 : f32
    %253 = vector.broadcast %cst_181 : f32 to vector<16x32xf32>
    %254 = arith.mulf %253, %250 : vector<16x32xf32>
    %255 = arith.select %252, %250, %254 : vector<16x32xi1>, vector<16x32xf32>
    %c832 = arith.constant 832 : index
    %c0_182 = arith.constant 0 : index
    %256 = vector.load %arg0[%c832, %c0_182] : memref<1408x32xbf16, #tpu.memory_space<vmem>>, vector<32x32xbf16>
    %257 = arith.truncf %255 : vector<16x32xf32> to vector<16x32xbf16>
    %cst_183 = arith.constant dense<0.000000e+00> : vector<16x32xf32>
    %258 = tpu.matmul %257, %256, %cst_183 {dimension_numbers = #tpu.dot_dimension_numbers<[1], [0], [0], [1], [0, 0, 1, 1], [], []>} : vector<16x32xbf16>, vector<32x32xbf16>, vector<16x32xf32> -> vector<16x32xf32>
    %c0_184 = arith.constant 0 : index
    %c0_185 = arith.constant 0 : index
    %259 = vector.load %arg8[%c0_184, %c0_185] : memref<128x16xbf16, #tpu.memory_space<vmem>>, vector<128x16xbf16>
    %260 = arith.truncf %258 : vector<16x32xf32> to vector<16x32xbf16>
    %cst_186 = arith.constant dense<0.000000e+00> : vector<128x32xf32>
    %261 = tpu.matmul %259, %260, %cst_186 {dimension_numbers = #tpu.dot_dimension_numbers<[1], [0], [0], [1], [0, 0, 1, 1], [], []>} : vector<128x16xbf16>, vector<16x32xbf16>, vector<128x32xf32> -> vector<128x32xf32>
    %c0_187 = arith.constant 0 : index
    %c0_188 = arith.constant 0 : index
    %262 = vector.load %arg5[%c0_187, %c0_188] : memref<128x32xf32, #tpu.memory_space<vmem>>, vector<128x32xf32>
    %c864 = arith.constant 864 : index
    %c0_189 = arith.constant 0 : index
    %263 = vector.load %arg0[%c864, %c0_189] : memref<1408x32xbf16, #tpu.memory_space<vmem>>, vector<32x32xbf16>
    %264 = arith.truncf %262 : vector<128x32xf32> to vector<128x32xbf16>
    %cst_190 = arith.constant dense<0.000000e+00> : vector<128x32xf32>
    %265 = tpu.matmul %264, %263, %cst_190 {dimension_numbers = #tpu.dot_dimension_numbers<[1], [0], [0], [1], [0, 0, 1, 1], [], []>} : vector<128x32xbf16>, vector<32x32xbf16>, vector<128x32xf32> -> vector<128x32xf32>
    %266 = arith.addf %261, %265 : vector<128x32xf32>
    %c11 = arith.constant 11 : index
    %c0_191 = arith.constant 0 : index
    %267 = vector.load %arg1[%c11, %c0_191] : memref<24x32xf32, #tpu.memory_space<vmem>>, vector<1x32xf32>
    %268 = vector.broadcast %267 : vector<1x32xf32> to vector<128x32xf32>
    %269 = arith.addf %266, %268 : vector<128x32xf32>
    %270 = vector.shape_cast %269 : vector<128x32xf32> to vector<2x64x32xf32>
    %c0_192 = arith.constant 0 : index
    %c27 = arith.constant 27 : index
    %c0_193 = arith.constant 0 : index
    %271 = vector.load %arg13[%c0_192, %c27, %c0_193] : memref<2x118x32xf32, #tpu.memory_space<vmem>>, vector<2x64x32xf32>
    tpu.vector_store %arg13[%c0_192, %c27, %c0_193], %270 {strides = array<i32>} : memref<2x118x32xf32, #tpu.memory_space<vmem>>, vector<2x64x32xf32>,
    %c0_194 = arith.constant 0 : index
    %c26 = arith.constant 26 : index
    %c0_195 = arith.constant 0 : index
    %272 = vector.load %arg13[%c0_194, %c26, %c0_195] : memref<2x118x32xf32, #tpu.memory_space<vmem>>, vector<2x64x32xf32>
    %273 = vector.shape_cast %272 : vector<2x64x32xf32> to vector<128x32xf32>
    %c896 = arith.constant 896 : index
    %c0_196 = arith.constant 0 : index
    %274 = vector.load %arg0[%c896, %c0_196] : memref<1408x32xbf16, #tpu.memory_space<vmem>>, vector<32x32xbf16>
    %275 = arith.truncf %273 : vector<128x32xf32> to vector<128x32xbf16>
    %cst_197 = arith.constant dense<0.000000e+00> : vector<128x32xf32>
    %276 = tpu.matmul %275, %274, %cst_197 {dimension_numbers = #tpu.dot_dimension_numbers<[1], [0], [0], [1], [0, 0, 1, 1], [], []>} : vector<128x32xbf16>, vector<32x32xbf16>, vector<128x32xf32> -> vector<128x32xf32>
    %c0_198 = arith.constant 0 : index
    %c27_199 = arith.constant 27 : index
    %c0_200 = arith.constant 0 : index
    %277 = vector.load %arg13[%c0_198, %c27_199, %c0_200] : memref<2x118x32xf32, #tpu.memory_space<vmem>>, vector<2x64x32xf32>
    %278 = vector.shape_cast %277 : vector<2x64x32xf32> to vector<128x32xf32>
    %c928 = arith.constant 928 : index
    %c0_201 = arith.constant 0 : index
    %279 = vector.load %arg0[%c928, %c0_201] : memref<1408x32xbf16, #tpu.memory_space<vmem>>, vector<32x32xbf16>
    %280 = arith.truncf %278 : vector<128x32xf32> to vector<128x32xbf16>
    %cst_202 = arith.constant dense<0.000000e+00> : vector<128x32xf32>
    %281 = tpu.matmul %280, %279, %cst_202 {dimension_numbers = #tpu.dot_dimension_numbers<[1], [0], [0], [1], [0, 0, 1, 1], [], []>} : vector<128x32xbf16>, vector<32x32xbf16>, vector<128x32xf32> -> vector<128x32xf32>
    %282 = arith.addf %276, %281 : vector<128x32xf32>
    %c0_203 = arith.constant 0 : index
    %c28 = arith.constant 28 : index
    %c0_204 = arith.constant 0 : index
    %283 = vector.load %arg13[%c0_203, %c28, %c0_204] : memref<2x118x32xf32, #tpu.memory_space<vmem>>, vector<2x64x32xf32>
    %284 = vector.shape_cast %283 : vector<2x64x32xf32> to vector<128x32xf32>
    %c960 = arith.constant 960 : index
    %c0_205 = arith.constant 0 : index
    %285 = vector.load %arg0[%c960, %c0_205] : memref<1408x32xbf16, #tpu.memory_space<vmem>>, vector<32x32xbf16>
    %286 = arith.truncf %284 : vector<128x32xf32> to vector<128x32xbf16>
    %cst_206 = arith.constant dense<0.000000e+00> : vector<128x32xf32>
    %287 = tpu.matmul %286, %285, %cst_206 {dimension_numbers = #tpu.dot_dimension_numbers<[1], [0], [0], [1], [0, 0, 1, 1], [], []>} : vector<128x32xbf16>, vector<32x32xbf16>, vector<128x32xf32> -> vector<128x32xf32>
    %288 = arith.addf %282, %287 : vector<128x32xf32>
    %c12 = arith.constant 12 : index
    %c0_207 = arith.constant 0 : index
    %289 = vector.load %arg1[%c12, %c0_207] : memref<24x32xf32, #tpu.memory_space<vmem>>, vector<1x32xf32>
    %290 = vector.broadcast %289 : vector<1x32xf32> to vector<128x32xf32>
    %291 = arith.addf %288, %290 : vector<128x32xf32>
    %292 = arith.addf %291, %269 : vector<128x32xf32>
    %cst_208 = arith.constant 0.000000e+00 : f32
    %293 = vector.broadcast %cst_208 : f32 to vector<128x32xf32>
    %294 = arith.cmpf oge, %292, %293 : vector<128x32xf32>
    %cst_209 = arith.constant 2.000000e-01 : f32
    %295 = vector.broadcast %cst_209 : f32 to vector<128x32xf32>
    %296 = arith.mulf %295, %292 : vector<128x32xf32>
    %297 = arith.select %294, %292, %296 : vector<128x32xi1>, vector<128x32xf32>
    %298 = vector.shape_cast %297 : vector<128x32xf32> to vector<2x64x32xf32>
    %c0_210 = arith.constant 0 : index
    %c27_211 = arith.constant 27 : index
    %c0_212 = arith.constant 0 : index
    %299 = vector.load %arg13[%c0_210, %c27_211, %c0_212] : memref<2x118x32xf32, #tpu.memory_space<vmem>>, vector<2x64x32xf32>
    tpu.vector_store %arg13[%c0_210, %c27_211, %c0_212], %298 {strides = array<i32>} : memref<2x118x32xf32, #tpu.memory_space<vmem>>, vector<2x64x32xf32>,
    %c0_213 = arith.constant 0 : index
    %c24 = arith.constant 24 : index
    %c0_214 = arith.constant 0 : index
    %300 = vector.load %arg13[%c0_213, %c24, %c0_214] : memref<2x118x32xf32, #tpu.memory_space<vmem>>, vector<2x64x32xf32>
    %301 = vector.shape_cast %300 : vector<2x64x32xf32> to vector<128x32xf32>
    %c992 = arith.constant 992 : index
    %c0_215 = arith.constant 0 : index
    %302 = vector.load %arg0[%c992, %c0_215] : memref<1408x32xbf16, #tpu.memory_space<vmem>>, vector<32x32xbf16>
    %303 = arith.truncf %301 : vector<128x32xf32> to vector<128x32xbf16>
    %cst_216 = arith.constant dense<0.000000e+00> : vector<128x32xf32>
    %304 = tpu.matmul %303, %302, %cst_216 {dimension_numbers = #tpu.dot_dimension_numbers<[1], [0], [0], [1], [0, 0, 1, 1], [], []>} : vector<128x32xbf16>, vector<32x32xbf16>, vector<128x32xf32> -> vector<128x32xf32>
    %c0_217 = arith.constant 0 : index
    %c27_218 = arith.constant 27 : index
    %c0_219 = arith.constant 0 : index
    %305 = vector.load %arg13[%c0_217, %c27_218, %c0_219] : memref<2x118x32xf32, #tpu.memory_space<vmem>>, vector<2x64x32xf32>
    %306 = vector.shape_cast %305 : vector<2x64x32xf32> to vector<128x32xf32>
    %c1024 = arith.constant 1024 : index
    %c0_220 = arith.constant 0 : index
    %307 = vector.load %arg0[%c1024, %c0_220] : memref<1408x32xbf16, #tpu.memory_space<vmem>>, vector<32x32xbf16>
    %308 = arith.truncf %306 : vector<128x32xf32> to vector<128x32xbf16>
    %cst_221 = arith.constant dense<0.000000e+00> : vector<128x32xf32>
    %309 = tpu.matmul %308, %307, %cst_221 {dimension_numbers = #tpu.dot_dimension_numbers<[1], [0], [0], [1], [0, 0, 1, 1], [], []>} : vector<128x32xbf16>, vector<32x32xbf16>, vector<128x32xf32> -> vector<128x32xf32>
    %310 = arith.addf %304, %309 : vector<128x32xf32>
    %c0_222 = arith.constant 0 : index
    %c30 = arith.constant 30 : index
    %c0_223 = arith.constant 0 : index
    %311 = vector.load %arg13[%c0_222, %c30, %c0_223] : memref<2x118x32xf32, #tpu.memory_space<vmem>>, vector<2x64x32xf32>
    %312 = vector.shape_cast %311 : vector<2x64x32xf32> to vector<128x32xf32>
    %c1056 = arith.constant 1056 : index
    %c0_224 = arith.constant 0 : index
    %313 = vector.load %arg0[%c1056, %c0_224] : memref<1408x32xbf16, #tpu.memory_space<vmem>>, vector<32x32xbf16>
    %314 = arith.truncf %312 : vector<128x32xf32> to vector<128x32xbf16>
    %cst_225 = arith.constant dense<0.000000e+00> : vector<128x32xf32>
    %315 = tpu.matmul %314, %313, %cst_225 {dimension_numbers = #tpu.dot_dimension_numbers<[1], [0], [0], [1], [0, 0, 1, 1], [], []>} : vector<128x32xbf16>, vector<32x32xbf16>, vector<128x32xf32> -> vector<128x32xf32>
    %316 = arith.addf %310, %315 : vector<128x32xf32>
    %c13 = arith.constant 13 : index
    %c0_226 = arith.constant 0 : index
    %317 = vector.load %arg1[%c13, %c0_226] : memref<24x32xf32, #tpu.memory_space<vmem>>, vector<1x32xf32>
    %318 = vector.broadcast %317 : vector<1x32xf32> to vector<128x32xf32>
    %319 = arith.addf %316, %318 : vector<128x32xf32>
    %320 = arith.addf %319, %297 : vector<128x32xf32>
    %cst_227 = arith.constant 0.000000e+00 : f32
    %321 = vector.broadcast %cst_227 : f32 to vector<128x32xf32>
    %322 = arith.cmpf oge, %320, %321 : vector<128x32xf32>
    %cst_228 = arith.constant 2.000000e-01 : f32
    %323 = vector.broadcast %cst_228 : f32 to vector<128x32xf32>
    %324 = arith.mulf %323, %320 : vector<128x32xf32>
    %325 = arith.select %322, %320, %324 : vector<128x32xi1>, vector<128x32xf32>
    %326 = vector.shape_cast %325 : vector<128x32xf32> to vector<2x64x32xf32>
    %c0_229 = arith.constant 0 : index
    %c27_230 = arith.constant 27 : index
    %c0_231 = arith.constant 0 : index
    %327 = vector.load %arg13[%c0_229, %c27_230, %c0_231] : memref<2x118x32xf32, #tpu.memory_space<vmem>>, vector<2x64x32xf32>
    tpu.vector_store %arg13[%c0_229, %c27_230, %c0_231], %326 {strides = array<i32>} : memref<2x118x32xf32, #tpu.memory_space<vmem>>, vector<2x64x32xf32>,
    %c0_232 = arith.constant 0 : index
    %c18 = arith.constant 18 : index
    %c0_233 = arith.constant 0 : index
    %328 = vector.load %arg13[%c0_232, %c18, %c0_233] : memref<2x118x32xf32, #tpu.memory_space<vmem>>, vector<2x64x32xf32>
    %329 = vector.shape_cast %328 : vector<2x64x32xf32> to vector<128x32xf32>
    %c1088 = arith.constant 1088 : index
    %c0_234 = arith.constant 0 : index
    %330 = vector.load %arg0[%c1088, %c0_234] : memref<1408x32xbf16, #tpu.memory_space<vmem>>, vector<32x32xbf16>
    %331 = arith.truncf %329 : vector<128x32xf32> to vector<128x32xbf16>
    %cst_235 = arith.constant dense<0.000000e+00> : vector<128x32xf32>
    %332 = tpu.matmul %331, %330, %cst_235 {dimension_numbers = #tpu.dot_dimension_numbers<[1], [0], [0], [1], [0, 0, 1, 1], [], []>} : vector<128x32xbf16>, vector<32x32xbf16>, vector<128x32xf32> -> vector<128x32xf32>
    %c0_236 = arith.constant 0 : index
    %c27_237 = arith.constant 27 : index
    %c0_238 = arith.constant 0 : index
    %333 = vector.load %arg13[%c0_236, %c27_237, %c0_238] : memref<2x118x32xf32, #tpu.memory_space<vmem>>, vector<2x64x32xf32>
    %334 = vector.shape_cast %333 : vector<2x64x32xf32> to vector<128x32xf32>
    %c1120 = arith.constant 1120 : index
    %c0_239 = arith.constant 0 : index
    %335 = vector.load %arg0[%c1120, %c0_239] : memref<1408x32xbf16, #tpu.memory_space<vmem>>, vector<32x32xbf16>
    %336 = arith.truncf %334 : vector<128x32xf32> to vector<128x32xbf16>
    %cst_240 = arith.constant dense<0.000000e+00> : vector<128x32xf32>
    %337 = tpu.matmul %336, %335, %cst_240 {dimension_numbers = #tpu.dot_dimension_numbers<[1], [0], [0], [1], [0, 0, 1, 1], [], []>} : vector<128x32xbf16>, vector<32x32xbf16>, vector<128x32xf32> -> vector<128x32xf32>
    %338 = arith.addf %332, %337 : vector<128x32xf32>
    %c0_241 = arith.constant 0 : index
    %c36 = arith.constant 36 : index
    %c0_242 = arith.constant 0 : index
    %339 = vector.load %arg13[%c0_241, %c36, %c0_242] : memref<2x118x32xf32, #tpu.memory_space<vmem>>, vector<2x64x32xf32>
    %340 = vector.shape_cast %339 : vector<2x64x32xf32> to vector<128x32xf32>
    %c1152 = arith.constant 1152 : index
    %c0_243 = arith.constant 0 : index
    %341 = vector.load %arg0[%c1152, %c0_243] : memref<1408x32xbf16, #tpu.memory_space<vmem>>, vector<32x32xbf16>
    %342 = arith.truncf %340 : vector<128x32xf32> to vector<128x32xbf16>
    %cst_244 = arith.constant dense<0.000000e+00> : vector<128x32xf32>
    %343 = tpu.matmul %342, %341, %cst_244 {dimension_numbers = #tpu.dot_dimension_numbers<[1], [0], [0], [1], [0, 0, 1, 1], [], []>} : vector<128x32xbf16>, vector<32x32xbf16>, vector<128x32xf32> -> vector<128x32xf32>
    %344 = arith.addf %338, %343 : vector<128x32xf32>
    %c14 = arith.constant 14 : index
    %c0_245 = arith.constant 0 : index
    %345 = vector.load %arg1[%c14, %c0_245] : memref<24x32xf32, #tpu.memory_space<vmem>>, vector<1x32xf32>
    %346 = vector.broadcast %345 : vector<1x32xf32> to vector<128x32xf32>
    %347 = arith.addf %344, %346 : vector<128x32xf32>
    %348 = arith.addf %347, %325 : vector<128x32xf32>
    %cst_246 = arith.constant 0.000000e+00 : f32
    %349 = vector.broadcast %cst_246 : f32 to vector<128x32xf32>
    %350 = arith.cmpf oge, %348, %349 : vector<128x32xf32>
    %cst_247 = arith.constant 2.000000e-01 : f32
    %351 = vector.broadcast %cst_247 : f32 to vector<128x32xf32>
    %352 = arith.mulf %351, %348 : vector<128x32xf32>
    %353 = arith.select %350, %348, %352 : vector<128x32xi1>, vector<128x32xf32>
    %354 = vector.shape_cast %353 : vector<128x32xf32> to vector<2x64x32xf32>
    %c0_248 = arith.constant 0 : index
    %c27_249 = arith.constant 27 : index
    %c0_250 = arith.constant 0 : index
    %355 = vector.load %arg13[%c0_248, %c27_249, %c0_250] : memref<2x118x32xf32, #tpu.memory_space<vmem>>, vector<2x64x32xf32>
    tpu.vector_store %arg13[%c0_248, %c27_249, %c0_250], %354 {strides = array<i32>} : memref<2x118x32xf32, #tpu.memory_space<vmem>>, vector<2x64x32xf32>,
    %c0_251 = arith.constant 0 : index
    %c0_252 = arith.constant 0 : index
    %c0_253 = arith.constant 0 : index
    %356 = vector.load %arg13[%c0_251, %c0_252, %c0_253] : memref<2x118x32xf32, #tpu.memory_space<vmem>>, vector<2x64x32xf32>
    %357 = vector.shape_cast %356 : vector<2x64x32xf32> to vector<128x32xf32>
    %c1184 = arith.constant 1184 : index
    %c0_254 = arith.constant 0 : index
    %358 = vector.load %arg0[%c1184, %c0_254] : memref<1408x32xbf16, #tpu.memory_space<vmem>>, vector<32x32xbf16>
    %359 = arith.truncf %357 : vector<128x32xf32> to vector<128x32xbf16>
    %cst_255 = arith.constant dense<0.000000e+00> : vector<128x32xf32>
    %360 = tpu.matmul %359, %358, %cst_255 {dimension_numbers = #tpu.dot_dimension_numbers<[1], [0], [0], [1], [0, 0, 1, 1], [], []>} : vector<128x32xbf16>, vector<32x32xbf16>, vector<128x32xf32> -> vector<128x32xf32>
    %c0_256 = arith.constant 0 : index
    %c27_257 = arith.constant 27 : index
    %c0_258 = arith.constant 0 : index
    %361 = vector.load %arg13[%c0_256, %c27_257, %c0_258] : memref<2x118x32xf32, #tpu.memory_space<vmem>>, vector<2x64x32xf32>
    %362 = vector.shape_cast %361 : vector<2x64x32xf32> to vector<128x32xf32>
    %c1216 = arith.constant 1216 : index
    %c0_259 = arith.constant 0 : index
    %363 = vector.load %arg0[%c1216, %c0_259] : memref<1408x32xbf16, #tpu.memory_space<vmem>>, vector<32x32xbf16>
    %364 = arith.truncf %362 : vector<128x32xf32> to vector<128x32xbf16>
    %cst_260 = arith.constant dense<0.000000e+00> : vector<128x32xf32>
    %365 = tpu.matmul %364, %363, %cst_260 {dimension_numbers = #tpu.dot_dimension_numbers<[1], [0], [0], [1], [0, 0, 1, 1], [], []>} : vector<128x32xbf16>, vector<32x32xbf16>, vector<128x32xf32> -> vector<128x32xf32>
    %366 = arith.addf %360, %365 : vector<128x32xf32>
    %c0_261 = arith.constant 0 : index
    %c54 = arith.constant 54 : index
    %c0_262 = arith.constant 0 : index
    %367 = vector.load %arg13[%c0_261, %c54, %c0_262] : memref<2x118x32xf32, #tpu.memory_space<vmem>>, vector<2x64x32xf32>
    %368 = vector.shape_cast %367 : vector<2x64x32xf32> to vector<128x32xf32>
    %c1248 = arith.constant 1248 : index
    %c0_263 = arith.constant 0 : index
    %369 = vector.load %arg0[%c1248, %c0_263] : memref<1408x32xbf16, #tpu.memory_space<vmem>>, vector<32x32xbf16>
    %370 = arith.truncf %368 : vector<128x32xf32> to vector<128x32xbf16>
    %cst_264 = arith.constant dense<0.000000e+00> : vector<128x32xf32>
    %371 = tpu.matmul %370, %369, %cst_264 {dimension_numbers = #tpu.dot_dimension_numbers<[1], [0], [0], [1], [0, 0, 1, 1], [], []>} : vector<128x32xbf16>, vector<32x32xbf16>, vector<128x32xf32> -> vector<128x32xf32>
    %372 = arith.addf %366, %371 : vector<128x32xf32>
    %c15 = arith.constant 15 : index
    %c0_265 = arith.constant 0 : index
    %373 = vector.load %arg1[%c15, %c0_265] : memref<24x32xf32, #tpu.memory_space<vmem>>, vector<1x32xf32>
    %374 = vector.broadcast %373 : vector<1x32xf32> to vector<128x32xf32>
    %375 = arith.addf %372, %374 : vector<128x32xf32>
    %376 = arith.addf %375, %353 : vector<128x32xf32>
    %cst_266 = arith.constant 0.000000e+00 : f32
    %377 = vector.broadcast %cst_266 : f32 to vector<128x32xf32>
    %378 = arith.cmpf oge, %376, %377 : vector<128x32xf32>
    %cst_267 = arith.constant 2.000000e-01 : f32
    %379 = vector.broadcast %cst_267 : f32 to vector<128x32xf32>
    %380 = arith.mulf %379, %376 : vector<128x32xf32>
    %381 = arith.select %378, %376, %380 : vector<128x32xi1>, vector<128x32xf32>
    %c1280 = arith.constant 1280 : index
    %c0_268 = arith.constant 0 : index
    %382 = vector.load %arg0[%c1280, %c0_268] : memref<1408x32xbf16, #tpu.memory_space<vmem>>, vector<32x32xbf16>
    %383 = arith.truncf %381 : vector<128x32xf32> to vector<128x32xbf16>
    %cst_269 = arith.constant dense<0.000000e+00> : vector<128x32xf32>
    %384 = tpu.matmul %383, %382, %cst_269 {dimension_numbers = #tpu.dot_dimension_numbers<[1], [0], [0], [1], [0, 0, 1, 1], [], []>} : vector<128x32xbf16>, vector<32x32xbf16>, vector<128x32xf32> -> vector<128x32xf32>
    %c16 = arith.constant 16 : index
    %c0_270 = arith.constant 0 : index
    %385 = vector.load %arg1[%c16, %c0_270] : memref<24x32xf32, #tpu.memory_space<vmem>>, vector<1x32xf32>
    %386 = vector.broadcast %385 : vector<1x32xf32> to vector<128x32xf32>
    %387 = arith.addf %384, %386 : vector<128x32xf32>
    %388 = arith.addf %387, %381 : vector<128x32xf32>
    %cst_271 = arith.constant 0.000000e+00 : f32
    %389 = vector.broadcast %cst_271 : f32 to vector<128x32xf32>
    %390 = arith.cmpf oge, %388, %389 : vector<128x32xf32>
    %cst_272 = arith.constant 2.000000e-01 : f32
    %391 = vector.broadcast %cst_272 : f32 to vector<128x32xf32>
    %392 = arith.mulf %391, %388 : vector<128x32xf32>
    %393 = arith.select %390, %388, %392 : vector<128x32xi1>, vector<128x32xf32>
    %394 = vector.shape_cast %393 : vector<128x32xf32> to vector<2x64x32xf32>
    %c0_273 = arith.constant 0 : index
    %c27_274 = arith.constant 27 : index
    %c0_275 = arith.constant 0 : index
    %395 = vector.load %arg13[%c0_273, %c27_274, %c0_275] : memref<2x118x32xf32, #tpu.memory_space<vmem>>, vector<2x64x32xf32>
    tpu.vector_store %arg13[%c0_273, %c27_274, %c0_275], %394 {strides = array<i32>} : memref<2x118x32xf32, #tpu.memory_space<vmem>>, vector<2x64x32xf32>,
    %c0_276 = arith.constant 0 : index
    %c26_277 = arith.constant 26 : index
    %c0_278 = arith.constant 0 : index
    %396 = vector.load %arg13[%c0_276, %c26_277, %c0_278] : memref<2x118x32xf32, #tpu.memory_space<vmem>>, vector<2x64x32xf32>
    %397 = vector.shape_cast %396 : vector<2x64x32xf32> to vector<128x32xf32>
    %c1312 = arith.constant 1312 : index
    %c0_279 = arith.constant 0 : index
    %398 = vector.load %arg0[%c1312, %c0_279] : memref<1408x32xbf16, #tpu.memory_space<vmem>>, vector<32x32xbf16>
    %399 = arith.truncf %397 : vector<128x32xf32> to vector<128x32xbf16>
    %cst_280 = arith.constant dense<0.000000e+00> : vector<128x32xf32>
    %400 = tpu.matmul %399, %398, %cst_280 {dimension_numbers = #tpu.dot_dimension_numbers<[1], [0], [0], [1], [0, 0, 1, 1], [], []>} : vector<128x32xbf16>, vector<32x32xbf16>, vector<128x32xf32> -> vector<128x32xf32>
    %c0_281 = arith.constant 0 : index
    %c27_282 = arith.constant 27 : index
    %c0_283 = arith.constant 0 : index
    %401 = vector.load %arg13[%c0_281, %c27_282, %c0_283] : memref<2x118x32xf32, #tpu.memory_space<vmem>>, vector<2x64x32xf32>
    %402 = vector.shape_cast %401 : vector<2x64x32xf32> to vector<128x32xf32>
    %c1344 = arith.constant 1344 : index
    %c0_284 = arith.constant 0 : index
    %403 = vector.load %arg0[%c1344, %c0_284] : memref<1408x32xbf16, #tpu.memory_space<vmem>>, vector<32x32xbf16>
    %404 = arith.truncf %402 : vector<128x32xf32> to vector<128x32xbf16>
    %cst_285 = arith.constant dense<0.000000e+00> : vector<128x32xf32>
    %405 = tpu.matmul %404, %403, %cst_285 {dimension_numbers = #tpu.dot_dimension_numbers<[1], [0], [0], [1], [0, 0, 1, 1], [], []>} : vector<128x32xbf16>, vector<32x32xbf16>, vector<128x32xf32> -> vector<128x32xf32>
    %406 = arith.addf %400, %405 : vector<128x32xf32>
    %c0_286 = arith.constant 0 : index
    %c28_287 = arith.constant 28 : index
    %c0_288 = arith.constant 0 : index
    %407 = vector.load %arg13[%c0_286, %c28_287, %c0_288] : memref<2x118x32xf32, #tpu.memory_space<vmem>>, vector<2x64x32xf32>
    %408 = vector.shape_cast %407 : vector<2x64x32xf32> to vector<128x32xf32>
    %c1376 = arith.constant 1376 : index
    %c0_289 = arith.constant 0 : index
    %409 = vector.load %arg0[%c1376, %c0_289] : memref<1408x32xbf16, #tpu.memory_space<vmem>>, vector<32x32xbf16>
    %410 = arith.truncf %408 : vector<128x32xf32> to vector<128x32xbf16>
    %cst_290 = arith.constant dense<0.000000e+00> : vector<128x32xf32>
    %411 = tpu.matmul %410, %409, %cst_290 {dimension_numbers = #tpu.dot_dimension_numbers<[1], [0], [0], [1], [0, 0, 1, 1], [], []>} : vector<128x32xbf16>, vector<32x32xbf16>, vector<128x32xf32> -> vector<128x32xf32>
    %412 = arith.addf %406, %411 : vector<128x32xf32>
    %c17 = arith.constant 17 : index
    %c0_291 = arith.constant 0 : index
    %413 = vector.load %arg1[%c17, %c0_291] : memref<24x32xf32, #tpu.memory_space<vmem>>, vector<1x32xf32>
    %414 = vector.broadcast %413 : vector<1x32xf32> to vector<128x32xf32>
    %415 = arith.addf %412, %414 : vector<128x32xf32>
    %416 = arith.addf %415, %393 : vector<128x32xf32>
    %cst_292 = arith.constant 0.000000e+00 : f32
    %417 = vector.broadcast %cst_292 : f32 to vector<128x32xf32>
    %418 = arith.cmpf oge, %416, %417 : vector<128x32xf32>
    %cst_293 = arith.constant 2.000000e-01 : f32
    %419 = vector.broadcast %cst_293 : f32 to vector<128x32xf32>
    %420 = arith.mulf %419, %416 : vector<128x32xf32>
    %421 = arith.select %418, %416, %420 : vector<128x32xi1>, vector<128x32xf32>
    %c0_294 = arith.constant 0 : index
    %c0_295 = arith.constant 0 : index
    %422 = vector.load %arg9[%c0_294, %c0_295] : memref<1x32xbf16, #tpu.memory_space<vmem>>, vector<1x32xbf16>
    %423 = arith.truncf %421 : vector<128x32xf32> to vector<128x32xbf16>
    %cst_296 = arith.constant dense<0.000000e+00> : vector<1x128xf32>
    %424 = tpu.matmul %422, %423, %cst_296 {dimension_numbers = #tpu.dot_dimension_numbers<[1], [1], [0], [0], [0, 0, 1, 0], [], []>} : vector<1x32xbf16>, vector<128x32xbf16>, vector<1x128xf32> -> vector<1x128xf32>
    %c0_297 = arith.constant 0 : index
    %c0_298 = arith.constant 0 : index
    %425 = vector.load %arg10[%c0_297, %c0_298] : memref<1x1xf32, #tpu.memory_space<vmem>>, vector<1x1xf32>
    %426 = vector.broadcast %425 : vector<1x1xf32> to vector<1x128xf32>
    %427 = arith.addf %424, %426 : vector<1x128xf32>
    %c0_299 = arith.constant 0 : index
    %c0_300 = arith.constant 0 : index
    %428 = vector.load %arg11[%c0_299, %c0_300] : memref<1x128xf32, #tpu.memory_space<vmem>>, vector<1x128xf32>
    tpu.vector_store %arg11[%c0_299, %c0_300], %427 {strides = array<i32>} : memref<1x128xf32, #tpu.memory_space<vmem>>, vector<1x128xf32>,
    return
  }
}

</mosaic_0001>

<bundles_post_ra>
// kernel: forward.1
= control target key start
LH: loop header
LB: loop body
LE: loop exit
PB: predicated region body
PF: predicated region fallthrough
CT: control target
= control target key end

     0   :  { %vm104_vm0 = vcmask 392192   ;;  %vm41_vm2 = vcmask 261120   ;;  %vm206_vm3 = vcmask 1043456   ;;  %vm202_vm5 = vcmask 64512   ;;  %s6027_s0 = inlined_call_operand.vmem [shape: bf16[1408,32], index: 0, kind: input, shape index: {}]   ;;  %s6028_s1 = inlined_call_operand.vmem [shape: f32[24,32], index: 1, kind: input, shape index: {}]   ;;  %s6029_s2 = inlined_call_operand.vmem [shape: f32[1,48], index: 2, kind: input, shape index: {}]   ;;  %s6030_s6 = inlined_call_operand.vmem [shape: bf16[8,16], index: 6, kind: input, shape index: {}]   ;;  %s6031_s4 = inlined_call_operand.vmem [shape: f32[16,8], index: 4, kind: input, shape index: {}]   ;;  %s6032_s7 = inlined_call_operand.vmem [shape: f32[1,16], index: 7, kind: input, shape index: {}]   ;;  %s6033_s3 = inlined_call_operand.vmem [shape: f32[16,32], index: 3, kind: input, shape index: {}]   ;;  %s6034_s5 = inlined_call_operand.vmem [shape: f32[128,32], index: 5, kind: input, shape index: {}]   ;;  %s6035_s8 = inlined_call_operand.vmem [shape: bf16[128,16], index: 8, kind: input, shape index: {}]   ;;  %s6036_s10 = inlined_call_operand.<no memory space> [shape: f32[1,1], index: 10, kind: input, shape index: {}]   ;;  %s6037_s9 = inlined_call_operand.vmem [shape: bf16[1,32], index: 9, kind: input, shape index: {}]   ;;  %s6038_s11 = inlined_call_operand.vmem [shape: f32[1,128], index: 11, kind: output, shape index: {}]  }
   0x1   :  { %v4564_v0 = vld [vmem:[%s6027_s0 + $0x10] sm:$0xff]  ;;  %v4563_v1 = vld [vmem:[%s6027_s0 + $0x8] sm:$0xff]  ;;  %v4562_v2 = vld [vmem:[%s6027_s0] sm:$0xff]  ;;  %vm43_vm6 = vcmask 259072   ;;  %v4681_v28 = vmov 0.0   ;;  %vm230_vm8 = vcmask 130048  }
   0x2   :  { %113 = vmatpush.bf16.msra.mxu0 %v4564_v0  ;;  %v77_v3 = vld [vmem:[%s6029_s2] sm:$0x1]  ;;  %v4565_v6 = vld [vmem:[%s6027_s0 + $0x18] sm:$0xff]  ;;  %v4568_v14 = vld [vmem:[%s6027_s0 + $0x30] sm:$0xff]  ;;  %42 = vst.msk [vmem:[#allocation2] sm:$0xff] %vm41_vm2, %v4681_v28 }
   0x3   :  { %v84_v4 = vpack.c.bf16 %v77_v3, %v77_v3  ;;  %v4566_v5 = vld [vmem:[%s6027_s0 + $0x20] sm:$0xff]  ;;  %187 = vmatpush.bf16.msra.mxu2 %v4568_v14  ;;  %v4567_v15 = vld [vmem:[%s6027_s0 + $0x28] sm:$0xff]  ;;  %44 = vst.msk [vmem:[#allocation2 + $0x8] sm:$0x3f] %vm43_vm6, %v4681_v28  ;;  %v4569_v30 = vld [vmem:[%s6027_s0 + $0x38] sm:$0xff] }
   0x4   :  { %151 = vmatpush.bf16.msra.mxu1 %v4566_v5  ;;  %v85_v7 = vld [vmem:[%s6028_s1] sm:$0x1]  ;;  %v129_v18 = vld [vmem:[%s6028_s1 + $0x1] sm:$0x1]  ;;  %v195_v26 = vld [vmem:[%s6031_s4 + $0x8] sm:$0xff]  ;;  %45 = vst.msk [vmem:[#allocation2 + $0x10] sm:$0xff] %vm41_vm2, %v4681_v28 }
   0x5   :  { %v196_v16 = vld [vmem:[%s6030_s6] sm:$0xf]  ;;  %61 = vst.msk [vmem:[#allocation3 + $0x70] sm:$0x3f] %vm43_vm6, %v4681_v28  ;;  %v4571_v31 = vld [vmem:[%s6027_s0 + $0x48] sm:$0xff]  ;;  %v4572_v32 = vld [vmem:[%s6027_s0 + $0x50] sm:$0xff] }
   0x6   :  { %114 = vmatpush.bf16.msra.mxu0 %v4563_v1  ;;  %v208_v17 = vsel %vm206_vm3, %v196_v16, 0  ;;  %v194_v25 = vld [vmem:[%s6031_s4] sm:$0xff]  ;;  %76 = vst.msk [vmem:[#allocation3 + $0xe8] sm:$0x3f] %vm43_vm6, %v4681_v28  ;;  %v4573_v35 = vld [vmem:[%s6027_s0 + $0x58] sm:$0xff]  ;;  %v4575_v37 = vld [vmem:[%s6027_s0 + $0x68] sm:$0xff] }
   0x7   :  { %188 = vmatpush.bf16.msra.mxu2 %v4567_v15  ;;  %v197_v27 = vpack.c.bf16 %v195_v26, %v194_v25  ;;  %46 = vst.msk [vmem:[#allocation2 + $0x18] sm:$0x3f] %vm43_vm6, %v4681_v28  ;;  %v4570_v29 = vld [vmem:[%s6027_s0 + $0x40] sm:$0xff]  ;;  %v4580_v15 = vld [vmem:[%s6027_s0 + $0x90] sm:$0xff]  ;;  %v4589_v25 = vld [vmem:[%s6027_s0 + $0xd8] sm:$0xff] }
   0x8   :  { %152 = vmatpush.bf16.msra.mxu1 %v4565_v6  ;;  %47 = vst.msk [vmem:[#allocation3] sm:$0xff] %vm41_vm2, %v4681_v28  ;;  %259 = vmatpush.bf16.msra.mxu3 %v4570_v29  ;;  %v4574_v36 = vld [vmem:[%s6027_s0 + $0x60] sm:$0xff] }
   0x9   :  { %48 = vst.msk [vmem:[#allocation3 + $0x8] sm:$0xff] %vm41_vm2, %v4681_v28  ;;  %v4664_v38 = vld [vmem:[%s6032_s7] ss:$0 sm:$0xff] }
   0xa   :  { %115 = vmatpush.bf16.msra.mxu0 %v4562_v2  ;;  %49 = vst.msk [vmem:[#allocation3 + $0x10] sm:$0xff] %vm41_vm2, %v4681_v28  ;;  %v4582_v16 = vld [vmem:[%s6027_s0 + $0xa0] sm:$0xff] }
   0xb   :  { %217 = vmatpush.bf16.msrb.mxu2 %v208_v17  ;;  %50 = vst.msk [vmem:[#allocation3 + $0x18] sm:$0xff] %vm41_vm2, %v4681_v28 }
   0xc   :  { %51 = vst.msk [vmem:[#allocation3 + $0x20] sm:$0xff] %vm41_vm2, %v4681_v28  ;;  %282 = vmatpush.bf16.msrb.mxu1 %v4569_v30  ;;  %370 = vmatpush.bf16.msrb.mxu3 %v4573_v35  ;;  %v4584_v30 = vld [vmem:[%s6027_s0 + $0xb0] sm:$0xff]  ;;  %v4590_v35 = vld [vmem:[%s6027_s0 + $0xe0] sm:$0xff] }
   0xd   :  { %4014 = vmatmul.msk.bf16.vlgmr.msra.gmra.mxu0 %vm104_vm0, %v84_v4  ;;  %52 = vst.msk [vmem:[#allocation3 + $0x28] sm:$0xff] %vm41_vm2, %v4681_v28 }
   0xe   :  { %53 = vst.msk [vmem:[#allocation3 + $0x30] sm:$0xff] %vm41_vm2, %v4681_v28  ;;  %340 = vmatpush.bf16.msrb.mxu0 %v4572_v32 }
   0xf   :  { %54 = vst.msk [vmem:[#allocation3 + $0x38] sm:$0xff] %vm41_vm2, %v4681_v28 }
  0x10   :  { %55 = vst.msk [vmem:[#allocation3 + $0x40] sm:$0xff] %vm41_vm2, %v4681_v28 }
  0x11   :  { %56 = vst.msk [vmem:[#allocation3 + $0x48] sm:$0xff] %vm41_vm2, %v4681_v28 }
  0x12   :  { %57 = vst.msk [vmem:[#allocation3 + $0x50] sm:$0xff] %vm41_vm2, %v4681_v28 }
  0x13   :  { %58 = vst.msk [vmem:[#allocation3 + $0x58] sm:$0xff] %vm41_vm2, %v4681_v28 }
  0x14   :  { %59 = vst.msk [vmem:[#allocation3 + $0x60] sm:$0xff] %vm41_vm2, %v4681_v28 }
  0x15   :  { %60 = vst.msk [vmem:[#allocation3 + $0x68] sm:$0xff] %vm41_vm2, %v4681_v28 }
  0x16   :  { %62 = vst.msk [vmem:[#allocation3 + $0x78] sm:$0xff] %vm41_vm2, %v4681_v28 }
  0x17   :  { %63 = vst.msk [vmem:[#allocation3 + $0x80] sm:$0xff] %vm41_vm2, %v4681_v28 }
  0x18   :  { %64 = vst.msk [vmem:[#allocation3 + $0x88] sm:$0xff] %vm41_vm2, %v4681_v28 }
  0x19   :  { %65 = vst.msk [vmem:[#allocation3 + $0x90] sm:$0xff] %vm41_vm2, %v4681_v28 }
  0x1a   :  { %66 = vst.msk [vmem:[#allocation3 + $0x98] sm:$0xff] %vm41_vm2, %v4681_v28 }
  0x1b   :  { %67 = vst.msk [vmem:[#allocation3 + $0xa0] sm:$0xff] %vm41_vm2, %v4681_v28 }
  0x1c   :  { %68 = vst.msk [vmem:[#allocation3 + $0xa8] sm:$0xff] %vm41_vm2, %v4681_v28 }
  0x1d   :  { %69 = vst.msk [vmem:[#allocation3 + $0xb0] sm:$0xff] %vm41_vm2, %v4681_v28 }
  0x1e   :  { %70 = vst.msk [vmem:[#allocation3 + $0xb8] sm:$0xff] %vm41_vm2, %v4681_v28 }
  0x1f   :  { %71 = vst.msk [vmem:[#allocation3 + $0xc0] sm:$0xff] %vm41_vm2, %v4681_v28 }
  0x20   :  { %72 = vst.msk [vmem:[#allocation3 + $0xc8] sm:$0xff] %vm41_vm2, %v4681_v28 }
  0x21   :  { %73 = vst.msk [vmem:[#allocation3 + $0xd0] sm:$0xff] %vm41_vm2, %v4681_v28 }
  0x22   :  { %74 = vst.msk [vmem:[#allocation3 + $0xd8] sm:$0xff] %vm41_vm2, %v4681_v28 }
  0x23   :  { %75 = vst.msk [vmem:[#allocation3 + $0xe0] sm:$0xff] %vm41_vm2, %v4681_v28  ;;  %v4591_v28 = vld [vmem:[%s6027_s0 + $0xe8] sm:$0xff] }
  0x8a   :  { %v117_v8 = vpop.f32.mrf.mxu0 }
  0x8b   :  { %v118_v9 = vadd.f32 %v117_v8, %v85_v7  ;;  %v4579_v7 = vld [vmem:[%s6027_s0 + $0x88] sm:$0xff]  ;;  %v4577_v8 = vld [vmem:[%s6027_s0 + $0x78] sm:$0xff] }
  0x8c   :  { %486 = vmatpush.bf16.msra.mxu0 %v4579_v7 }
  0x8d   :  { %vm121_vm1 = vcmp.ge.f32.partialorder %v118_v9, 0.0  ;;  %v122_v10 = vmul.f32 0.2, %v118_v9 }
  0x8f   :  { %v123_v11 = vsel %vm121_vm1, %v118_v9, %v122_v10  ;;  %v4581_v9 = vld [vmem:[%s6027_s0 + $0x98] sm:$0xff]  ;;  %v4583_v10 = vld [vmem:[%s6027_s0 + $0xa8] sm:$0xff] }
  0x90   :  { %v128_v12 = vpack.c.bf16 %v123_v11, %v123_v11 }
  0x92   :  { %v119_v13 = vpop.f32.mrf.mxu0  ;;  %4023 = vmatmul.msk.bf16.vlgmr.msra.gmra.mxu1 %vm41_vm2, %v128_v12  ;;  %v4578_v12 = vld [vmem:[%s6027_s0 + $0x80] sm:$0xff] }
  0x93   :  { %400 = vmatpush.bf16.msra.mxu1 %v4574_v36  ;;  %v4576_v13 = vld [vmem:[%s6027_s0 + $0x70] sm:$0xff]  ;;  %487 = vmatpush.bf16.msra.mxu0 %v4578_v12 }
 0x10f   :  { %v154_v19 = vpop.f32.mrf.mxu1 }
 0x110   :  { %v155_v20 = vadd.f32 %v154_v19, %v129_v18 }
 0x112   :  { %vm158_vm4 = vcmp.ge.f32.partialorder %v155_v20, 0.0  ;;  %v159_v21 = vmul.f32 0.2, %v155_v20 }
 0x114   :  { %v160_v22 = vsel %vm158_vm4, %v155_v20, %v159_v21 }
 0x115   :  { %v165_v23 = vpack.c.bf16 %v160_v22, %v160_v22 }
 0x117   :  { %v156_v24 = vpop.f32.mrf.mxu1  ;;  %4032 = vmatmul.msk.bf16.vlgmr.msra.gmra.mxu2 %vm41_vm2, %v165_v23  ;;  %v4585_v23 = vld [vmem:[%s6027_s0 + $0xb8] sm:$0xff] }
 0x118   :  { %310 = vmatpush.bf16.msra.mxu2 %v4571_v31  ;;  %v4587_v24 = vld [vmem:[%s6027_s0 + $0xc8] sm:$0xff]  ;;  %v4586_v31 = vld [vmem:[%s6027_s0 + $0xc0] sm:$0xff] }
 0x127   :  { %4033 = vmatmul.msk.bf16.vlgmr.msrb.gmra.mxu2 %vm202_vm5, %v197_v27 }
 0x128   :  { %430 = vmatpush.bf16.msrb.mxu2 %v4575_v37 }
 0x19a   :  { %v4815_v33 = vpop.f32.mrf.mxu2 }
 0x1a2   :  { %v192_v34 = vpop.f32.mrf.mxu2 }
 0x1a3   :  { %v4588_v34 = vld [vmem:[%s6027_s0 + $0xd0] sm:$0xff] }
 0x1aa   :  { %v219_v39 = vpop.f32.mrf.mxu2 }
 0x1ab   :  { %v220_v40 = vadd.f32 %v4664_v38, %v219_v39 }
 0x1ad   :  { %vm224_vm7 = vcmp.ge.f32.partialorder %v220_v40, 0.0  ;;  %v226_v41 = vmul.f32 0.2, %v220_v40 }
 0x1af   :  { %v228_v42 = vsel %vm224_vm7, %v220_v40, %v226_v41 }
 0x1b0   :  { %231 = vst.msk [vmem:[#allocation2 + $0x3] sm:$0xff] %vm230_vm8, %v228_v42 }
 0x1b2   :  { %v221_v43 = vpop.f32.mrf.mxu2 }
 0x1b3   :  { %v222_v44 = vadd.f32 %v4664_v38, %v221_v43  ;;  %v4665_v38 = vld [vmem:[%s6028_s1 + $0x2] ss:$0 sm:$0xff] }
 0x1b5   :  { %vm225_vm9 = vcmp.ge.f32.partialorder %v222_v44, 0.0  ;;  %v227_v45 = vmul.f32 0.2, %v222_v44 }
 0x1b7   :  { %v229_v46 = vsel %vm225_vm9, %v222_v44, %v227_v45  ;;  %v238_v47 = vld [vmem:[#allocation2 + $0x1] sm:$0xff] }
 0x1b8   :  { %232 = vst.msk [vmem:[#allocation2 + $0x13] sm:$0xff] %vm230_vm8, %v229_v46  ;;  %v233_v48 = vld [vmem:[#allocation2] sm:$0xff] }
 0x1b9   :  { %v289_v49 = vld [vmem:[#allocation2 + $0x2] sm:$0xff] }
 0x1ba   :  { %v319_v56 = vld [vmem:[#allocation2 + $0x3] sm:$0xff] }
 0x1bb   :  { %v349_v62 = vld [vmem:[#allocation2 + $0x4] sm:$0xff] }
 0x1bc   :  { %v379_v63 = vld [vmem:[#allocation2 + $0x5] sm:$0xff] }
 0x1bd   :  { %v409_v2 = vld [vmem:[#allocation2 + $0x6] sm:$0xff] }
 0x1bf   :  { %v239_v50 = vld [vmem:[#allocation2 + $0x11] sm:$0xff] }
 0x1c0   :  { %v234_v51 = vld [vmem:[#allocation2 + $0x10] sm:$0xff]  ;;  %v242_v53 = vpack.c.bf16 %v239_v50, %v238_v47 }
 0x1c1   :  { %v290_v52 = vld [vmem:[#allocation2 + $0x12] sm:$0xff]  ;;  %v237_v54 = vpack.c.bf16 %v234_v51, %v233_v48 }
 0x1c2   :  { %v293_v55 = vpack.c.bf16 %v290_v52, %v289_v49  ;;  %v320_v57 = vld [vmem:[#allocation2 + $0x13] sm:$0xff]  ;;  %4038 = vmatmul.msk.bf16.vlgmr.msra.gmra.mxu3 %vm230_vm8, %v242_v53 }
 0x1c3   :  { %v323_v58 = vpack.c.bf16 %v320_v57, %v319_v56  ;;  %4043 = vmatmul.msk.bf16.vlgmr.msrb.gmra.mxu1 %vm230_vm8, %v237_v54  ;;  %v350_v59 = vld [vmem:[#allocation2 + $0x14] sm:$0xff]  ;;  %515 = vmatpush.bf16.msra.mxu3 %v4577_v8 }
 0x1c4   :  { %4048 = vmatmul.msk.bf16.vlgmr.msra.gmra.mxu2 %vm230_vm8, %v293_v55  ;;  %v380_v60 = vld [vmem:[#allocation2 + $0x15] sm:$0xff]  ;;  %v353_v0 = vpack.c.bf16 %v350_v59, %v349_v62  ;;  %551 = vmatpush.bf16.msrb.mxu1 %v4581_v9 }
 0x1c5   :  { %4053 = vmatmul.msk.bf16.vlgmr.msrb.gmra.mxu0 %vm230_vm8, %v323_v58  ;;  %v410_v61 = vld [vmem:[#allocation2 + $0x16] sm:$0xff]  ;;  %v383_v1 = vpack.c.bf16 %v380_v60, %v379_v63  ;;  %589 = vmatpush.bf16.msra.mxu2 %v4583_v10 }
 0x1c6   :  { %v413_v3 = vpack.c.bf16 %v410_v61, %v409_v2  ;;  %627 = vmatpush.bf16.msrb.mxu0 %v4585_v23  ;;  %v713_v2 = vld [vmem:[%s6033_s3] sm:$0xff] }
 0x1c7   :  { %516 = vmatpush.bf16.msra.mxu3 %v4576_v13 }
 0x1c8   :  { %552 = vmatpush.bf16.msrb.mxu1 %v4580_v15 }
 0x1c9   :  { %590 = vmatpush.bf16.msra.mxu2 %v4582_v16  ;;  %v4593_v16 = vld [vmem:[%s6027_s0 + $0xf8] sm:$0xff] }
 0x1ca   :  { %628 = vmatpush.bf16.msrb.mxu0 %v4584_v30 }
 0x1d2   :  { %4058 = vmatmul.msk.bf16.vlgmr.msrb.gmra.mxu3 %vm230_vm8, %v353_v0 }
 0x1d3   :  { %4063 = vmatmul.msk.bf16.vlgmr.msra.gmra.mxu1 %vm230_vm8, %v383_v1  ;;  %665 = vmatpush.bf16.msrb.mxu3 %v4587_v24 }
 0x1d4   :  { %4068 = vmatmul.msk.bf16.vlgmr.msrb.gmra.mxu2 %vm230_vm8, %v413_v3  ;;  %703 = vmatpush.bf16.msra.mxu1 %v4589_v25  ;;  %v714_v3 = vld [vmem:[%s6033_s3 + $0x8] sm:$0xff] }
 0x1d5   :  { %741 = vmatpush.bf16.msrb.mxu2 %v4591_v28  ;;  %v719_v9 = vpack.c.bf16 %v714_v3, %v713_v2  ;;  %v4597_v3 = vld [vmem:[%s6027_s0 + $0x118] sm:$0xff] }
 0x1d7   :  { %666 = vmatpush.bf16.msrb.mxu3 %v4586_v31 }
 0x1d8   :  { %704 = vmatpush.bf16.msra.mxu1 %v4588_v34 }
 0x1d9   :  { %742 = vmatpush.bf16.msrb.mxu2 %v4590_v35 }
 0x240   :  { %v284_v4 = vpop.f32.mrf.mxu1 }
 0x242   :  { %v342_v20 = vpop.f32.mrf.mxu0 }
 0x245   :  { %v261_v5 = vpop.f32.mrf.mxu3 }
 0x246   :  { %v285_v14 = vadd.f32 %v284_v4, %v261_v5 }
 0x247   :  { %v312_v6 = vpop.f32.mrf.mxu2 }
 0x248   :  { %v286_v11 = vpop.f32.mrf.mxu1  ;;  %v317_v19 = vadd.f32 %v312_v6, %v285_v14 }
 0x24a   :  { %v347_v22 = vadd.f32 %v342_v20, %v317_v19  ;;  %v344_v40 = vpop.f32.mrf.mxu0  ;;  %v4592_v20 = vld [vmem:[%s6027_s0 + $0xf0] sm:$0xff] }
 0x24d   :  { %v263_v17 = vpop.f32.mrf.mxu3 }
 0x24e   :  { %v287_v21 = vadd.f32 %v286_v11, %v263_v17 }
 0x24f   :  { %v314_v18 = vpop.f32.mrf.mxu2 }
 0x250   :  { %v402_v26 = vpop.f32.mrf.mxu1  ;;  %v318_v36 = vadd.f32 %v314_v18, %v287_v21 }
 0x252   :  { %v348_v42 = vadd.f32 %v344_v40, %v318_v36  ;;  %v4666_v40 = vld [vmem:[%s6028_s1 + $0x3] ss:$0 sm:$0xff] }
 0x255   :  { %v372_v27 = vpop.f32.mrf.mxu3 }
 0x256   :  { %v377_v29 = vadd.f32 %v372_v27, %v347_v22 }
 0x257   :  { %v432_v32 = vpop.f32.mrf.mxu2 }
 0x258   :  { %v407_v37 = vadd.f32 %v402_v26, %v377_v29  ;;  %v404_v46 = vpop.f32.mrf.mxu1 }
 0x25a   :  { %v437_v39 = vadd.f32 %v432_v32, %v407_v37 }
 0x25c   :  { %v441_v41 = vadd.f32 %v4665_v38, %v437_v39 }
 0x25d   :  { %v374_v43 = vpop.f32.mrf.mxu3 }
 0x25e   :  { %vm443_vm10 = vcmp.ge.f32.partialorder %v441_v41, 0.0  ;;  %v445_v44 = vmul.f32 0.2, %v441_v41  ;;  %v378_v45 = vadd.f32 %v374_v43, %v348_v42 }
 0x25f   :  { %v434_v49 = vpop.f32.mrf.mxu2 }
 0x260   :  { %v447_v47 = vsel %vm443_vm10, %v441_v41, %v445_v44  ;;  %v408_v48 = vadd.f32 %v404_v46, %v378_v45 }
 0x261   :  { %449 = vst.msk [vmem:[#allocation2 + $0x3] sm:$0xff] %vm41_vm2, %v447_v47 }
 0x262   :  { %v438_v50 = vadd.f32 %v434_v49, %v408_v48 }
 0x264   :  { %v442_v51 = vadd.f32 %v4665_v38, %v438_v50 }
 0x266   :  { %vm444_vm11 = vcmp.ge.f32.partialorder %v442_v51, 0.0  ;;  %v446_v52 = vmul.f32 0.2, %v442_v51 }
 0x268   :  { %v448_v53 = vsel %vm444_vm11, %v442_v51, %v446_v52  ;;  %v458_v54 = vld [vmem:[#allocation2 + $0x1] sm:$0xff] }
 0x269   :  { %450 = vst.msk [vmem:[#allocation2 + $0x13] sm:$0xff] %vm41_vm2, %v448_v53  ;;  %v451_v55 = vld [vmem:[#allocation2] sm:$0xff] }
 0x26a   :  { %v523_v56 = vld [vmem:[#allocation2 + $0x2] sm:$0xff] }
 0x26b   :  { %v561_v63 = vld [vmem:[#allocation2 + $0x3] sm:$0xff] }
 0x26c   :  { %v599_v7 = vld [vmem:[#allocation2 + $0x4] sm:$0xff] }
 0x26d   :  { %v637_v8 = vld [vmem:[#allocation2 + $0x5] sm:$0xff] }
 0x26e   :  { %v675_v12 = vld [vmem:[#allocation2 + $0x6] sm:$0xff] }
 0x270   :  { %v459_v57 = vld [vmem:[#allocation2 + $0x11] sm:$0xff] }
 0x271   :  { %v452_v58 = vld [vmem:[#allocation2 + $0x10] sm:$0xff]  ;;  %v464_v60 = vpack.c.bf16 %v459_v57, %v458_v54 }
 0x272   :  { %v524_v59 = vld [vmem:[#allocation2 + $0x12] sm:$0xff]  ;;  %v457_v61 = vpack.c.bf16 %v452_v58, %v451_v55  ;;  %v4595_v55 = vld [vmem:[%s6027_s0 + $0x108] sm:$0xff]  ;;  %v4667_v58 = vld [vmem:[%s6028_s1 + $0x4] ss:$0 sm:$0xff] }
 0x273   :  { %v529_v62 = vpack.c.bf16 %v524_v59, %v523_v56  ;;  %v562_v0 = vld [vmem:[#allocation2 + $0x13] sm:$0xff]  ;;  %4077 = vmatmul.msk.bf16.vlgmr.msra.gmra.mxu0 %vm41_vm2, %v464_v60  ;;  %v4594_v56 = vld [vmem:[%s6027_s0 + $0x100] sm:$0xff] }
 0x274   :  { %v567_v1 = vpack.c.bf16 %v562_v0, %v561_v63  ;;  %4086 = vmatmul.msk.bf16.vlgmr.msra.gmra.mxu3 %vm41_vm2, %v457_v61  ;;  %v600_v4 = vld [vmem:[#allocation2 + $0x14] sm:$0xff]  ;;  %787 = vmatpush.bf16.msra.mxu0 %v4593_v16 }
 0x275   :  { %4095 = vmatmul.msk.bf16.vlgmr.msrb.gmra.mxu1 %vm41_vm2, %v529_v62  ;;  %v638_v5 = vld [vmem:[#allocation2 + $0x15] sm:$0xff]  ;;  %v605_v10 = vpack.c.bf16 %v600_v4, %v599_v7  ;;  %827 = vmatpush.bf16.msra.mxu3 %v4595_v55  ;;  %v4610_v55 = vld [vmem:[%s6027_s0 + $0x180] sm:$0xff] }
 0x276   :  { %4104 = vmatmul.msk.bf16.vlgmr.msra.gmra.mxu2 %vm41_vm2, %v567_v1  ;;  %v676_v6 = vld [vmem:[#allocation2 + $0x16] sm:$0xff]  ;;  %v643_v11 = vpack.c.bf16 %v638_v5, %v637_v8  ;;  %876 = vmatpush.bf16.msrb.mxu1 %v4597_v3  ;;  %v4668_v8 = vld [vmem:[%s6028_s1 + $0x5] ss:$0 sm:$0xff] }
 0x277   :  { %v681_v13 = vpack.c.bf16 %v676_v6, %v675_v12  ;;  %v4596_v4 = vld [vmem:[%s6027_s0 + $0x110] sm:$0xff]  ;;  %v835_v6 = vperm.slane %v4815_v33, 0  ;;  %v4599_v33 = vld [vmem:[%s6027_s0 + $0x128] sm:$0xff] }
 0x278   :  { %788 = vmatpush.bf16.msra.mxu0 %v4592_v20  ;;  %918 = vmatpush.bf16.msra.mxu2 %v4599_v33  ;;  %v4669_v20 = vld [vmem:[%s6028_s1 + $0x6] ss:$0 sm:$0xff] }
 0x279   :  { %828 = vmatpush.bf16.msra.mxu3 %v4594_v56 }
 0x27a   :  { %877 = vmatpush.bf16.msrb.mxu1 %v4596_v4 }
 0x283   :  { %4113 = vmatmul.msk.bf16.vlgmr.msrb.gmra.mxu0 %vm41_vm2, %v605_v10 }
 0x284   :  { %4122 = vmatmul.msk.bf16.vlgmr.msrb.gmra.mxu3 %vm41_vm2, %v643_v11 }
 0x285   :  { %4131 = vmatmul.msk.bf16.vlgmr.msra.gmra.mxu1 %vm41_vm2, %v681_v13 }
 0x286   :  { %4140 = vmatmul.msk.bf16.vlgmr.msrb.gmra.mxu2 %vm41_vm2, %v719_v9 }
 0x2f0   :  { %v489_v14 = vpop.f32.mrf.mxu0 }
 0x2f2   :  { %v554_v15 = vpop.f32.mrf.mxu1 }
 0x2f7   :  { %v518_v17 = vpop.f32.mrf.mxu3 }
 0x2f8   :  { %v491_v19 = vpop.f32.mrf.mxu0  ;;  %v519_v21 = vadd.f32 %v518_v17, %v489_v14 }
 0x2f9   :  { %v592_v18 = vpop.f32.mrf.mxu2 }
 0x2fa   :  { %v556_v22 = vpop.f32.mrf.mxu1  ;;  %v559_v24 = vadd.f32 %v554_v15, %v519_v21 }
 0x2fc   :  { %v597_v27 = vadd.f32 %v592_v18, %v559_v24  ;;  %v4598_v18 = vld [vmem:[%s6027_s0 + $0x120] sm:$0xff] }
 0x2fd   :  { %919 = vmatpush.bf16.msra.mxu2 %v4598_v18 }
 0x2ff   :  { %v520_v23 = vpop.f32.mrf.mxu3 }
 0x300   :  { %v630_v26 = vpop.f32.mrf.mxu0  ;;  %v521_v28 = vadd.f32 %v520_v23, %v491_v19 }
 0x301   :  { %v594_v25 = vpop.f32.mrf.mxu2  ;;  %v635_v29 = vadd.f32 %v630_v26, %v597_v27 }
 0x302   :  { %v706_v30 = vpop.f32.mrf.mxu1  ;;  %v560_v32 = vadd.f32 %v556_v22, %v521_v28 }
 0x304   :  { %v598_v38 = vadd.f32 %v594_v25, %v560_v32  ;;  %v4602_v32 = vld [vmem:[%s6027_s0 + $0x140] sm:$0xff] }
 0x307   :  { %v668_v31 = vpop.f32.mrf.mxu3 }
 0x308   :  { %v673_v34 = vadd.f32 %v668_v31, %v635_v29  ;;  %v632_v37 = vpop.f32.mrf.mxu0  ;;  %v4603_v29 = vld [vmem:[%s6027_s0 + $0x148] sm:$0xff]  ;;  %v4605_v31 = vld [vmem:[%s6027_s0 + $0x158] sm:$0xff] }
 0x309   :  { %v744_v35 = vpop.f32.mrf.mxu2  ;;  %v636_v41 = vadd.f32 %v632_v37, %v598_v38  ;;  %963 = vmatpush.bf16.msrb.mxu0 %v4603_v29  ;;  %1028 = vmatpush.bf16.msra.mxu1 %v4605_v31 }
 0x30a   :  { %v711_v36 = vadd.f32 %v706_v30, %v673_v34  ;;  %v708_v44 = vpop.f32.mrf.mxu1  ;;  %v4601_v30 = vld [vmem:[%s6027_s0 + $0x138] sm:$0xff]  ;;  %v4600_v34 = vld [vmem:[%s6027_s0 + $0x130] sm:$0xff] }
 0x30b   :  { %992 = vmatpush.bf16.msrb.mxu3 %v4601_v30 }
 0x30c   :  { %v745_v39 = vadd.f32 %v744_v35, %v711_v36  ;;  %v4604_v35 = vld [vmem:[%s6027_s0 + $0x150] sm:$0xff]  ;;  %v4670_v36 = vld [vmem:[%s6028_s1 + $0x7] ss:$0 sm:$0xff] }
 0x30d   :  { %964 = vmatpush.bf16.msrb.mxu0 %v4602_v32  ;;  %1029 = vmatpush.bf16.msra.mxu1 %v4604_v35 }
 0x30e   :  { %v751_v45 = vadd.f32 %v4666_v40, %v745_v39 }
 0x30f   :  { %v670_v42 = vpop.f32.mrf.mxu3  ;;  %993 = vmatpush.bf16.msrb.mxu3 %v4600_v34 }
 0x310   :  { %v674_v43 = vadd.f32 %v670_v42, %v636_v41  ;;  %v755_v49 = vmul.f32 0.2, %v751_v45  ;;  %vm753_vm12 = vcmp.ge.f32.partialorder %v751_v45, 0.0 }
 0x311   :  { %v746_v47 = vpop.f32.mrf.mxu2 }
 0x312   :  { %v712_v46 = vadd.f32 %v708_v44, %v674_v43  ;;  %v757_v52 = vsel %vm753_vm12, %v751_v45, %v755_v49 }
 0x314   :  { %v747_v48 = vadd.f32 %v746_v47, %v712_v46 }
 0x316   :  { %v752_v50 = vadd.f32 %v4666_v40, %v747_v48 }
 0x318   :  { %vm754_vm13 = vcmp.ge.f32.partialorder %v752_v50, 0.0  ;;  %v756_v51 = vmul.f32 0.2, %v752_v50 }
 0x31a   :  { %v758_v53 = vsel %vm754_vm13, %v752_v50, %v756_v51  ;;  %v4609_v50 = vld [vmem:[%s6027_s0 + $0x178] sm:$0xff]  ;;  %v4607_v51 = vld [vmem:[%s6027_s0 + $0x168] sm:$0xff] }
 0x31b   :  { %v763_v54 = vpack.c.bf16 %v758_v53, %v757_v52  ;;  %v4611_v52 = vld [vmem:[%s6027_s0 + $0x188] sm:$0xff]  ;;  %1087 = vmatpush.bf16.msrb.mxu2 %v4609_v50  ;;  %v4608_v53 = vld [vmem:[%s6027_s0 + $0x170] sm:$0xff] }
 0x31d   :  { %4149 = vmatmul.msk.bf16.vlgmr.msra.gmra.mxu0 %vm41_vm2, %v763_v54  ;;  %v4606_v54 = vld [vmem:[%s6027_s0 + $0x160] sm:$0xff] }
 0x31e   :  { %1116 = vmatpush.bf16.msra.mxu0 %v4607_v51 }
 0x31f   :  { %1088 = vmatpush.bf16.msrb.mxu2 %v4608_v53 }
 0x322   :  { %1117 = vmatpush.bf16.msra.mxu0 %v4606_v54 }
 0x39a   :  { %v790_v57 = vpop.f32.mrf.mxu0 }
 0x39b   :  { %v791_v59 = vadd.f32 %v4667_v58, %v790_v57 }
 0x39d   :  { %v797_v61 = vmul.f32 0.2, %v791_v59  ;;  %vm795_vm14 = vcmp.ge.f32.partialorder %v791_v59, 0.0 }
 0x39f   :  { %v799_v0 = vsel %vm795_vm14, %v791_v59, %v797_v61 }
 0x3a2   :  { %v792_v60 = vpop.f32.mrf.mxu0 }
 0x3a3   :  { %v793_v62 = vadd.f32 %v4667_v58, %v792_v60  ;;  %v4671_v60 = vld [vmem:[%s6028_s1 + $0x8] ss:$0 sm:$0xff] }
 0x3a5   :  { %vm796_vm15 = vcmp.ge.f32.partialorder %v793_v62, 0.0  ;;  %v798_v63 = vmul.f32 0.2, %v793_v62 }
 0x3a7   :  { %v800_v1 = vsel %vm796_vm15, %v793_v62, %v798_v63 }
 0x3a8   :  { %v805_v2 = vpack.c.bf16 %v800_v1, %v799_v0 }
 0x3aa   :  { %4158 = vmatmul.msk.bf16.vlgmr.msra.gmra.mxu3 %vm41_vm2, %v805_v2 }
 0x3ab   :  { %1152 = vmatpush.bf16.msra.mxu3 %v4611_v52 }
 0x3af   :  { %1153 = vmatpush.bf16.msra.mxu3 %v4610_v55 }
 0x42d   :  { %v830_v5 = vpop.f32.mrf.mxu3 }
 0x42e   :  { %v836_v7 = vadd.f32 %v835_v6, %v830_v5 }
 0x430   :  { %v840_v9 = vadd.f32 %v4668_v8, %v836_v7 }
 0x432   :  { %v844_v12 = vmul.f32 0.2, %v840_v9  ;;  %vm842_vm0 = vcmp.ge.f32.partialorder %v840_v9, 0.0 }
 0x434   :  { %v846_v15 = vsel %vm842_vm0, %v840_v9, %v844_v12 }
 0x435   :  { %v832_v10 = vpop.f32.mrf.mxu3 }
 0x436   :  { %v837_v11 = vadd.f32 %v835_v6, %v832_v10 }
 0x438   :  { %v841_v13 = vadd.f32 %v4668_v8, %v837_v11 }
 0x43a   :  { %vm843_vm1 = vcmp.ge.f32.partialorder %v841_v13, 0.0  ;;  %v845_v14 = vmul.f32 0.2, %v841_v13 }
 0x43c   :  { %v847_v16 = vsel %vm843_vm1, %v841_v13, %v845_v14 }
 0x43d   :  { %v852_v17 = vpack.c.bf16 %v847_v16, %v846_v15 }
 0x43f   :  { %4167 = vmatmul.msk.bf16.vlgmr.msrb.gmra.mxu1 %vm41_vm2, %v852_v17 }
 0x4bc   :  { %v879_v19 = vpop.f32.mrf.mxu1 }
 0x4bd   :  { %v880_v21 = vadd.f32 %v4669_v20, %v879_v19  ;;  %v4613_v19 = vld [vmem:[%s6027_s0 + $0x198] sm:$0xff] }
 0x4be   :  { %1202 = vmatpush.bf16.msrb.mxu1 %v4613_v19 }
 0x4bf   :  { %v886_v23 = vmul.f32 0.2, %v880_v21  ;;  %vm884_vm3 = vcmp.ge.f32.partialorder %v880_v21, 0.0 }
 0x4c1   :  { %v888_v26 = vsel %vm884_vm3, %v880_v21, %v886_v23 }
 0x4c4   :  { %v881_v22 = vpop.f32.mrf.mxu1 }
 0x4c5   :  { %v882_v24 = vadd.f32 %v4669_v20, %v881_v22  ;;  %v4612_v20 = vld [vmem:[%s6027_s0 + $0x190] sm:$0xff] }
 0x4c6   :  { %1203 = vmatpush.bf16.msrb.mxu1 %v4612_v20 }
 0x4c7   :  { %vm885_vm4 = vcmp.ge.f32.partialorder %v882_v24, 0.0  ;;  %v887_v25 = vmul.f32 0.2, %v882_v24 }
 0x4c9   :  { %v889_v27 = vsel %vm885_vm4, %v882_v24, %v887_v25 }
 0x4ca   :  { %v894_v28 = vpack.c.bf16 %v889_v27, %v888_v26  ;;  %v4672_v26 = vld [vmem:[%s6028_s1 + $0x9] ss:$0 sm:$0xff] }
 0x4cc   :  { %4176 = vmatmul.msk.bf16.vlgmr.msra.gmra.mxu2 %vm41_vm2, %v894_v28 }
 0x54f   :  { %v921_v37 = vpop.f32.mrf.mxu2 }
 0x550   :  { %v922_v38 = vadd.f32 %v4670_v36, %v921_v37 }
 0x552   :  { %926 = vst.msk [vmem:[#allocation2 + $0x3] sm:$0xff] %vm41_vm2, %v922_v38 }
 0x557   :  { %v923_v39 = vpop.f32.mrf.mxu2 }
 0x558   :  { %v924_v40 = vadd.f32 %v4670_v36, %v923_v39 }
 0x559   :  { %v935_v41 = vld [vmem:[#allocation2 + $0x3] sm:$0xff] }
 0x55a   :  { %927 = vst.msk [vmem:[#allocation2 + $0x13] sm:$0xff] %vm41_vm2, %v924_v40  ;;  %v928_v42 = vld [vmem:[#allocation2 + $0x2] sm:$0xff] }
 0x55b   :  { %v1000_v43 = vld [vmem:[#allocation2 + $0x4] sm:$0xff] }
 0x561   :  { %v936_v44 = vld [vmem:[#allocation2 + $0x13] sm:$0xff] }
 0x562   :  { %v929_v45 = vld [vmem:[#allocation2 + $0x12] sm:$0xff]  ;;  %v941_v47 = vpack.c.bf16 %v936_v44, %v935_v41 }
 0x563   :  { %v1001_v46 = vld [vmem:[#allocation2 + $0x14] sm:$0xff]  ;;  %v934_v48 = vpack.c.bf16 %v929_v45, %v928_v42  ;;  %v4615_v42 = vld [vmem:[%s6027_s0 + $0x1a8] sm:$0xff] }
 0x564   :  { %v1006_v49 = vpack.c.bf16 %v1001_v46, %v1000_v43  ;;  %4185 = vmatmul.msk.bf16.vlgmr.msrb.gmra.mxu0 %vm41_vm2, %v941_v47  ;;  %1244 = vmatpush.bf16.msra.mxu2 %v4615_v42  ;;  %v4614_v43 = vld [vmem:[%s6027_s0 + $0x1a0] sm:$0xff]  ;;  %v4625_v44 = vld [vmem:[%s6027_s0 + $0x1b8] sm:$0xff]  ;;  %v4673_v45 = vld [vmem:[%s6028_s1 + $0xa] ss:$0 sm:$0xff] }
 0x565   :  { %4194 = vmatmul.msk.bf16.vlgmr.msrb.gmra.mxu3 %vm41_vm2, %v934_v48  ;;  %1339 = vmatpush.bf16.msrb.mxu0 %v4625_v44 }
 0x566   :  { %4203 = vmatmul.msk.bf16.vlgmr.msra.gmra.mxu1 %vm41_vm2, %v1006_v49 }
 0x567   :  { %4658 = vmatpush.bf16.msra.mxu1 %v4625_v44 }
 0x568   :  { %1245 = vmatpush.bf16.msra.mxu2 %v4614_v43 }
 0x5e1   :  { %v966_v56 = vpop.f32.mrf.mxu0 }
 0x5e3   :  { %v1031_v57 = vpop.f32.mrf.mxu1 }
 0x5e8   :  { %v995_v58 = vpop.f32.mrf.mxu3 }
 0x5e9   :  { %v996_v59 = vadd.f32 %v995_v58, %v966_v56  ;;  %v968_v0 = vpop.f32.mrf.mxu0  ;;  %v1269_v58 = vld [vmem:[%s6034_s5] sm:$0xff] }
 0x5eb   :  { %v1036_v61 = vadd.f32 %v1031_v57, %v996_v59  ;;  %v1033_v4 = vpop.f32.mrf.mxu1  ;;  %v4624_v57 = vld [vmem:[%s6027_s0 + $0x1b0] sm:$0xff]  ;;  %v1270_v59 = vld [vmem:[%s6034_s5 + $0x8] sm:$0xff] }
 0x5ec   :  { %1340 = vmatpush.bf16.msrb.mxu0 %v4624_v57  ;;  %4659 = vmatpush.bf16.msra.mxu1 %v4624_v57 }
 0x5ed   :  { %v1040_v62 = vadd.f32 %v4671_v60, %v1036_v61  ;;  %v1271_v61 = vld [vmem:[%s6034_s5 + $0x10] sm:$0xff] }
 0x5ef   :  { %v1042_v63 = vadd.f32 %v1040_v62, %v922_v38  ;;  %v1272_v62 = vld [vmem:[%s6034_s5 + $0x18] sm:$0xff] }
 0x5f0   :  { %v997_v1 = vpop.f32.mrf.mxu3 }
 0x5f1   :  { %vm1044_vm5 = vcmp.ge.f32.partialorder %v1042_v63, 0.0  ;;  %v1046_v2 = vmul.f32 0.2, %v1042_v63  ;;  %v998_v3 = vadd.f32 %v997_v1, %v968_v0  ;;  %v1273_v0 = vld [vmem:[%s6034_s5 + $0x20] sm:$0xff]  ;;  %v1274_v1 = vld [vmem:[%s6034_s5 + $0x28] sm:$0xff] }
 0x5f3   :  { %v1048_v5 = vsel %vm1044_vm5, %v1042_v63, %v1046_v2  ;;  %v1037_v6 = vadd.f32 %v1033_v4, %v998_v3  ;;  %v1290_v63 = vpack.c.bf16 %v1272_v62, %v1271_v61  ;;  %v1291_v3 = vpack.c.bf16 %v1274_v1, %v1273_v0 }
 0x5f4   :  { %1050 = vst.msk [vmem:[#allocation2 + $0x3] sm:$0xff] %vm41_vm2, %v1048_v5 }
 0x5f5   :  { %v1041_v7 = vadd.f32 %v4671_v60, %v1037_v6  ;;  %v1289_v60 = vpack.c.bf16 %v1270_v59, %v1269_v58  ;;  %v4616_v6 = vld [vmem:[%s6035_s8] sm:$0xff] }
 0x5f7   :  { %v1043_v8 = vadd.f32 %v1041_v7, %v924_v40  ;;  %v4619_v7 = vld [vmem:[%s6035_s8 + $0x18] sm:$0xff] }
 0x5f9   :  { %vm1045_vm6 = vcmp.ge.f32.partialorder %v1043_v8, 0.0  ;;  %v1047_v9 = vmul.f32 0.2, %v1043_v8 }
 0x5fb   :  { %v1049_v10 = vsel %vm1045_vm6, %v1043_v8, %v1047_v9  ;;  %v1059_v11 = vld [vmem:[#allocation2 + $0x3] sm:$0xff]  ;;  %v1275_v8 = vld [vmem:[%s6034_s5 + $0x30] sm:$0xff]  ;;  %v1276_v9 = vld [vmem:[%s6034_s5 + $0x38] sm:$0xff] }
 0x5fc   :  { %1051 = vst.msk [vmem:[#allocation2 + $0x13] sm:$0xff] %vm41_vm2, %v1049_v10  ;;  %v1052_v12 = vld [vmem:[#allocation2] sm:$0xff] }
 0x5fd   :  { %v1124_v13 = vld [vmem:[#allocation2 + $0x6] sm:$0xff] }
 0x603   :  { %v1060_v14 = vld [vmem:[#allocation2 + $0x13] sm:$0xff] }
 0x604   :  { %v1053_v15 = vld [vmem:[#allocation2 + $0x10] sm:$0xff]  ;;  %v1065_v17 = vpack.c.bf16 %v1060_v14, %v1059_v11  ;;  %v1280_v11 = vld [vmem:[%s6034_s5 + $0x58] sm:$0xff]  ;;  %v4617_v14 = vld [vmem:[%s6035_s8 + $0x8] sm:$0xff] }
 0x605   :  { %v1125_v16 = vld [vmem:[#allocation2 + $0x16] sm:$0xff]  ;;  %v1058_v33 = vpack.c.bf16 %v1053_v15, %v1052_v12  ;;  %v1292_v12 = vpack.c.bf16 %v1276_v9, %v1275_v8  ;;  %v4620_v15 = vld [vmem:[%s6035_s8 + $0x20] sm:$0xff] }
 0x606   :  { %v1130_v18 = vpack.c.bf16 %v1125_v16, %v1124_v13  ;;  %4212 = vmatmul.msk.bf16.vlgmr.msrb.gmra.mxu2 %vm41_vm2, %v1065_v17  ;;  %v1277_v16 = vld [vmem:[%s6034_s5 + $0x40] sm:$0xff]  ;;  %v1278_v17 = vld [vmem:[%s6034_s5 + $0x48] sm:$0xff] }
 0x607   :  { %4221 = vmatmul.msk.bf16.vlgmr.msra.gmra.mxu0 %vm41_vm2, %v1058_v33  ;;  %v1281_v33 = vld [vmem:[%s6034_s5 + $0x60] sm:$0xff]  ;;  %v1293_v20 = vpack.c.bf16 %v1278_v17, %v1277_v16 }
 0x608   :  { %4230 = vmatmul.msk.bf16.vlgmr.msra.gmra.mxu3 %vm41_vm2, %v1130_v18  ;;  %v1282_v18 = vld [vmem:[%s6034_s5 + $0x68] sm:$0xff] }
 0x609   :  { %v1295_v19 = vpack.c.bf16 %v1282_v18, %v1281_v33 }
 0x617   :  { %4257 = vmatmul.msk.bf16.vlgmr.msrb.gmra.mxu0 %vm41_vm2, %v1289_v60 }
 0x627   :  { %4258 = vmatmul.msk.bf16.gmra.mxu0 %vm41_vm2, %v1290_v63 }
 0x637   :  { %4259 = vmatmul.msk.bf16.gmra.mxu0 %vm41_vm2, %v1291_v3 }
 0x647   :  { %4260 = vmatmul.msk.bf16.gmra.mxu0 %vm41_vm2, %v1292_v12 }
 0x657   :  { %4261 = vmatmul.msk.bf16.gmra.mxu0 %vm41_vm2, %v1293_v20 }
 0x684   :  { %v1119_v21 = vpop.f32.mrf.mxu0 }
 0x689   :  { %v1090_v22 = vpop.f32.mrf.mxu2 }
 0x68a   :  { %v1120_v23 = vadd.f32 %v1119_v21, %v1090_v22  ;;  %v4618_v21 = vld [vmem:[%s6035_s8 + $0x10] sm:$0xff]  ;;  %v4621_v22 = vld [vmem:[%s6035_s8 + $0x28] sm:$0xff] }
 0x68b   :  { %v1155_v24 = vpop.f32.mrf.mxu3 }
 0x68c   :  { %v1160_v25 = vadd.f32 %v1155_v24, %v1120_v23  ;;  %v1121_v28 = vpop.f32.mrf.mxu0  ;;  %v1283_v23 = vld [vmem:[%s6034_s5 + $0x70] sm:$0xff]  ;;  %v1284_v24 = vld [vmem:[%s6034_s5 + $0x78] sm:$0xff] }
 0x68e   :  { %v1164_v27 = vadd.f32 %v4672_v26, %v1160_v25  ;;  %v1296_v25 = vpack.c.bf16 %v1284_v24, %v1283_v23 }
 0x690   :  { %v1166_v32 = vadd.f32 %v1164_v27, %v1048_v5  ;;  %v4623_v27 = vld [vmem:[%s6035_s8 + $0x38] sm:$0xff] }
 0x691   :  { %v1092_v29 = vpop.f32.mrf.mxu2 }
 0x692   :  { %v1122_v30 = vadd.f32 %v1121_v28, %v1092_v29  ;;  %v1170_v36 = vmul.f32 0.2, %v1166_v32  ;;  %vm1168_vm7 = vcmp.ge.f32.partialorder %v1166_v32, 0.0 }
 0x693   :  { %v1157_v31 = vpop.f32.mrf.mxu3 }
 0x694   :  { %v1161_v34 = vadd.f32 %v1157_v31, %v1122_v30  ;;  %v1172_v39 = vsel %vm1168_vm7, %v1166_v32, %v1170_v36  ;;  %v1342_v28 = vpop.f32.mrf.mxu0  ;;  %v4629_v32 = vld [vmem:[%s6027_s0 + $0x1d8] sm:$0xff]  ;;  %v4628_v36 = vld [vmem:[%s6027_s0 + $0x1d0] sm:$0xff] }
 0x696   :  { %v1165_v35 = vadd.f32 %v4672_v26, %v1161_v34  ;;  %v4622_v26 = vld [vmem:[%s6035_s8 + $0x30] sm:$0xff]  ;;  %v4627_v34 = vld [vmem:[%s6027_s0 + $0x1c8] sm:$0xff] }
 0x698   :  { %v1167_v37 = vadd.f32 %v1165_v35, %v1049_v10  ;;  %v1279_v10 = vld [vmem:[%s6034_s5 + $0x50] sm:$0xff] }
 0x699   :  { %v1294_v13 = vpack.c.bf16 %v1280_v11, %v1279_v10 }
 0x69a   :  { %vm1169_vm9 = vcmp.ge.f32.partialorder %v1167_v37, 0.0  ;;  %v1171_v38 = vmul.f32 0.2, %v1167_v37 }
 0x69c   :  { %v1173_v40 = vsel %vm1169_vm9, %v1167_v37, %v1171_v38  ;;  %v1344_v29 = vpop.f32.mrf.mxu0  ;;  %v4626_v37 = vld [vmem:[%s6027_s0 + $0x1c0] sm:$0xff]  ;;  %v4631_v38 = vld [vmem:[%s6027_s0 + $0x1e8] sm:$0xff] }
 0x69d   :  { %v1178_v41 = vpack.c.bf16 %v1173_v40, %v1172_v39  ;;  %1825 = vmatpush.bf16.msra.mxu0 %v4631_v38 }
 0x69f   :  { %4239 = vmatmul.msk.bf16.vlgmr.msrb.gmra.mxu1 %vm41_vm2, %v1178_v41  ;;  %v5148_v41 = vld [vmem:[%s6028_s1 + $0xb] ss:$0 sm:$0xff] }
 0x6a0   :  { %1627 = vmatpush.bf16.msrb.mxu1 %v4629_v32 }
 0x6a4   :  { %v1347_v30 = vpop.f32.mrf.mxu0  ;;  %1628 = vmatpush.bf16.msrb.mxu1 %v4628_v36 }
 0x6ac   :  { %v1349_v31 = vpop.f32.mrf.mxu0 }
 0x6af   :  { %4262 = vmatmul.msk.bf16.vlgmr.msra.gmra.mxu1 %vm41_vm2, %v1294_v13 }
 0x6b4   :  { %v5129_v35 = vpop.f32.mrf.mxu0 }
 0x6bf   :  { %4263 = vmatmul.msk.bf16.gmra.mxu1 %vm41_vm2, %v1295_v19 }
 0x6cf   :  { %4264 = vmatmul.msk.bf16.gmra.mxu1 %vm41_vm2, %v1296_v25 }
 0x71c   :  { %v1205_v46 = vpop.f32.mrf.mxu1 }
 0x71d   :  { %v1206_v47 = vadd.f32 %v4673_v45, %v1205_v46 }
 0x71f   :  { %v1210_v48 = vadd.f32 %v1206_v47, %v1172_v39  ;;  %v5140_v39 = vpop.f32.mrf.mxu0 }
 0x721   :  { %v1214_v51 = vmul.f32 0.2, %v1210_v48  ;;  %vm1212_vm10 = vcmp.ge.f32.partialorder %v1210_v48, 0.0 }
 0x723   :  { %v1216_v54 = vsel %vm1212_vm10, %v1210_v48, %v1214_v51 }
 0x724   :  { %v1207_v49 = vpop.f32.mrf.mxu1 }
 0x725   :  { %v1208_v50 = vadd.f32 %v4673_v45, %v1207_v49 }
 0x727   :  { %v1211_v52 = vadd.f32 %v1208_v50, %v1173_v40  ;;  %v4630_v40 = vld [vmem:[%s6027_s0 + $0x1e0] sm:$0xff]  ;;  %v1357_v45 = vpop.f32.mrf.mxu0 }
 0x728   :  { %1826 = vmatpush.bf16.msra.mxu0 %v4630_v40 }
 0x729   :  { %vm1213_vm11 = vcmp.ge.f32.partialorder %v1211_v52, 0.0  ;;  %v1215_v53 = vmul.f32 0.2, %v1211_v52 }
 0x72b   :  { %v1217_v55 = vsel %vm1213_vm11, %v1211_v52, %v1215_v53 }
 0x72c   :  { %v1222_v56 = vpack.c.bf16 %v1217_v55, %v1216_v54  ;;  %v1367_v3 = vpop.f32.mrf.mxu1 }
 0x72e   :  { %4248 = vmatmul.msk.bf16.vlgmr.msra.gmra.mxu2 %vm41_vm2, %v1222_v56 }
 0x72f   :  { %v1359_v52 = vpop.f32.mrf.mxu0 }
 0x7b1   :  { %v1247_v2 = vpop.f32.mrf.mxu2 }
 0x7b9   :  { %v1249_v4 = vpop.f32.mrf.mxu2 }
 0x7ba   :  { %v1268_v5 = vpack.c.bf16 %v1249_v4, %v1247_v2  ;;  %v1362_v2 = vpop.f32.mrf.mxu0 }
 0x7bc   :  { %1453 = vmatpush.bf16.msrb.mxu2 %v1268_v5  ;;  %4660 = vmatpush.bf16.msrb.mxu3 %v1268_v5 }
 0x7bf   :  { %4297 = vmatmul.msk.bf16.vlgmr.msrb.gmra.mxu2 %vm230_vm8, %v4616_v6  ;;  %4300 = vmatmul.msk.bf16.vlgmr.msrb.gmra.mxu3 %vm230_vm8, %v4619_v7 }
 0x7c0   :  { %1712 = vmatpush.bf16.msra.mxu2 %v4627_v34 }
 0x7c2   :  { %v1364_v13 = vpop.f32.mrf.mxu0 }
 0x7c4   :  { %1713 = vmatpush.bf16.msra.mxu2 %v4626_v37 }
 0x7cf   :  { %4298 = vmatmul.msk.bf16.gmra.mxu2 %vm230_vm8, %v4617_v14  ;;  %4301 = vmatmul.msk.bf16.gmra.mxu3 %vm230_vm8, %v4620_v15  ;;  %v1369_v14 = vpop.f32.mrf.mxu1 }
 0x7df   :  { %4299 = vmatmul.msk.bf16.gmra.mxu2 %vm230_vm8, %v4618_v21  ;;  %4302 = vmatmul.msk.bf16.gmra.mxu3 %vm230_vm8, %v4621_v22 }
 0x7ef   :  { %4303 = vmatmul.msk.bf16.gmra.mxu3 %vm230_vm8, %v4622_v26 }
 0x7ff   :  { %4304 = vmatmul.msk.bf16.gmra.mxu3 %vm230_vm8, %v4623_v27 }
 0x842   :  { %v1455_v42 = vpop.f32.mrf.mxu2  ;;  %v1470_v43 = vpop.f32.mrf.mxu3 }
 0x843   :  { %v1456_v44 = vadd.f32 %v1455_v42, %v1342_v28  ;;  %v1471_v46 = vadd.f32 %v1470_v43, %v1357_v45  ;;  %v1372_v28 = vpop.f32.mrf.mxu1 }
 0x845   :  { %v5151_v47 = vadd.f32 %v5148_v41, %v1456_v44  ;;  %v5154_v48 = vadd.f32 %v5148_v41, %v1471_v46 }
 0x847   :  { %1513 = vst.msk [vmem:[#allocation3 + $0x1b] sm:$0xff] %vm41_vm2, %v5151_v47 }
 0x848   :  { %1519 = vst.msk [vmem:[#allocation3 + $0x4b] sm:$0xff] %vm41_vm2, %v5154_v48 }
 0x84a   :  { %v1457_v49 = vpop.f32.mrf.mxu2  ;;  %v1472_v50 = vpop.f32.mrf.mxu3 }
 0x84b   :  { %v1458_v51 = vadd.f32 %v1457_v49, %v1344_v29  ;;  %v1473_v53 = vadd.f32 %v1472_v50, %v1359_v52  ;;  %v1374_v42 = vpop.f32.mrf.mxu1 }
 0x84d   :  { %v5161_v54 = vadd.f32 %v5148_v41, %v1458_v51  ;;  %v5164_v55 = vadd.f32 %v5148_v41, %v1473_v53 }
 0x84e   :  { %v1557_v60 = vld [vmem:[#allocation3 + $0x1b] sm:$0xff] }
 0x84f   :  { %1514 = vst.msk [vmem:[#allocation3 + $0x23] sm:$0xff] %vm41_vm2, %v5161_v54  ;;  %v1529_v62 = vld [vmem:[#allocation3 + $0x1a] sm:$0xff] }
 0x850   :  { %1520 = vst.msk [vmem:[#allocation3 + $0x53] sm:$0xff] %vm41_vm2, %v5164_v55 }
 0x852   :  { %v1460_v56 = vpop.f32.mrf.mxu2  ;;  %v1475_v57 = vpop.f32.mrf.mxu3 }
 0x853   :  { %v1461_v58 = vadd.f32 %v1460_v56, %v1347_v30  ;;  %v1476_v6 = vadd.f32 %v1475_v57, %v1362_v2 }
 0x855   :  { %v5171_v59 = vadd.f32 %v5148_v41, %v1461_v58  ;;  %v5178_v8 = vadd.f32 %v5148_v41, %v1476_v6 }
 0x856   :  { %v1558_v61 = vld [vmem:[#allocation3 + $0x23] sm:$0xff] }
 0x857   :  { %v1530_v63 = vld [vmem:[#allocation3 + $0x22] sm:$0xff]  ;;  %1515 = vst.msk [vmem:[#allocation3 + $0x2b] sm:$0xff] %vm41_vm2, %v5171_v59  ;;  %v1577_v0 = vpack.c.bf16 %v1558_v61, %v1557_v60  ;;  %v1377_v60 = vpop.f32.mrf.mxu1  ;;  %v1564_v2 = vld [vmem:[#allocation3 + $0x53] sm:$0xff] }
 0x858   :  { %v1549_v1 = vpack.c.bf16 %v1530_v63, %v1529_v62  ;;  %v1755_v10 = vld [vmem:[#allocation3 + $0x1c] sm:$0xff]  ;;  %1521 = vst.msk [vmem:[#allocation3 + $0x93] sm:$0xff] %vm41_vm2, %v5178_v8  ;;  %v1536_v63 = vld [vmem:[#allocation3 + $0x52] sm:$0xff] }
 0x859   :  { %4313 = vmatmul.msk.bf16.vlgmr.msrb.gmra.mxu1 %vm41_vm2, %v1577_v0 }
 0x85a   :  { %4329 = vmatmul.msk.bf16.vlgmr.msra.gmra.mxu2 %vm41_vm2, %v1549_v1  ;;  %v1462_v4 = vpop.f32.mrf.mxu2  ;;  %v1477_v5 = vpop.f32.mrf.mxu3  ;;  %v1563_v1 = vld [vmem:[#allocation3 + $0x4b] sm:$0xff] }
 0x85b   :  { %v1463_v7 = vadd.f32 %v1462_v4, %v1349_v31  ;;  %v1478_v17 = vadd.f32 %v1477_v5, %v1364_v13  ;;  %v1580_v5 = vpack.c.bf16 %v1564_v2, %v1563_v1  ;;  %v1762_v13 = vld [vmem:[#allocation3 + $0x54] sm:$0xff]  ;;  %v4635_v2 = vld [vmem:[%s6027_s0 + $0x208] sm:$0xff] }
 0x85c   :  { %2080 = vmatpush.bf16.msra.mxu3 %v4635_v2 }
 0x85d   :  { %v5181_v9 = vadd.f32 %v5148_v41, %v1463_v7  ;;  %v5190_v19 = vadd.f32 %v5148_v41, %v1478_v17 }
 0x85e   :  { %v1756_v11 = vld [vmem:[#allocation3 + $0x24] sm:$0xff] }
 0x85f   :  { %1516 = vst.msk [vmem:[#allocation3 + $0x33] sm:$0xff] %vm41_vm2, %v5181_v9  ;;  %v1775_v12 = vpack.c.bf16 %v1756_v11, %v1755_v10  ;;  %v1559_v21 = vld [vmem:[#allocation3 + $0x2b] sm:$0xff]  ;;  %v1379_v7 = vpop.f32.mrf.mxu1 }
 0x860   :  { %v1531_v24 = vld [vmem:[#allocation3 + $0x2a] sm:$0xff]  ;;  %1522 = vst.msk [vmem:[#allocation3 + $0x9b] sm:$0xff] %vm41_vm2, %v5190_v19 }
 0x861   :  { %4345 = vmatmul.msk.bf16.vlgmr.msra.gmra.mxu0 %vm41_vm2, %v1775_v12  ;;  %v1761_v12 = vld [vmem:[#allocation3 + $0x4c] sm:$0xff] }
 0x862   :  { %v1465_v15 = vpop.f32.mrf.mxu2  ;;  %v1480_v16 = vpop.f32.mrf.mxu3 }
 0x863   :  { %v1466_v33 = vadd.f32 %v1465_v15, %v5129_v35  ;;  %v1481_v18 = vadd.f32 %v1480_v16, %v1367_v3  ;;  %v1778_v15 = vpack.c.bf16 %v1762_v13, %v1761_v12  ;;  %v1565_v16 = vld [vmem:[#allocation3 + $0x93] sm:$0xff] }
 0x865   :  { %v5193_v20 = vadd.f32 %v5148_v41, %v1466_v33  ;;  %v5196_v22 = vadd.f32 %v5148_v41, %v1481_v18  ;;  %v1537_v33 = vld [vmem:[#allocation3 + $0x92] sm:$0xff] }
 0x866   :  { %v1560_v23 = vld [vmem:[#allocation3 + $0x33] sm:$0xff] }
 0x867   :  { %v1532_v25 = vld [vmem:[#allocation3 + $0x32] sm:$0xff]  ;;  %1517 = vst.msk [vmem:[#allocation3 + $0x3b] sm:$0xff] %vm41_vm2, %v5193_v20  ;;  %v1578_v26 = vpack.c.bf16 %v1560_v23, %v1559_v21  ;;  %v1566_v17 = vld [vmem:[#allocation3 + $0x9b] sm:$0xff] }
 0x868   :  { %v1550_v27 = vpack.c.bf16 %v1532_v25, %v1531_v24  ;;  %1523 = vst.msk [vmem:[#allocation3 + $0xa3] sm:$0xff] %vm41_vm2, %v5196_v22  ;;  %v1757_v36 = vld [vmem:[#allocation3 + $0x2c] sm:$0xff]  ;;  %v1538_v18 = vld [vmem:[#allocation3 + $0x9a] sm:$0xff]  ;;  %v1581_v21 = vpack.c.bf16 %v1566_v17, %v1565_v16 }
 0x869   :  { %4314 = vmatmul.msk.bf16.gmra.mxu1 %vm41_vm2, %v1578_v26  ;;  %v1553_v23 = vpack.c.bf16 %v1538_v18, %v1537_v33  ;;  %v1763_v24 = vld [vmem:[#allocation3 + $0x94] sm:$0xff] }
 0x86a   :  { %4330 = vmatmul.msk.bf16.gmra.mxu2 %vm41_vm2, %v1550_v27  ;;  %v1467_v29 = vpop.f32.mrf.mxu2  ;;  %v1482_v30 = vpop.f32.mrf.mxu3  ;;  %v4637_v26 = vld [vmem:[%s6027_s0 + $0x218] sm:$0xff]  ;;  %v4636_v16 = vld [vmem:[%s6027_s0 + $0x210] sm:$0xff] }
 0x86b   :  { %v1468_v31 = vadd.f32 %v1467_v29, %v5140_v39  ;;  %v1483_v32 = vadd.f32 %v1482_v30, %v1369_v14  ;;  %v4633_v27 = vld [vmem:[%s6027_s0 + $0x1f8] sm:$0xff]  ;;  %2278 = vmatpush.bf16.msrb.mxu2 %v4637_v26 }
 0x86c   :  { %2165 = vmatpush.bf16.msra.mxu1 %v4633_v27 }
 0x86d   :  { %v5208_v34 = vadd.f32 %v5148_v41, %v1468_v31  ;;  %v5211_v35 = vadd.f32 %v5148_v41, %v1483_v32 }
 0x86e   :  { %v1758_v37 = vld [vmem:[#allocation3 + $0x34] sm:$0xff] }
 0x86f   :  { %1518 = vst.msk [vmem:[#allocation3 + $0x43] sm:$0xff] %vm41_vm2, %v5208_v34  ;;  %v1776_v38 = vpack.c.bf16 %v1758_v37, %v1757_v36  ;;  %v1561_v43 = vld [vmem:[#allocation3 + $0x3b] sm:$0xff]  ;;  %v1567_v29 = vld [vmem:[#allocation3 + $0xa3] sm:$0xff]  ;;  %2279 = vmatpush.bf16.msrb.mxu2 %v4636_v16 }
 0x870   :  { %1524 = vst.msk [vmem:[#allocation3 + $0xab] sm:$0xff] %vm41_vm2, %v5211_v35  ;;  %v1533_v46 = vld [vmem:[#allocation3 + $0x3a] sm:$0xff] }
 0x871   :  { %4346 = vmatmul.msk.bf16.gmra.mxu0 %vm41_vm2, %v1776_v38  ;;  %v1764_v25 = vld [vmem:[#allocation3 + $0x9c] sm:$0xff] }
 0x872   :  { %v1485_v40 = vpop.f32.mrf.mxu3 }
 0x873   :  { %v1486_v39 = vadd.f32 %v1485_v40, %v1372_v28  ;;  %v1539_v28 = vld [vmem:[#allocation3 + $0xa2] sm:$0xff] }
 0x875   :  { %v5219_v44 = vadd.f32 %v5148_v41, %v1486_v39 }
 0x876   :  { %v1562_v45 = vld [vmem:[#allocation3 + $0x43] sm:$0xff] }
 0x877   :  { %v1534_v49 = vld [vmem:[#allocation3 + $0x42] sm:$0xff]  ;;  %v1579_v50 = vpack.c.bf16 %v1562_v45, %v1561_v43  ;;  %1525 = vst.msk [vmem:[#allocation3 + $0xb3] sm:$0xff] %vm41_vm2, %v5219_v44  ;;  %v1535_v3 = vld [vmem:[#allocation3 + $0x4a] sm:$0xff] }
 0x878   :  { %v1551_v51 = vpack.c.bf16 %v1534_v49, %v1533_v46  ;;  %v1759_v56 = vld [vmem:[#allocation3 + $0x3c] sm:$0xff]  ;;  %v1760_v57 = vld [vmem:[#allocation3 + $0x44] sm:$0xff]  ;;  %v1552_v6 = vpack.c.bf16 %v1536_v63, %v1535_v3 }
 0x879   :  { %4315 = vmatmul.msk.bf16.gmra.mxu1 %vm41_vm2, %v1579_v50  ;;  %v1777_v61 = vpack.c.bf16 %v1760_v57, %v1759_v56  ;;  %v1568_v30 = vld [vmem:[#allocation3 + $0xab] sm:$0xff] }
 0x87a   :  { %4331 = vmatmul.msk.bf16.gmra.mxu2 %vm41_vm2, %v1551_v51  ;;  %v1487_v52 = vpop.f32.mrf.mxu3  ;;  %v1540_v31 = vld [vmem:[#allocation3 + $0xaa] sm:$0xff]  ;;  %v1582_v32 = vpack.c.bf16 %v1568_v30, %v1567_v29 }
 0x87b   :  { %v1488_v53 = vadd.f32 %v1487_v52, %v1374_v42  ;;  %v1554_v36 = vpack.c.bf16 %v1540_v31, %v1539_v28  ;;  %v1765_v37 = vld [vmem:[#allocation3 + $0xa4] sm:$0xff] }
 0x87d   :  { %v5226_v58 = vadd.f32 %v5148_v41, %v1488_v53 }
 0x87e   :  { %v1766_v38 = vld [vmem:[#allocation3 + $0xac] sm:$0xff] }
 0x87f   :  { %1526 = vst.msk [vmem:[#allocation3 + $0xbb] sm:$0xff] %vm41_vm2, %v5226_v58  ;;  %v1780_v40 = vpack.c.bf16 %v1766_v38, %v1765_v37  ;;  %v1541_v39 = vld [vmem:[#allocation3 + $0xb2] sm:$0xff] }
 0x880   :  { %v1569_v42 = vld [vmem:[#allocation3 + $0xb3] sm:$0xff] }
 0x881   :  { %4347 = vmatmul.msk.bf16.gmra.mxu0 %vm41_vm2, %v1777_v61 }
 0x882   :  { %v1490_v62 = vpop.f32.mrf.mxu3 }
 0x883   :  { %v1491_v0 = vadd.f32 %v1490_v62, %v1377_v60 }
 0x885   :  { %v5232_v4 = vadd.f32 %v5148_v41, %v1491_v0 }
 0x886   :  { %v1570_v43 = vld [vmem:[#allocation3 + $0xbb] sm:$0xff] }
 0x887   :  { %1527 = vst.msk [vmem:[#allocation3 + $0xc3] sm:$0xff] %vm41_vm2, %v5232_v4  ;;  %v1542_v45 = vld [vmem:[#allocation3 + $0xba] sm:$0xff]  ;;  %v1583_v46 = vpack.c.bf16 %v1570_v43, %v1569_v42 }
 0x888   :  { %v1555_v49 = vpack.c.bf16 %v1542_v45, %v1541_v39  ;;  %v1767_v50 = vld [vmem:[#allocation3 + $0xb4] sm:$0xff] }
 0x889   :  { %4316 = vmatmul.msk.bf16.gmra.mxu1 %vm41_vm2, %v1580_v5  ;;  %v4634_v5 = vld [vmem:[%s6027_s0 + $0x200] sm:$0xff] }
 0x88a   :  { %4332 = vmatmul.msk.bf16.gmra.mxu2 %vm41_vm2, %v1552_v6  ;;  %v1492_v10 = vpop.f32.mrf.mxu3  ;;  %v4632_v6 = vld [vmem:[%s6027_s0 + $0x1f0] sm:$0xff]  ;;  %2081 = vmatpush.bf16.msra.mxu3 %v4634_v5 }
 0x88b   :  { %v1493_v11 = vadd.f32 %v1492_v10, %v1379_v7  ;;  %2166 = vmatpush.bf16.msra.mxu1 %v4632_v6 }
 0x88d   :  { %v5239_v14 = vadd.f32 %v5148_v41, %v1493_v11  ;;  %v1779_v41 = vpack.c.bf16 %v1764_v25, %v1763_v24  ;;  %v5274_v11 = vld [vmem:[%s6028_s1 + $0xc] ss:$0 sm:$0xff] }
 0x88e   :  { %v1768_v51 = vld [vmem:[#allocation3 + $0xbc] sm:$0xff] }
 0x88f   :  { %1528 = vst.msk [vmem:[#allocation3 + $0xcb] sm:$0xff] %vm41_vm2, %v5239_v14  ;;  %v1781_v52 = vpack.c.bf16 %v1768_v51, %v1767_v50  ;;  %v1543_v53 = vld [vmem:[#allocation3 + $0xc2] sm:$0xff] }
 0x890   :  { %v1571_v56 = vld [vmem:[#allocation3 + $0xc3] sm:$0xff] }
 0x891   :  { %4348 = vmatmul.msk.bf16.gmra.mxu0 %vm41_vm2, %v1778_v15 }
 0x896   :  { %v1572_v57 = vld [vmem:[#allocation3 + $0xcb] sm:$0xff] }
 0x897   :  { %v1544_v60 = vld [vmem:[#allocation3 + $0xca] sm:$0xff]  ;;  %v1584_v61 = vpack.c.bf16 %v1572_v57, %v1571_v56 }
 0x898   :  { %v1556_v62 = vpack.c.bf16 %v1544_v60, %v1543_v53  ;;  %v1769_v63 = vld [vmem:[#allocation3 + $0xc4] sm:$0xff]  ;;  %v1770_v0 = vld [vmem:[#allocation3 + $0xcc] sm:$0xff] }
 0x899   :  { %4317 = vmatmul.msk.bf16.gmra.mxu1 %vm41_vm2, %v1581_v21  ;;  %v1782_v1 = vpack.c.bf16 %v1770_v0, %v1769_v63 }
 0x89a   :  { %4333 = vmatmul.msk.bf16.gmra.mxu2 %vm41_vm2, %v1553_v23 }
 0x8a1   :  { %4349 = vmatmul.msk.bf16.gmra.mxu0 %vm41_vm2, %v1779_v41 }
 0x8a9   :  { %4318 = vmatmul.msk.bf16.gmra.mxu1 %vm41_vm2, %v1582_v32 }
 0x8aa   :  { %4334 = vmatmul.msk.bf16.gmra.mxu2 %vm41_vm2, %v1554_v36 }
 0x8b1   :  { %4350 = vmatmul.msk.bf16.gmra.mxu0 %vm41_vm2, %v1780_v40 }
 0x8b9   :  { %4319 = vmatmul.msk.bf16.gmra.mxu1 %vm41_vm2, %v1583_v46 }
 0x8ba   :  { %4335 = vmatmul.msk.bf16.gmra.mxu2 %vm41_vm2, %v1555_v49 }
 0x8c1   :  { %4351 = vmatmul.msk.bf16.gmra.mxu0 %vm41_vm2, %v1781_v52 }
 0x8c9   :  { %4320 = vmatmul.msk.bf16.gmra.mxu1 %vm41_vm2, %v1584_v61 }
 0x8ca   :  { %4336 = vmatmul.msk.bf16.gmra.mxu2 %vm41_vm2, %v1556_v62 }
 0x8d1   :  { %4352 = vmatmul.msk.bf16.gmra.mxu0 %vm41_vm2, %v1782_v1 }
 0x8d6   :  { %v1630_v3 = vpop.f32.mrf.mxu1 }
 0x8dd   :  { %v1715_v7 = vpop.f32.mrf.mxu2 }
 0x8de   :  { %v1716_v10 = vadd.f32 %v1715_v7, %v1630_v3  ;;  %v1632_v12 = vpop.f32.mrf.mxu1  ;;  %v1828_v13 = vpop.f32.mrf.mxu0 }
 0x8e0   :  { %v1868_v15 = vadd.f32 %v1828_v13, %v1716_v10 }
 0x8e2   :  { %v1886_v17 = vadd.f32 %v5274_v11, %v1868_v15 }
 0x8e4   :  { %v1902_v33 = vadd.f32 %v1886_v17, %v5151_v47 }
 0x8e5   :  { %v1717_v18 = vpop.f32.mrf.mxu2 }
 0x8e6   :  { %vm1918_vm8 = vcmp.ge.f32.partialorder %v1902_v33, 0.0  ;;  %v1934_v21 = vmul.f32 0.2, %v1902_v33  ;;  %v1718_v23 = vadd.f32 %v1717_v18, %v1632_v12  ;;  %v1635_v24 = vpop.f32.mrf.mxu1  ;;  %v1830_v25 = vpop.f32.mrf.mxu0 }
 0x8e8   :  { %v5281_v41 = vsel %vm1918_vm8, %v1902_v33, %v1934_v21  ;;  %v1869_v26 = vadd.f32 %v1830_v25, %v1718_v23 }
 0x8e9   :  { %1966 = vst.msk [vmem:[#allocation3 + $0x1b] sm:$0xff] %vm41_vm2, %v5281_v41 }
 0x8ea   :  { %v1887_v27 = vadd.f32 %v5274_v11, %v1869_v26 }
 0x8ec   :  { %v1903_v28 = vadd.f32 %v1887_v27, %v5161_v54 }
 0x8ed   :  { %v1720_v29 = vpop.f32.mrf.mxu2 }
 0x8ee   :  { %vm1919_vm12 = vcmp.ge.f32.partialorder %v1903_v28, 0.0  ;;  %v1935_v30 = vmul.f32 0.2, %v1903_v28  ;;  %v1721_v47 = vadd.f32 %v1720_v29, %v1635_v24  ;;  %v1637_v31 = vpop.f32.mrf.mxu1  ;;  %v1833_v32 = vpop.f32.mrf.mxu0 }
 0x8f0   :  { %v5287_v36 = vsel %vm1919_vm12, %v1903_v28, %v1935_v30  ;;  %v1870_v37 = vadd.f32 %v1833_v32, %v1721_v47  ;;  %v2010_v46 = vld [vmem:[#allocation3 + $0x1b] sm:$0xff] }
 0x8f1   :  { %1967 = vst.msk [vmem:[#allocation3 + $0x23] sm:$0xff] %vm41_vm2, %v5287_v36  ;;  %v1982_v52 = vld [vmem:[#allocation3 + $0x18] sm:$0xff] }
 0x8f2   :  { %v1888_v38 = vadd.f32 %v5274_v11, %v1870_v37 }
 0x8f4   :  { %v1904_v40 = vadd.f32 %v1888_v38, %v5171_v59 }
 0x8f5   :  { %v1722_v39 = vpop.f32.mrf.mxu2 }
 0x8f6   :  { %vm1920_vm13 = vcmp.ge.f32.partialorder %v1904_v40, 0.0  ;;  %v1936_v42 = vmul.f32 0.2, %v1904_v40  ;;  %v1723_v54 = vadd.f32 %v1722_v39, %v1637_v31  ;;  %v1640_v43 = vpop.f32.mrf.mxu1  ;;  %v1835_v45 = vpop.f32.mrf.mxu0 }
 0x8f8   :  { %v5293_v49 = vsel %vm1920_vm13, %v1904_v40, %v1936_v42  ;;  %v1871_v50 = vadd.f32 %v1835_v45, %v1723_v54  ;;  %v2011_v51 = vld [vmem:[#allocation3 + $0x23] sm:$0xff] }
 0x8f9   :  { %v1983_v53 = vld [vmem:[#allocation3 + $0x20] sm:$0xff]  ;;  %1968 = vst.msk [vmem:[#allocation3 + $0x2b] sm:$0xff] %vm41_vm2, %v5293_v49  ;;  %v2030_v56 = vpack.c.bf16 %v2011_v51, %v2010_v46 }
 0x8fa   :  { %v2002_v57 = vpack.c.bf16 %v1983_v53, %v1982_v52  ;;  %v1889_v59 = vadd.f32 %v5274_v11, %v1871_v50  ;;  %v2208_v5 = vld [vmem:[#allocation3 + $0x1e] sm:$0xff] }
 0x8fb   :  { %4361 = vmatmul.msk.bf16.vlgmr.msra.gmra.mxu3 %vm41_vm2, %v2030_v56 }
 0x8fc   :  { %4377 = vmatmul.msk.bf16.vlgmr.msra.gmra.mxu1 %vm41_vm2, %v2002_v57  ;;  %v1905_v60 = vadd.f32 %v1889_v59, %v5181_v9 }
 0x8fd   :  { %v1725_v61 = vpop.f32.mrf.mxu2 }
 0x8fe   :  { %vm1921_vm14 = vcmp.ge.f32.partialorder %v1905_v60, 0.0  ;;  %v1937_v62 = vmul.f32 0.2, %v1905_v60  ;;  %v1726_v63 = vadd.f32 %v1725_v61, %v1640_v43  ;;  %v1642_v0 = vpop.f32.mrf.mxu1  ;;  %v1838_v1 = vpop.f32.mrf.mxu0 }
 0x900   :  { %v5301_v2 = vsel %vm1921_vm14, %v1905_v60, %v1937_v62  ;;  %v1872_v3 = vadd.f32 %v1838_v1, %v1726_v63  ;;  %v2209_v6 = vld [vmem:[#allocation3 + $0x26] sm:$0xff] }
 0x901   :  { %1969 = vst.msk [vmem:[#allocation3 + $0x33] sm:$0xff] %vm41_vm2, %v5301_v2  ;;  %v2228_v7 = vpack.c.bf16 %v2209_v6, %v2208_v5  ;;  %v2012_v33 = vld [vmem:[#allocation3 + $0x2b] sm:$0xff] }
 0x902   :  { %v1890_v10 = vadd.f32 %v5274_v11, %v1872_v3  ;;  %v1984_v24 = vld [vmem:[#allocation3 + $0x28] sm:$0xff] }
 0x903   :  { %4393 = vmatmul.msk.bf16.vlgmr.msrb.gmra.mxu2 %vm41_vm2, %v2228_v7 }
 0x904   :  { %v1906_v9 = vadd.f32 %v1890_v10, %v5193_v20 }
 0x905   :  { %v1727_v12 = vpop.f32.mrf.mxu2 }
 0x906   :  { %vm1922_vm15 = vcmp.ge.f32.partialorder %v1906_v9, 0.0  ;;  %v1938_v13 = vmul.f32 0.2, %v1906_v9  ;;  %v1728_v15 = vadd.f32 %v1727_v12, %v1642_v0  ;;  %v1645_v16 = vpop.f32.mrf.mxu1  ;;  %v1840_v17 = vpop.f32.mrf.mxu0 }
 0x908   :  { %v5308_v18 = vsel %vm1922_vm15, %v1906_v9, %v1938_v13  ;;  %v1873_v21 = vadd.f32 %v1840_v17, %v1728_v15  ;;  %v2013_v23 = vld [vmem:[#allocation3 + $0x33] sm:$0xff] }
 0x909   :  { %v1985_v25 = vld [vmem:[#allocation3 + $0x30] sm:$0xff]  ;;  %1970 = vst.msk [vmem:[#allocation3 + $0x3b] sm:$0xff] %vm41_vm2, %v5308_v18  ;;  %v2031_v26 = vpack.c.bf16 %v2013_v23, %v2012_v33 }
 0x90a   :  { %v2003_v27 = vpack.c.bf16 %v1985_v25, %v1984_v24  ;;  %v1891_v20 = vadd.f32 %v5274_v11, %v1873_v21  ;;  %v2210_v40 = vld [vmem:[#allocation3 + $0x2e] sm:$0xff] }
 0x90b   :  { %4362 = vmatmul.msk.bf16.gmra.mxu3 %vm41_vm2, %v2031_v26 }
 0x90c   :  { %4378 = vmatmul.msk.bf16.gmra.mxu1 %vm41_vm2, %v2003_v27  ;;  %v1907_v28 = vadd.f32 %v1891_v20, %v5208_v34 }
 0x90d   :  { %v1730_v29 = vpop.f32.mrf.mxu2 }
 0x90e   :  { %vm1923_vm0 = vcmp.ge.f32.partialorder %v1907_v28, 0.0  ;;  %v1939_v30 = vmul.f32 0.2, %v1907_v28  ;;  %v1731_v47 = vadd.f32 %v1730_v29, %v1645_v16  ;;  %v1647_v31 = vpop.f32.mrf.mxu1  ;;  %v1843_v32 = vpop.f32.mrf.mxu0 }
 0x910   :  { %v5316_v37 = vsel %vm1923_vm0, %v1907_v28, %v1939_v30  ;;  %v1874_v38 = vadd.f32 %v1843_v32, %v1731_v47  ;;  %v2211_v39 = vld [vmem:[#allocation3 + $0x36] sm:$0xff] }
 0x911   :  { %1971 = vst.msk [vmem:[#allocation3 + $0x43] sm:$0xff] %vm41_vm2, %v5316_v37  ;;  %v2229_v42 = vpack.c.bf16 %v2211_v39, %v2210_v40  ;;  %v2014_v52 = vld [vmem:[#allocation3 + $0x3b] sm:$0xff] }
 0x912   :  { %v1892_v54 = vadd.f32 %v5274_v11, %v1874_v38  ;;  %v1986_v59 = vld [vmem:[#allocation3 + $0x38] sm:$0xff] }
 0x913   :  { %4394 = vmatmul.msk.bf16.gmra.mxu2 %vm41_vm2, %v2229_v42 }
 0x914   :  { %v1908_v34 = vadd.f32 %v1892_v54, %v5154_v48 }
 0x915   :  { %v1732_v43 = vpop.f32.mrf.mxu2 }
 0x916   :  { %vm1924_vm1 = vcmp.ge.f32.partialorder %v1908_v34, 0.0  ;;  %v1940_v45 = vmul.f32 0.2, %v1908_v34  ;;  %v1733_v46 = vadd.f32 %v1732_v43, %v1647_v31  ;;  %v1650_v50 = vpop.f32.mrf.mxu1  ;;  %v1845_v51 = vpop.f32.mrf.mxu0 }
 0x918   :  { %v5323_v53 = vsel %vm1924_vm1, %v1908_v34, %v1940_v45  ;;  %v1875_v56 = vadd.f32 %v1845_v51, %v1733_v46  ;;  %v2015_v57 = vld [vmem:[#allocation3 + $0x43] sm:$0xff] }
 0x919   :  { %v1987_v60 = vld [vmem:[#allocation3 + $0x40] sm:$0xff]  ;;  %1972 = vst.msk [vmem:[#allocation3 + $0x4b] sm:$0xff] %vm41_vm2, %v5323_v53  ;;  %v2032_v61 = vpack.c.bf16 %v2015_v57, %v2014_v52 }
 0x91a   :  { %v2004_v62 = vpack.c.bf16 %v1987_v60, %v1986_v59  ;;  %v1893_v48 = vadd.f32 %v5274_v11, %v1875_v56  ;;  %v2212_v9 = vld [vmem:[#allocation3 + $0x3e] sm:$0xff] }
 0x91b   :  { %4363 = vmatmul.msk.bf16.gmra.mxu3 %vm41_vm2, %v2032_v61 }
 0x91c   :  { %4379 = vmatmul.msk.bf16.gmra.mxu1 %vm41_vm2, %v2004_v62  ;;  %v1909_v63 = vadd.f32 %v1893_v48, %v5164_v55 }
 0x91d   :  { %v1735_v0 = vpop.f32.mrf.mxu2 }
 0x91e   :  { %vm1925_vm3 = vcmp.ge.f32.partialorder %v1909_v63, 0.0  ;;  %v1941_v1 = vmul.f32 0.2, %v1909_v63  ;;  %v1736_v3 = vadd.f32 %v1735_v0, %v1650_v50  ;;  %v1652_v5 = vpop.f32.mrf.mxu1  ;;  %v1848_v6 = vpop.f32.mrf.mxu0 }
 0x920   :  { %v5331_v7 = vsel %vm1925_vm3, %v1909_v63, %v1941_v1  ;;  %v1876_v10 = vadd.f32 %v1848_v6, %v1736_v3  ;;  %v2213_v12 = vld [vmem:[#allocation3 + $0x46] sm:$0xff] }
 0x921   :  { %1973 = vst.msk [vmem:[#allocation3 + $0x53] sm:$0xff] %vm41_vm2, %v5331_v7  ;;  %v2230_v13 = vpack.c.bf16 %v2213_v12, %v2212_v9  ;;  %v2016_v24 = vld [vmem:[#allocation3 + $0x4b] sm:$0xff] }
 0x922   :  { %v1894_v15 = vadd.f32 %v5274_v11, %v1876_v10  ;;  %v1988_v20 = vld [vmem:[#allocation3 + $0x48] sm:$0xff] }
 0x923   :  { %4395 = vmatmul.msk.bf16.gmra.mxu2 %vm41_vm2, %v2230_v13 }
 0x924   :  { %v1910_v55 = vadd.f32 %v1894_v15, %v5178_v8 }
 0x925   :  { %v1737_v16 = vpop.f32.mrf.mxu2 }
 0x926   :  { %vm1926_vm4 = vcmp.ge.f32.partialorder %v1910_v55, 0.0  ;;  %v1942_v17 = vmul.f32 0.2, %v1910_v55  ;;  %v1738_v33 = vadd.f32 %v1737_v16, %v1652_v5  ;;  %v1655_v21 = vpop.f32.mrf.mxu1  ;;  %v1850_v23 = vpop.f32.mrf.mxu0 }
 0x928   :  { %v5338_v25 = vsel %vm1926_vm4, %v1910_v55, %v1942_v17  ;;  %v1877_v26 = vadd.f32 %v1850_v23, %v1738_v33  ;;  %v2017_v27 = vld [vmem:[#allocation3 + $0x53] sm:$0xff] }
 0x929   :  { %v1989_v28 = vld [vmem:[#allocation3 + $0x50] sm:$0xff]  ;;  %1974 = vst.msk [vmem:[#allocation3 + $0x93] sm:$0xff] %vm41_vm2, %v5338_v25  ;;  %v2033_v29 = vpack.c.bf16 %v2017_v27, %v2016_v24 }
 0x92a   :  { %v2005_v30 = vpack.c.bf16 %v1989_v28, %v1988_v20  ;;  %v1895_v8 = vadd.f32 %v5274_v11, %v1877_v26  ;;  %v2214_v40 = vld [vmem:[#allocation3 + $0x4e] sm:$0xff]  ;;  %v2215_v39 = vld [vmem:[#allocation3 + $0x56] sm:$0xff] }
 0x92b   :  { %4364 = vmatmul.msk.bf16.gmra.mxu3 %vm41_vm2, %v2033_v29  ;;  %v2231_v45 = vpack.c.bf16 %v2215_v39, %v2214_v40  ;;  %v4641_v40 = vld [vmem:[%s6027_s0 + $0x238] sm:$0xff] }
 0x92c   :  { %4380 = vmatmul.msk.bf16.gmra.mxu1 %vm41_vm2, %v2005_v30  ;;  %v1911_v47 = vadd.f32 %v1895_v8, %v5190_v19  ;;  %2533 = vmatpush.bf16.msrb.mxu0 %v4641_v40 }
 0x92d   :  { %v1740_v31 = vpop.f32.mrf.mxu2 }
 0x92e   :  { %vm1927_vm5 = vcmp.ge.f32.partialorder %v1911_v47, 0.0  ;;  %v1943_v32 = vmul.f32 0.2, %v1911_v47  ;;  %v1741_v38 = vadd.f32 %v1740_v31, %v1655_v21  ;;  %v1657_v42 = vpop.f32.mrf.mxu1  ;;  %v1853_v54 = vpop.f32.mrf.mxu0 }
 0x930   :  { %v5346_v34 = vsel %vm1927_vm5, %v1911_v47, %v1943_v32  ;;  %v1878_v43 = vadd.f32 %v1853_v54, %v1741_v38  ;;  %v2018_v59 = vld [vmem:[#allocation3 + $0x93] sm:$0xff]  ;;  %v4639_v38 = vld [vmem:[%s6027_s0 + $0x228] sm:$0xff] }
 0x931   :  { %1975 = vst.msk [vmem:[#allocation3 + $0x9b] sm:$0xff] %vm41_vm2, %v5346_v34  ;;  %v1990_v48 = vld [vmem:[#allocation3 + $0x90] sm:$0xff]  ;;  %2618 = vmatpush.bf16.msrb.mxu3 %v4639_v38 }
 0x932   :  { %v1896_v46 = vadd.f32 %v5274_v11, %v1878_v43 }
 0x933   :  { %4396 = vmatmul.msk.bf16.gmra.mxu2 %vm41_vm2, %v2231_v45 }
 0x934   :  { %v1912_v19 = vadd.f32 %v1896_v46, %v5196_v22 }
 0x935   :  { %v1742_v50 = vpop.f32.mrf.mxu2 }
 0x936   :  { %vm1928_vm6 = vcmp.ge.f32.partialorder %v1912_v19, 0.0  ;;  %v1944_v51 = vmul.f32 0.2, %v1912_v19  ;;  %v1743_v52 = vadd.f32 %v1742_v50, %v1657_v42  ;;  %v1660_v56 = vpop.f32.mrf.mxu1  ;;  %v1855_v57 = vpop.f32.mrf.mxu0 }
 0x938   :  { %v5353_v60 = vsel %vm1928_vm6, %v1912_v19, %v1944_v51  ;;  %v1879_v61 = vadd.f32 %v1855_v57, %v1743_v52  ;;  %v2019_v62 = vld [vmem:[#allocation3 + $0x9b] sm:$0xff] }
 0x939   :  { %v1991_v63 = vld [vmem:[#allocation3 + $0x98] sm:$0xff]  ;;  %1976 = vst.msk [vmem:[#allocation3 + $0xa3] sm:$0xff] %vm41_vm2, %v5353_v60  ;;  %v2034_v0 = vpack.c.bf16 %v2019_v62, %v2018_v59 }
 0x93a   :  { %v2006_v1 = vpack.c.bf16 %v1991_v63, %v1990_v48  ;;  %v1897_v22 = vadd.f32 %v5274_v11, %v1879_v61  ;;  %v2216_v15 = vld [vmem:[#allocation3 + $0x96] sm:$0xff] }
 0x93b   :  { %4365 = vmatmul.msk.bf16.gmra.mxu3 %vm41_vm2, %v2034_v0 }
 0x93c   :  { %4381 = vmatmul.msk.bf16.gmra.mxu1 %vm41_vm2, %v2006_v1  ;;  %v1913_v3 = vadd.f32 %v1897_v22, %v5211_v35 }
 0x93d   :  { %v1745_v5 = vpop.f32.mrf.mxu2 }
 0x93e   :  { %vm1929_vm7 = vcmp.ge.f32.partialorder %v1913_v3, 0.0  ;;  %v1945_v6 = vmul.f32 0.2, %v1913_v3  ;;  %v1746_v10 = vadd.f32 %v1745_v5, %v1660_v56  ;;  %v1858_v9 = vpop.f32.mrf.mxu0  ;;  %v1662_v16 = vpop.f32.mrf.mxu1 }
 0x940   :  { %v5361_v12 = vsel %vm1929_vm7, %v1913_v3, %v1945_v6  ;;  %v1880_v13 = vadd.f32 %v1858_v9, %v1746_v10  ;;  %v2217_v55 = vld [vmem:[#allocation3 + $0x9e] sm:$0xff] }
 0x941   :  { %1977 = vst.msk [vmem:[#allocation3 + $0xab] sm:$0xff] %vm41_vm2, %v5361_v12  ;;  %v2232_v17 = vpack.c.bf16 %v2217_v55, %v2216_v15  ;;  %v2020_v27 = vld [vmem:[#allocation3 + $0xa3] sm:$0xff] }
 0x942   :  { %v1898_v33 = vadd.f32 %v5274_v11, %v1880_v13  ;;  %v1992_v30 = vld [vmem:[#allocation3 + $0xa0] sm:$0xff] }
 0x943   :  { %4397 = vmatmul.msk.bf16.gmra.mxu2 %vm41_vm2, %v2232_v17 }
 0x944   :  { %v1914_v35 = vadd.f32 %v1898_v33, %v5219_v44 }
 0x945   :  { %v1747_v21 = vpop.f32.mrf.mxu2 }
 0x946   :  { %vm1930_vm9 = vcmp.ge.f32.partialorder %v1914_v35, 0.0  ;;  %v1946_v23 = vmul.f32 0.2, %v1914_v35  ;;  %v1748_v24 = vadd.f32 %v1747_v21, %v1662_v16  ;;  %v1860_v26 = vpop.f32.mrf.mxu0  ;;  %v1665_v44 = vpop.f32.mrf.mxu1 }
 0x948   :  { %v5368_v20 = vsel %vm1930_vm9, %v1914_v35, %v1946_v23  ;;  %v1881_v28 = vadd.f32 %v1860_v26, %v1748_v24  ;;  %v2021_v29 = vld [vmem:[#allocation3 + $0xab] sm:$0xff] }
 0x949   :  { %v1993_v8 = vld [vmem:[#allocation3 + $0xa8] sm:$0xff]  ;;  %1978 = vst.msk [vmem:[#allocation3 + $0xb3] sm:$0xff] %vm41_vm2, %v5368_v20  ;;  %v2035_v47 = vpack.c.bf16 %v2021_v29, %v2020_v27  ;;  %v4638_v29 = vld [vmem:[%s6027_s0 + $0x220] sm:$0xff] }
 0x94a   :  { %v2007_v31 = vpack.c.bf16 %v1993_v8, %v1992_v30  ;;  %v1899_v32 = vadd.f32 %v5274_v11, %v1881_v28  ;;  %v2218_v50 = vld [vmem:[#allocation3 + $0xa6] sm:$0xff]  ;;  %2619 = vmatpush.bf16.msrb.mxu3 %v4638_v29 }
 0x94b   :  { %4366 = vmatmul.msk.bf16.gmra.mxu3 %vm41_vm2, %v2035_v47  ;;  %v4640_v47 = vld [vmem:[%s6027_s0 + $0x230] sm:$0xff] }
 0x94c   :  { %4382 = vmatmul.msk.bf16.gmra.mxu1 %vm41_vm2, %v2007_v31  ;;  %v1915_v39 = vadd.f32 %v1899_v32, %v5226_v58  ;;  %v4643_v58 = vld [vmem:[%s6027_s0 + $0x248] sm:$0xff]  ;;  %2534 = vmatpush.bf16.msrb.mxu0 %v4640_v47 }
 0x94d   :  { %v1750_v42 = vpop.f32.mrf.mxu2  ;;  %2731 = vmatpush.bf16.msrb.mxu1 %v4643_v58  ;;  %v4642_v58 = vld [vmem:[%s6027_s0 + $0x240] sm:$0xff] }
 0x94e   :  { %vm1931_vm10 = vcmp.ge.f32.partialorder %v1915_v39, 0.0  ;;  %v1947_v54 = vmul.f32 0.2, %v1915_v39  ;;  %v1751_v43 = vadd.f32 %v1750_v42, %v1665_v44  ;;  %v1863_v45 = vpop.f32.mrf.mxu0  ;;  %v1667_v59 = vpop.f32.mrf.mxu1  ;;  %v5417_v44 = vld [vmem:[%s6028_s1 + $0xd] ss:$0 sm:$0xff] }
 0x950   :  { %v5382_v46 = vsel %vm1931_vm10, %v1915_v39, %v1947_v54  ;;  %v1882_v19 = vadd.f32 %v1863_v45, %v1751_v43  ;;  %v2219_v51 = vld [vmem:[#allocation3 + $0xae] sm:$0xff] }
 0x951   :  { %1979 = vst.msk [vmem:[#allocation3 + $0xbb] sm:$0xff] %vm41_vm2, %v5382_v46  ;;  %v2233_v52 = vpack.c.bf16 %v2219_v51, %v2218_v50  ;;  %v2022_v0 = vld [vmem:[#allocation3 + $0xb3] sm:$0xff]  ;;  %2732 = vmatpush.bf16.msrb.mxu1 %v4642_v58 }
 0x952   :  { %v1900_v56 = vadd.f32 %v5274_v11, %v1882_v19  ;;  %v1994_v5 = vld [vmem:[#allocation3 + $0xb0] sm:$0xff] }
 0x953   :  { %4398 = vmatmul.msk.bf16.gmra.mxu2 %vm41_vm2, %v2233_v52 }
 0x954   :  { %v1916_v57 = vadd.f32 %v1900_v56, %v5232_v4 }
 0x955   :  { %v1752_v61 = vpop.f32.mrf.mxu2 }
 0x956   :  { %vm1932_vm11 = vcmp.ge.f32.partialorder %v1916_v57, 0.0  ;;  %v1948_v62 = vmul.f32 0.2, %v1916_v57  ;;  %v1753_v48 = vadd.f32 %v1752_v61, %v1667_v59  ;;  %v1865_v63 = vpop.f32.mrf.mxu0 }
 0x958   :  { %v5392_v1 = vsel %vm1932_vm11, %v1916_v57, %v1948_v62  ;;  %v1883_v22 = vadd.f32 %v1865_v63, %v1753_v48  ;;  %v2023_v3 = vld [vmem:[#allocation3 + $0xbb] sm:$0xff]  ;;  %v2435_v48 = vld [vmem:[#allocation3 + $0x12] sm:$0xff] }
 0x959   :  { %v1995_v6 = vld [vmem:[#allocation3 + $0xb8] sm:$0xff]  ;;  %1980 = vst.msk [vmem:[#allocation3 + $0xc3] sm:$0xff] %vm41_vm2, %v5392_v1  ;;  %v2036_v10 = vpack.c.bf16 %v2023_v3, %v2022_v0 }
 0x95a   :  { %v2008_v9 = vpack.c.bf16 %v1995_v6, %v1994_v5  ;;  %v1901_v4 = vadd.f32 %v5274_v11, %v1883_v22  ;;  %v2220_v16 = vld [vmem:[#allocation3 + $0xb6] sm:$0xff] }
 0x95b   :  { %4367 = vmatmul.msk.bf16.gmra.mxu3 %vm41_vm2, %v2036_v10 }
 0x95c   :  { %4383 = vmatmul.msk.bf16.gmra.mxu1 %vm41_vm2, %v2008_v9  ;;  %v1917_v13 = vadd.f32 %v1901_v4, %v5239_v14 }
 0x95e   :  { %vm1933_vm8 = vcmp.ge.f32.partialorder %v1917_v13, 0.0  ;;  %v1949_v15 = vmul.f32 0.2, %v1917_v13 }
 0x960   :  { %v5400_v55 = vsel %vm1933_vm8, %v1917_v13, %v1949_v15  ;;  %v2221_v17 = vld [vmem:[#allocation3 + $0xbe] sm:$0xff] }
 0x961   :  { %1981 = vst.msk [vmem:[#allocation3 + $0xcb] sm:$0xff] %vm41_vm2, %v5400_v55  ;;  %v2234_v33 = vpack.c.bf16 %v2221_v17, %v2220_v16  ;;  %v2024_v35 = vld [vmem:[#allocation3 + $0xc3] sm:$0xff] }
 0x962   :  { %v1996_v21 = vld [vmem:[#allocation3 + $0xc0] sm:$0xff] }
 0x963   :  { %4399 = vmatmul.msk.bf16.gmra.mxu2 %vm41_vm2, %v2234_v33 }
 0x968   :  { %v2025_v11 = vld [vmem:[#allocation3 + $0xcb] sm:$0xff] }
 0x969   :  { %v1997_v23 = vld [vmem:[#allocation3 + $0xc8] sm:$0xff]  ;;  %v2037_v24 = vpack.c.bf16 %v2025_v11, %v2024_v35 }
 0x96a   :  { %v2009_v26 = vpack.c.bf16 %v1997_v23, %v1996_v21  ;;  %v2222_v14 = vld [vmem:[#allocation3 + $0xc6] sm:$0xff]  ;;  %v2223_v27 = vld [vmem:[#allocation3 + $0xce] sm:$0xff] }
 0x96b   :  { %4368 = vmatmul.msk.bf16.gmra.mxu3 %vm41_vm2, %v2037_v24  ;;  %v2235_v28 = vpack.c.bf16 %v2223_v27, %v2222_v14 }
 0x96c   :  { %4384 = vmatmul.msk.bf16.gmra.mxu1 %vm41_vm2, %v2009_v26 }
 0x973   :  { %4400 = vmatmul.msk.bf16.gmra.mxu2 %vm41_vm2, %v2235_v28 }
 0x979   :  { %v2168_v30 = vpop.f32.mrf.mxu1 }
 0x97e   :  { %v2083_v8 = vpop.f32.mrf.mxu3 }
 0x97f   :  { %v2169_v32 = vadd.f32 %v2168_v30, %v2083_v8 }
 0x981   :  { %v2170_v31 = vpop.f32.mrf.mxu1 }
 0x986   :  { %v2085_v38 = vpop.f32.mrf.mxu3  ;;  %v2281_v40 = vpop.f32.mrf.mxu2 }
 0x987   :  { %v2321_v39 = vadd.f32 %v2281_v40, %v2169_v32  ;;  %v2171_v45 = vadd.f32 %v2170_v31, %v2085_v38 }
 0x989   :  { %v2173_v42 = vpop.f32.mrf.mxu1  ;;  %v2339_v54 = vadd.f32 %v5417_v44, %v2321_v39 }
 0x98b   :  { %v2355_v43 = vadd.f32 %v2339_v54, %v5281_v41 }
 0x98d   :  { %vm2371_vm12 = vcmp.ge.f32.partialorder %v2355_v43, 0.0  ;;  %v2387_v19 = vmul.f32 0.2, %v2355_v43 }
 0x98e   :  { %v2088_v50 = vpop.f32.mrf.mxu3  ;;  %v2283_v51 = vpop.f32.mrf.mxu2 }
 0x98f   :  { %v5421_v52 = vsel %vm2371_vm12, %v2355_v43, %v2387_v19  ;;  %v2322_v56 = vadd.f32 %v2283_v51, %v2171_v45  ;;  %v2174_v61 = vadd.f32 %v2173_v42, %v2088_v50 }
 0x990   :  { %2419 = vst.msk [vmem:[#allocation3 + $0x1b] sm:$0xff] %vm41_vm2, %v5421_v52 }
 0x991   :  { %v2175_v57 = vpop.f32.mrf.mxu1  ;;  %v2340_v59 = vadd.f32 %v5417_v44, %v2322_v56 }
 0x993   :  { %v2356_v41 = vadd.f32 %v2340_v59, %v5287_v36 }
 0x995   :  { %vm2372_vm13 = vcmp.ge.f32.partialorder %v2356_v41, 0.0  ;;  %v2388_v62 = vmul.f32 0.2, %v2356_v41 }
 0x996   :  { %v2090_v63 = vpop.f32.mrf.mxu3  ;;  %v2286_v0 = vpop.f32.mrf.mxu2 }
 0x997   :  { %v5430_v22 = vsel %vm2372_vm13, %v2356_v41, %v2388_v62  ;;  %v2323_v3 = vadd.f32 %v2286_v0, %v2174_v61  ;;  %v2436_v5 = vld [vmem:[#allocation3 + $0x1a] sm:$0xff]  ;;  %v2176_v4 = vadd.f32 %v2175_v57, %v2090_v63 }
 0x998   :  { %2420 = vst.msk [vmem:[#allocation3 + $0x23] sm:$0xff] %vm41_vm2, %v5430_v22  ;;  %v2455_v10 = vpack.c.bf16 %v2436_v5, %v2435_v48  ;;  %v2463_v35 = vld [vmem:[#allocation3 + $0x1b] sm:$0xff] }
 0x999   :  { %v2178_v6 = vpop.f32.mrf.mxu1  ;;  %v2341_v9 = vadd.f32 %v5417_v44, %v2323_v3 }
 0x99a   :  { %4425 = vmatmul.msk.bf16.vlgmr.msrb.gmra.mxu3 %vm41_vm2, %v2455_v10 }
 0x99b   :  { %v2357_v36 = vadd.f32 %v2341_v9, %v5293_v49 }
 0x99d   :  { %vm2373_vm14 = vcmp.ge.f32.partialorder %v2357_v36, 0.0  ;;  %v2389_v13 = vmul.f32 0.2, %v2357_v36 }
 0x99e   :  { %v2093_v15 = vpop.f32.mrf.mxu3  ;;  %v2288_v16 = vpop.f32.mrf.mxu2 }
 0x99f   :  { %v5437_v17 = vsel %vm2373_vm14, %v2357_v36, %v2389_v13  ;;  %v2324_v33 = vadd.f32 %v2288_v16, %v2176_v4  ;;  %v2464_v11 = vld [vmem:[#allocation3 + $0x23] sm:$0xff]  ;;  %v2179_v26 = vadd.f32 %v2178_v6, %v2093_v15 }
 0x9a0   :  { %2421 = vst.msk [vmem:[#allocation3 + $0x2b] sm:$0xff] %vm41_vm2, %v5437_v17  ;;  %v2483_v23 = vpack.c.bf16 %v2464_v11, %v2463_v35  ;;  %v2437_v8 = vld [vmem:[#allocation3 + $0x22] sm:$0xff] }
 0x9a1   :  { %v2180_v21 = vpop.f32.mrf.mxu1  ;;  %v2342_v24 = vadd.f32 %v5417_v44, %v2324_v33 }
 0x9a2   :  { %4409 = vmatmul.msk.bf16.vlgmr.msrb.gmra.mxu0 %vm41_vm2, %v2483_v23 }
 0x9a3   :  { %v2358_v49 = vadd.f32 %v2342_v24, %v5301_v2 }
 0x9a5   :  { %vm2374_vm15 = vcmp.ge.f32.partialorder %v2358_v49, 0.0  ;;  %v2390_v14 = vmul.f32 0.2, %v2358_v49 }
 0x9a6   :  { %v2095_v27 = vpop.f32.mrf.mxu3  ;;  %v2291_v28 = vpop.f32.mrf.mxu2 }
 0x9a7   :  { %v5444_v29 = vsel %vm2374_vm15, %v2358_v49, %v2390_v14  ;;  %v2325_v30 = vadd.f32 %v2291_v28, %v2179_v26  ;;  %v2438_v47 = vld [vmem:[#allocation3 + $0x2a] sm:$0xff]  ;;  %v2181_v40 = vadd.f32 %v2180_v21, %v2095_v27 }
 0x9a8   :  { %2422 = vst.msk [vmem:[#allocation3 + $0x33] sm:$0xff] %vm41_vm2, %v5444_v29  ;;  %v2456_v32 = vpack.c.bf16 %v2438_v47, %v2437_v8  ;;  %v2465_v43 = vld [vmem:[#allocation3 + $0x2b] sm:$0xff] }
 0x9a9   :  { %v2183_v31 = vpop.f32.mrf.mxu1  ;;  %v2343_v38 = vadd.f32 %v5417_v44, %v2325_v30  ;;  %v2661_v51 = vld [vmem:[#allocation3 + $0x24] sm:$0xff] }
 0x9aa   :  { %4426 = vmatmul.msk.bf16.gmra.mxu3 %vm41_vm2, %v2456_v32 }
 0x9ab   :  { %v2359_v2 = vadd.f32 %v2343_v38, %v5308_v18 }
 0x9ad   :  { %vm2375_vm0 = vcmp.ge.f32.partialorder %v2359_v2, 0.0  ;;  %v2391_v39 = vmul.f32 0.2, %v2359_v2 }
 0x9ae   :  { %v2098_v42 = vpop.f32.mrf.mxu3  ;;  %v2293_v54 = vpop.f32.mrf.mxu2 }
 0x9af   :  { %v5451_v45 = vsel %vm2375_vm0, %v2359_v2, %v2391_v39  ;;  %v2326_v19 = vadd.f32 %v2293_v54, %v2181_v40  ;;  %v2466_v50 = vld [vmem:[#allocation3 + $0x33] sm:$0xff]  ;;  %v2184_v61 = vadd.f32 %v2183_v31, %v2098_v42 }
 0x9b0   :  { %v2662_v56 = vld [vmem:[#allocation3 + $0x2c] sm:$0xff]  ;;  %2423 = vst.msk [vmem:[#allocation3 + $0x3b] sm:$0xff] %vm41_vm2, %v5451_v45  ;;  %v2484_v57 = vpack.c.bf16 %v2466_v50, %v2465_v43 }
 0x9b1   :  { %v2185_v58 = vpop.f32.mrf.mxu1  ;;  %v2681_v59 = vpack.c.bf16 %v2662_v56, %v2661_v51  ;;  %v2344_v18 = vadd.f32 %v5417_v44, %v2326_v19  ;;  %v2439_v5 = vld [vmem:[#allocation3 + $0x32] sm:$0xff] }
 0x9b2   :  { %4410 = vmatmul.msk.bf16.gmra.mxu0 %vm41_vm2, %v2484_v57 }
 0x9b3   :  { %4441 = vmatmul.msk.bf16.vlgmr.msrb.gmra.mxu1 %vm41_vm2, %v2681_v59  ;;  %v2360_v41 = vadd.f32 %v2344_v18, %v5316_v37 }
 0x9b5   :  { %vm2376_vm1 = vcmp.ge.f32.partialorder %v2360_v41, 0.0  ;;  %v2392_v62 = vmul.f32 0.2, %v2360_v41 }
 0x9b6   :  { %v2100_v48 = vpop.f32.mrf.mxu3  ;;  %v2296_v63 = vpop.f32.mrf.mxu2 }
 0x9b7   :  { %v5459_v0 = vsel %vm2376_vm1, %v2360_v41, %v2392_v62  ;;  %v2327_v3 = vadd.f32 %v2296_v63, %v2184_v61  ;;  %v2440_v6 = vld [vmem:[#allocation3 + $0x3a] sm:$0xff]  ;;  %v2186_v4 = vadd.f32 %v2185_v58, %v2100_v48 }
 0x9b8   :  { %2424 = vst.msk [vmem:[#allocation3 + $0x43] sm:$0xff] %vm41_vm2, %v5459_v0  ;;  %v2457_v9 = vpack.c.bf16 %v2440_v6, %v2439_v5  ;;  %v2467_v33 = vld [vmem:[#allocation3 + $0x3b] sm:$0xff]  ;;  %v2443_v5 = vld [vmem:[#allocation3 + $0x8a] sm:$0xff] }
 0x9b9   :  { %v2188_v10 = vpop.f32.mrf.mxu1  ;;  %v2345_v36 = vadd.f32 %v5417_v44, %v2327_v3  ;;  %v2663_v23 = vld [vmem:[#allocation3 + $0x34] sm:$0xff] }
 0x9ba   :  { %4427 = vmatmul.msk.bf16.gmra.mxu3 %vm41_vm2, %v2457_v9 }
 0x9bb   :  { %v2361_v37 = vadd.f32 %v2345_v36, %v5323_v53 }
 0x9bd   :  { %vm2377_vm3 = vcmp.ge.f32.partialorder %v2361_v37, 0.0  ;;  %v2393_v13 = vmul.f32 0.2, %v2361_v37 }
 0x9be   :  { %v2103_v15 = vpop.f32.mrf.mxu3  ;;  %v2298_v16 = vpop.f32.mrf.mxu2 }
 0x9bf   :  { %v5466_v35 = vsel %vm2377_vm3, %v2361_v37, %v2393_v13  ;;  %v2328_v11 = vadd.f32 %v2298_v16, %v2186_v4  ;;  %v2468_v21 = vld [vmem:[#allocation3 + $0x43] sm:$0xff]  ;;  %v2189_v28 = vadd.f32 %v2188_v10, %v2103_v15 }
 0x9c0   :  { %v2664_v24 = vld [vmem:[#allocation3 + $0x3c] sm:$0xff]  ;;  %2425 = vst.msk [vmem:[#allocation3 + $0x4b] sm:$0xff] %vm41_vm2, %v5466_v35  ;;  %v2485_v26 = vpack.c.bf16 %v2468_v21, %v2467_v33 }
 0x9c1   :  { %v2190_v49 = vpop.f32.mrf.mxu1  ;;  %v2682_v14 = vpack.c.bf16 %v2664_v24, %v2663_v23  ;;  %v2346_v53 = vadd.f32 %v5417_v44, %v2328_v11  ;;  %v2441_v38 = vld [vmem:[#allocation3 + $0x42] sm:$0xff] }
 0x9c2   :  { %4411 = vmatmul.msk.bf16.gmra.mxu0 %vm41_vm2, %v2485_v26  ;;  %v2668_v21 = vld [vmem:[#allocation3 + $0x5c] sm:$0xff] }
 0x9c3   :  { %4442 = vmatmul.msk.bf16.gmra.mxu1 %vm41_vm2, %v2682_v14  ;;  %v2362_v27 = vadd.f32 %v2346_v53, %v5331_v7 }
 0x9c5   :  { %vm2378_vm4 = vcmp.ge.f32.partialorder %v2362_v27, 0.0  ;;  %v2394_v30 = vmul.f32 0.2, %v2362_v27 }
 0x9c6   :  { %v2105_v8 = vpop.f32.mrf.mxu3  ;;  %v2301_v47 = vpop.f32.mrf.mxu2 }
 0x9c7   :  { %v5474_v31 = vsel %vm2378_vm4, %v2362_v27, %v2394_v30  ;;  %v2329_v32 = vadd.f32 %v2301_v47, %v2189_v28  ;;  %v2442_v2 = vld [vmem:[#allocation3 + $0x4a] sm:$0xff]  ;;  %v2191_v54 = vadd.f32 %v2190_v49, %v2105_v8 }
 0x9c8   :  { %2426 = vst.msk [vmem:[#allocation3 + $0x53] sm:$0xff] %vm41_vm2, %v5474_v31  ;;  %v2458_v40 = vpack.c.bf16 %v2442_v2, %v2441_v38  ;;  %v2469_v51 = vld [vmem:[#allocation3 + $0x4b] sm:$0xff] }
 0x9c9   :  { %v2347_v39 = vadd.f32 %v5417_v44, %v2329_v32  ;;  %v2193_v42 = vpop.f32.mrf.mxu1  ;;  %v2665_v59 = vld [vmem:[#allocation3 + $0x44] sm:$0xff] }
 0x9ca   :  { %4428 = vmatmul.msk.bf16.gmra.mxu3 %vm41_vm2, %v2458_v40 }
 0x9cb   :  { %v2363_v7 = vadd.f32 %v2347_v39, %v5338_v25 }
 0x9cd   :  { %vm2379_vm5 = vcmp.ge.f32.partialorder %v2363_v7, 0.0  ;;  %v2395_v43 = vmul.f32 0.2, %v2363_v7 }
 0x9ce   :  { %v2108_v19 = vpop.f32.mrf.mxu3  ;;  %v2303_v50 = vpop.f32.mrf.mxu2 }
 0x9cf   :  { %v5481_v56 = vsel %vm2379_vm5, %v2363_v7, %v2395_v43  ;;  %v2330_v58 = vadd.f32 %v2303_v50, %v2191_v54  ;;  %v2470_v57 = vld [vmem:[#allocation3 + $0x53] sm:$0xff]  ;;  %v2194_v63 = vadd.f32 %v2193_v42, %v2108_v19 }
 0x9d0   :  { %v2666_v18 = vld [vmem:[#allocation3 + $0x4c] sm:$0xff]  ;;  %2427 = vst.msk [vmem:[#allocation3 + $0x93] sm:$0xff] %vm41_vm2, %v5481_v56  ;;  %v2486_v41 = vpack.c.bf16 %v2470_v57, %v2469_v51  ;;  %v2667_v11 = vld [vmem:[#allocation3 + $0x54] sm:$0xff] }
 0x9d1   :  { %v2683_v61 = vpack.c.bf16 %v2666_v18, %v2665_v59  ;;  %v2348_v62 = vadd.f32 %v5417_v44, %v2330_v58  ;;  %v2195_v48 = vpop.f32.mrf.mxu1  ;;  %v2684_v28 = vpack.c.bf16 %v2668_v21, %v2667_v11 }
 0x9d2   :  { %4412 = vmatmul.msk.bf16.gmra.mxu0 %vm41_vm2, %v2486_v41 }
 0x9d3   :  { %4443 = vmatmul.msk.bf16.gmra.mxu1 %vm41_vm2, %v2683_v61  ;;  %v2364_v25 = vadd.f32 %v2348_v62, %v5346_v34 }
 0x9d5   :  { %vm2380_vm6 = vcmp.ge.f32.partialorder %v2364_v25, 0.0  ;;  %v2396_v3 = vmul.f32 0.2, %v2364_v25 }
 0x9d6   :  { %v2110_v6 = vpop.f32.mrf.mxu3  ;;  %v2306_v10 = vpop.f32.mrf.mxu2 }
 0x9d7   :  { %v5489_v9 = vsel %vm2380_vm6, %v2364_v25, %v2396_v3  ;;  %v2331_v36 = vadd.f32 %v2306_v10, %v2194_v63  ;;  %v2444_v37 = vld [vmem:[#allocation3 + $0x92] sm:$0xff]  ;;  %v2196_v15 = vadd.f32 %v2195_v48, %v2110_v6 }
 0x9d8   :  { %2428 = vst.msk [vmem:[#allocation3 + $0x9b] sm:$0xff] %vm41_vm2, %v5489_v9  ;;  %v2459_v4 = vpack.c.bf16 %v2444_v37, %v2443_v5  ;;  %v2471_v14 = vld [vmem:[#allocation3 + $0x93] sm:$0xff] }
 0x9d9   :  { %v2349_v13 = vadd.f32 %v5417_v44, %v2331_v36  ;;  %v2198_v33 = vpop.f32.mrf.mxu1 }
 0x9da   :  { %4429 = vmatmul.msk.bf16.gmra.mxu3 %vm41_vm2, %v2459_v4 }
 0x9db   :  { %v2365_v34 = vadd.f32 %v2349_v13, %v5353_v60 }
 0x9dd   :  { %vm2381_vm7 = vcmp.ge.f32.partialorder %v2365_v34, 0.0  ;;  %v2397_v16 = vmul.f32 0.2, %v2365_v34 }
 0x9de   :  { %v2113_v23 = vpop.f32.mrf.mxu3  ;;  %v2308_v24 = vpop.f32.mrf.mxu2 }
 0x9df   :  { %v5496_v49 = vsel %vm2381_vm7, %v2365_v34, %v2397_v16  ;;  %v2332_v26 = vadd.f32 %v2308_v24, %v2196_v15  ;;  %v2472_v53 = vld [vmem:[#allocation3 + $0x9b] sm:$0xff]  ;;  %v2199_v8 = vadd.f32 %v2198_v33, %v2113_v23 }
 0x9e0   :  { %2429 = vst.msk [vmem:[#allocation3 + $0xa3] sm:$0xff] %vm41_vm2, %v5496_v49  ;;  %v2487_v27 = vpack.c.bf16 %v2472_v53, %v2471_v14  ;;  %v2445_v39 = vld [vmem:[#allocation3 + $0x9a] sm:$0xff] }
 0x9e1   :  { %v2350_v60 = vadd.f32 %v5417_v44, %v2332_v26  ;;  %v2200_v7 = vpop.f32.mrf.mxu1 }
 0x9e2   :  { %4413 = vmatmul.msk.bf16.gmra.mxu0 %vm41_vm2, %v2487_v27 }
 0x9e3   :  { %4444 = vmatmul.msk.bf16.gmra.mxu1 %vm41_vm2, %v2684_v28  ;;  %v2366_v30 = vadd.f32 %v2350_v60, %v5361_v12 }
 0x9e5   :  { %vm2382_vm9 = vcmp.ge.f32.partialorder %v2366_v30, 0.0  ;;  %v2398_v47 = vmul.f32 0.2, %v2366_v30 }
 0x9e6   :  { %v2115_v32 = vpop.f32.mrf.mxu3  ;;  %v2311_v38 = vpop.f32.mrf.mxu2 }
 0x9e7   :  { %v5504_v2 = vsel %vm2382_vm9, %v2366_v30, %v2398_v47  ;;  %v2333_v40 = vadd.f32 %v2311_v38, %v2199_v8  ;;  %v2446_v42 = vld [vmem:[#allocation3 + $0xa2] sm:$0xff]  ;;  %v2201_v19 = vadd.f32 %v2200_v7, %v2115_v32 }
 0x9e8   :  { %2430 = vst.msk [vmem:[#allocation3 + $0xab] sm:$0xff] %vm41_vm2, %v5504_v2  ;;  %v2460_v54 = vpack.c.bf16 %v2446_v42, %v2445_v39  ;;  %v2473_v58 = vld [vmem:[#allocation3 + $0xa3] sm:$0xff]  ;;  %v4645_v42 = vld [vmem:[%s6027_s0 + $0x258] sm:$0xff] }
 0x9e9   :  { %v2351_v43 = vadd.f32 %v5417_v44, %v2333_v40  ;;  %v2669_v41 = vld [vmem:[#allocation3 + $0x9c] sm:$0xff]  ;;  %3071 = vmatpush.bf16.msra.mxu0 %v4645_v42 }
 0x9ea   :  { %4430 = vmatmul.msk.bf16.gmra.mxu3 %vm41_vm2, %v2460_v54 }
 0x9eb   :  { %v2367_v12 = vadd.f32 %v2351_v43, %v5368_v20  ;;  %v2203_v20 = vpop.f32.mrf.mxu1 }
 0x9ed   :  { %vm2383_vm10 = vcmp.ge.f32.partialorder %v2367_v12, 0.0  ;;  %v2399_v50 = vmul.f32 0.2, %v2367_v12 }
 0x9ee   :  { %v2313_v51 = vpop.f32.mrf.mxu2  ;;  %v2118_v62 = vpop.f32.mrf.mxu3 }
 0x9ef   :  { %v5511_v57 = vsel %vm2383_vm10, %v2367_v12, %v2399_v50  ;;  %v2334_v59 = vadd.f32 %v2313_v51, %v2201_v19  ;;  %v2474_v18 = vld [vmem:[#allocation3 + $0xab] sm:$0xff]  ;;  %v2204_v5 = vadd.f32 %v2203_v20, %v2118_v62 }
 0x9f0   :  { %v2670_v61 = vld [vmem:[#allocation3 + $0xa4] sm:$0xff]  ;;  %2431 = vst.msk [vmem:[#allocation3 + $0xb3] sm:$0xff] %vm41_vm2, %v5511_v57  ;;  %v2488_v25 = vpack.c.bf16 %v2474_v18, %v2473_v58  ;;  %v4644_v51 = vld [vmem:[%s6027_s0 + $0x250] sm:$0xff] }
 0x9f1   :  { %v2685_v48 = vpack.c.bf16 %v2670_v61, %v2669_v41  ;;  %v2352_v63 = vadd.f32 %v5417_v44, %v2334_v59  ;;  %v2447_v4 = vld [vmem:[#allocation3 + $0xaa] sm:$0xff]  ;;  %3072 = vmatpush.bf16.msra.mxu0 %v4644_v51  ;;  %v2888_v58 = vld [vmem:[#allocation3] sm:$0xff]  ;;  %v2676_v61 = vld [vmem:[#allocation3 + $0xd4] sm:$0xff] }
 0x9f2   :  { %4414 = vmatmul.msk.bf16.gmra.mxu0 %vm41_vm2, %v2488_v25  ;;  %v2889_v59 = vld [vmem:[#allocation3 + $0x8] sm:$0xff]  ;;  %v4648_v51 = vld [vmem:[%s6027_s0 + $0x270] sm:$0xff] }
 0x9f3   :  { %4445 = vmatmul.msk.bf16.gmra.mxu1 %vm41_vm2, %v2685_v48  ;;  %v2368_v3 = vadd.f32 %v2352_v63, %v5382_v46  ;;  %v2205_v33 = vpop.f32.mrf.mxu1  ;;  %v2908_v62 = vpack.c.bf16 %v2889_v59, %v2888_v58 }
 0x9f5   :  { %vm2384_vm11 = vcmp.ge.f32.partialorder %v2368_v3, 0.0  ;;  %v2400_v6 = vmul.f32 0.2, %v2368_v3 }
 0x9f6   :  { %v2316_v10 = vpop.f32.mrf.mxu2  ;;  %v2120_v16 = vpop.f32.mrf.mxu3 }
 0x9f7   :  { %v5519_v36 = vsel %vm2384_vm11, %v2368_v3, %v2400_v6  ;;  %v2335_v37 = vadd.f32 %v2316_v10, %v2204_v5  ;;  %v2448_v13 = vld [vmem:[#allocation3 + $0xb2] sm:$0xff]  ;;  %v2206_v11 = vadd.f32 %v2205_v33, %v2120_v16  ;;  %v4646_v3 = vld [vmem:[%s6027_s0 + $0x260] sm:$0xff]  ;;  %v5561_v10 = vld [vmem:[%s6028_s1 + $0xe] ss:$0 sm:$0xff] }
 0x9f8   :  { %2432 = vst.msk [vmem:[#allocation3 + $0xbb] sm:$0xff] %vm41_vm2, %v5519_v36  ;;  %v2461_v34 = vpack.c.bf16 %v2448_v13, %v2447_v4  ;;  %v2475_v24 = vld [vmem:[#allocation3 + $0xb3] sm:$0xff] }
 0x9f9   :  { %v2353_v15 = vadd.f32 %v5417_v44, %v2335_v37  ;;  %v2671_v27 = vld [vmem:[#allocation3 + $0xac] sm:$0xff] }
 0x9fa   :  { %4431 = vmatmul.msk.bf16.gmra.mxu3 %vm41_vm2, %v2461_v34 }
 0x9fb   :  { %v2369_v46 = vadd.f32 %v2353_v15, %v5392_v1 }
 0x9fd   :  { %vm2385_vm8 = vcmp.ge.f32.partialorder %v2369_v46, 0.0  ;;  %v2401_v21 = vmul.f32 0.2, %v2369_v46 }
 0x9fe   :  { %v2318_v23 = vpop.f32.mrf.mxu2 }
 0x9ff   :  { %v5526_v26 = vsel %vm2385_vm8, %v2369_v46, %v2401_v21  ;;  %v2336_v14 = vadd.f32 %v2318_v23, %v2206_v11  ;;  %v2476_v53 = vld [vmem:[#allocation3 + $0xbb] sm:$0xff] }
 0xa00   :  { %v2672_v28 = vld [vmem:[#allocation3 + $0xb4] sm:$0xff]  ;;  %2433 = vst.msk [vmem:[#allocation3 + $0xc3] sm:$0xff] %vm41_vm2, %v5526_v26  ;;  %v2489_v60 = vpack.c.bf16 %v2476_v53, %v2475_v24 }
 0xa01   :  { %v2686_v30 = vpack.c.bf16 %v2672_v28, %v2671_v27  ;;  %v2354_v8 = vadd.f32 %v5417_v44, %v2336_v14  ;;  %v2449_v38 = vld [vmem:[#allocation3 + $0xba] sm:$0xff]  ;;  %v4647_v44 = vld [vmem:[%s6027_s0 + $0x268] sm:$0xff] }
 0xa02   :  { %4415 = vmatmul.msk.bf16.gmra.mxu0 %vm41_vm2, %v2489_v60  ;;  %2986 = vmatpush.bf16.msra.mxu2 %v4647_v44  ;;  %v2890_v60 = vld [vmem:[#allocation3 + $0x10] sm:$0xff] }
 0xa03   :  { %4446 = vmatmul.msk.bf16.gmra.mxu1 %vm41_vm2, %v2686_v30  ;;  %v2370_v1 = vadd.f32 %v2354_v8, %v5400_v55  ;;  %v4649_v55 = vld [vmem:[%s6027_s0 + $0x278] sm:$0xff] }
 0xa04   :  { %3184 = vmatpush.bf16.msra.mxu3 %v4649_v55 }
 0xa05   :  { %vm2386_vm12 = vcmp.ge.f32.partialorder %v2370_v1, 0.0  ;;  %v2402_v47 = vmul.f32 0.2, %v2370_v1 }
 0xa06   :  { %2987 = vmatpush.bf16.msra.mxu2 %v4646_v3 }
 0xa07   :  { %v5534_v32 = vsel %vm2386_vm12, %v2370_v1, %v2402_v47  ;;  %v2450_v40 = vld [vmem:[#allocation3 + $0xc2] sm:$0xff] }
 0xa08   :  { %2434 = vst.msk [vmem:[#allocation3 + $0xcb] sm:$0xff] %vm41_vm2, %v5534_v32  ;;  %v2462_v39 = vpack.c.bf16 %v2450_v40, %v2449_v38  ;;  %v2477_v7 = vld [vmem:[#allocation3 + $0xc3] sm:$0xff]  ;;  %3185 = vmatpush.bf16.msra.mxu3 %v4648_v51 }
 0xa09   :  { %v2673_v43 = vld [vmem:[#allocation3 + $0xbc] sm:$0xff] }
 0xa0a   :  { %4432 = vmatmul.msk.bf16.gmra.mxu3 %vm41_vm2, %v2462_v39 }
 0xa0f   :  { %v2478_v54 = vld [vmem:[#allocation3 + $0xcb] sm:$0xff] }
 0xa10   :  { %v2674_v12 = vld [vmem:[#allocation3 + $0xc4] sm:$0xff]  ;;  %v2490_v19 = vpack.c.bf16 %v2478_v54, %v2477_v7  ;;  %v2675_v41 = vld [vmem:[#allocation3 + $0xcc] sm:$0xff] }
 0xa11   :  { %v2687_v50 = vpack.c.bf16 %v2674_v12, %v2673_v43  ;;  %v2688_v48 = vpack.c.bf16 %v2676_v61, %v2675_v41 }
 0xa12   :  { %4416 = vmatmul.msk.bf16.gmra.mxu0 %vm41_vm2, %v2490_v19 }
 0xa13   :  { %4447 = vmatmul.msk.bf16.gmra.mxu1 %vm41_vm2, %v2687_v50 }
 0xa1d   :  { %v2621_v18 = vpop.f32.mrf.mxu3 }
 0xa1f   :  { %v2536_v25 = vpop.f32.mrf.mxu0 }
 0xa20   :  { %v2622_v6 = vadd.f32 %v2621_v18, %v2536_v25 }
 0xa22   :  { %4473 = vmatmul.msk.bf16.vlgmr.msra.gmra.mxu0 %vm41_vm2, %v2908_v62 }
 0xa23   :  { %4448 = vmatmul.msk.bf16.gmra.mxu1 %vm41_vm2, %v2688_v48 }
 0xa25   :  { %v2623_v63 = vpop.f32.mrf.mxu3 }
 0xa27   :  { %v2538_v20 = vpop.f32.mrf.mxu0 }
 0xa28   :  { %v2624_v46 = vadd.f32 %v2623_v63, %v2538_v20 }
 0xa2d   :  { %v2626_v5 = vpop.f32.mrf.mxu3 }
 0xa2f   :  { %v2541_v37 = vpop.f32.mrf.mxu0 }
 0xa30   :  { %v2734_v4 = vpop.f32.mrf.mxu1  ;;  %v2627_v28 = vadd.f32 %v2626_v5, %v2541_v37 }
 0xa31   :  { %v2774_v13 = vadd.f32 %v2734_v4, %v2622_v6 }
 0xa33   :  { %v2792_v34 = vadd.f32 %v5561_v10, %v2774_v13 }
 0xa35   :  { %v2808_v15 = vadd.f32 %v2792_v34, %v5421_v52  ;;  %v2628_v16 = vpop.f32.mrf.mxu3 }
 0xa37   :  { %vm2824_vm13 = vcmp.ge.f32.partialorder %v2808_v15, 0.0  ;;  %v2840_v33 = vmul.f32 0.2, %v2808_v15  ;;  %v2543_v11 = vpop.f32.mrf.mxu0 }
 0xa38   :  { %v2736_v21 = vpop.f32.mrf.mxu1  ;;  %v2629_v42 = vadd.f32 %v2628_v16, %v2543_v11 }
 0xa39   :  { %v5565_v23 = vsel %vm2824_vm13, %v2808_v15, %v2840_v33  ;;  %v2775_v24 = vadd.f32 %v2736_v21, %v2624_v46 }
 0xa3a   :  { %2872 = vst.msk [vmem:[#allocation3 + $0x1b] sm:$0xff] %vm41_vm2, %v5565_v23 }
 0xa3b   :  { %v2793_v14 = vadd.f32 %v5561_v10, %v2775_v24 }
 0xa3d   :  { %v2809_v53 = vadd.f32 %v2793_v14, %v5430_v22  ;;  %v2631_v27 = vpop.f32.mrf.mxu3 }
 0xa3f   :  { %vm2825_vm14 = vcmp.ge.f32.partialorder %v2809_v53, 0.0  ;;  %v2841_v52 = vmul.f32 0.2, %v2809_v53  ;;  %v2546_v30 = vpop.f32.mrf.mxu0 }
 0xa40   :  { %v2739_v8 = vpop.f32.mrf.mxu1  ;;  %v2632_v41 = vadd.f32 %v2631_v27, %v2546_v30 }
 0xa41   :  { %v5571_v1 = vsel %vm2825_vm14, %v2809_v53, %v2841_v52  ;;  %v2776_v47 = vadd.f32 %v2739_v8, %v2627_v28  ;;  %v2891_v38 = vld [vmem:[#allocation3 + $0x18] sm:$0xff] }
 0xa42   :  { %2873 = vst.msk [vmem:[#allocation3 + $0x23] sm:$0xff] %vm41_vm2, %v5571_v1  ;;  %v2909_v40 = vpack.c.bf16 %v2891_v38, %v2890_v60  ;;  %v2916_v19 = vld [vmem:[#allocation3 + $0x1b] sm:$0xff] }
 0xa43   :  { %v2794_v39 = vadd.f32 %v5561_v10, %v2776_v47 }
 0xa44   :  { %4474 = vmatmul.msk.bf16.gmra.mxu0 %vm41_vm2, %v2909_v40 }
 0xa45   :  { %v2810_v22 = vadd.f32 %v2794_v39, %v5437_v17  ;;  %v2633_v44 = vpop.f32.mrf.mxu3 }
 0xa47   :  { %vm2826_vm15 = vcmp.ge.f32.partialorder %v2810_v22, 0.0  ;;  %v2842_v55 = vmul.f32 0.2, %v2810_v22  ;;  %v2548_v7 = vpop.f32.mrf.mxu0 }
 0xa48   :  { %v2741_v54 = vpop.f32.mrf.mxu1  ;;  %v2634_v4 = vadd.f32 %v2633_v44, %v2548_v7 }
 0xa49   :  { %v5578_v43 = vsel %vm2826_vm15, %v2810_v22, %v2842_v55  ;;  %v2777_v12 = vadd.f32 %v2741_v54, %v2629_v42  ;;  %v2917_v50 = vld [vmem:[#allocation3 + $0x23] sm:$0xff] }
 0xa4a   :  { %2874 = vst.msk [vmem:[#allocation3 + $0x2b] sm:$0xff] %vm41_vm2, %v5578_v43  ;;  %v2936_v58 = vpack.c.bf16 %v2917_v50, %v2916_v19  ;;  %v2892_v20 = vld [vmem:[#allocation3 + $0x20] sm:$0xff] }
 0xa4b   :  { %v2795_v17 = vadd.f32 %v5561_v10, %v2777_v12 }
 0xa4c   :  { %4457 = vmatmul.msk.bf16.vlgmr.msra.gmra.mxu2 %vm41_vm2, %v2936_v58 }
 0xa4d   :  { %v2811_v59 = vadd.f32 %v2795_v17, %v5444_v29  ;;  %v2636_v18 = vpop.f32.mrf.mxu3 }
 0xa4f   :  { %vm2827_vm0 = vcmp.ge.f32.partialorder %v2811_v59, 0.0  ;;  %v2843_v61 = vmul.f32 0.2, %v2811_v59  ;;  %v2551_v62 = vpop.f32.mrf.mxu0 }
 0xa50   :  { %v2744_v25 = vpop.f32.mrf.mxu1  ;;  %v2637_v14 = vadd.f32 %v2636_v18, %v2551_v62  ;;  %v2896_v18 = vld [vmem:[#allocation3 + $0x78] sm:$0xff] }
 0xa51   :  { %v5588_v48 = vsel %vm2827_vm0, %v2811_v59, %v2843_v61  ;;  %v2778_v63 = vadd.f32 %v2744_v25, %v2632_v41  ;;  %v2893_v3 = vld [vmem:[#allocation3 + $0x28] sm:$0xff]  ;;  %v2897_v41 = vld [vmem:[#allocation3 + $0x80] sm:$0xff] }
 0xa52   :  { %2875 = vst.msk [vmem:[#allocation3 + $0x33] sm:$0xff] %vm41_vm2, %v5588_v48  ;;  %v2910_v5 = vpack.c.bf16 %v2893_v3, %v2892_v20  ;;  %v2918_v33 = vld [vmem:[#allocation3 + $0x2b] sm:$0xff] }
 0xa53   :  { %v2796_v6 = vadd.f32 %v5561_v10, %v2778_v63  ;;  %v2912_v63 = vpack.c.bf16 %v2897_v41, %v2896_v18 }
 0xa54   :  { %4475 = vmatmul.msk.bf16.gmra.mxu0 %vm41_vm2, %v2910_v5 }
 0xa55   :  { %v2812_v29 = vadd.f32 %v2796_v6, %v5451_v45  ;;  %v2638_v37 = vpop.f32.mrf.mxu3 }
 0xa57   :  { %vm2828_vm1 = vcmp.ge.f32.partialorder %v2812_v29, 0.0  ;;  %v2844_v13 = vmul.f32 0.2, %v2812_v29  ;;  %v2553_v34 = vpop.f32.mrf.mxu0 }
 0xa58   :  { %v2746_v15 = vpop.f32.mrf.mxu1  ;;  %v2639_v39 = vadd.f32 %v2638_v37, %v2553_v34 }
 0xa59   :  { %v5595_v16 = vsel %vm2828_vm1, %v2812_v29, %v2844_v13  ;;  %v2779_v46 = vadd.f32 %v2746_v15, %v2634_v4  ;;  %v2919_v11 = vld [vmem:[#allocation3 + $0x33] sm:$0xff] }
 0xa5a   :  { %2876 = vst.msk [vmem:[#allocation3 + $0x3b] sm:$0xff] %vm41_vm2, %v5595_v16  ;;  %v2937_v21 = vpack.c.bf16 %v2919_v11, %v2918_v33  ;;  %v2894_v8 = vld [vmem:[#allocation3 + $0x30] sm:$0xff] }
 0xa5b   :  { %v2797_v24 = vadd.f32 %v5561_v10, %v2779_v46 }
 0xa5c   :  { %4458 = vmatmul.msk.bf16.gmra.mxu2 %vm41_vm2, %v2937_v21 }
 0xa5d   :  { %v2813_v45 = vadd.f32 %v2797_v24, %v5459_v0  ;;  %v2641_v27 = vpop.f32.mrf.mxu3 }
 0xa5f   :  { %vm2829_vm3 = vcmp.ge.f32.partialorder %v2813_v45, 0.0  ;;  %v2845_v53 = vmul.f32 0.2, %v2813_v45  ;;  %v2556_v28 = vpop.f32.mrf.mxu0 }
 0xa60   :  { %v2749_v52 = vpop.f32.mrf.mxu1  ;;  %v2642_v61 = vadd.f32 %v2641_v27, %v2556_v28 }
 0xa61   :  { %v5602_v60 = vsel %vm2829_vm3, %v2813_v45, %v2845_v53  ;;  %v2780_v30 = vadd.f32 %v2749_v52, %v2637_v14  ;;  %v2895_v47 = vld [vmem:[#allocation3 + $0x38] sm:$0xff] }
 0xa62   :  { %2877 = vst.msk [vmem:[#allocation3 + $0x43] sm:$0xff] %vm41_vm2, %v5602_v60  ;;  %v2911_v38 = vpack.c.bf16 %v2895_v47, %v2894_v8  ;;  %v2920_v55 = vld [vmem:[#allocation3 + $0x3b] sm:$0xff] }
 0xa63   :  { %v2798_v40 = vadd.f32 %v5561_v10, %v2780_v30  ;;  %v3114_v19 = vld [vmem:[#allocation3 + $0x36] sm:$0xff]  ;;  %v2898_v30 = vld [vmem:[#allocation3 + $0x88] sm:$0xff] }
 0xa64   :  { %4476 = vmatmul.msk.bf16.gmra.mxu0 %vm41_vm2, %v2911_v38 }
 0xa65   :  { %v2814_v0 = vadd.f32 %v2798_v40, %v5466_v35  ;;  %v2643_v51 = vpop.f32.mrf.mxu3 }
 0xa67   :  { %vm2830_vm4 = vcmp.ge.f32.partialorder %v2814_v0, 0.0  ;;  %v2846_v22 = vmul.f32 0.2, %v2814_v0  ;;  %v2558_v44 = vpop.f32.mrf.mxu0 }
 0xa68   :  { %v2751_v42 = vpop.f32.mrf.mxu1  ;;  %v2644_v37 = vadd.f32 %v2643_v51, %v2558_v44 }
 0xa69   :  { %v5609_v7 = vsel %vm2830_vm4, %v2814_v0, %v2846_v22  ;;  %v2781_v54 = vadd.f32 %v2751_v42, %v2639_v39  ;;  %v2921_v12 = vld [vmem:[#allocation3 + $0x43] sm:$0xff] }
 0xa6a   :  { %v3115_v50 = vld [vmem:[#allocation3 + $0x3e] sm:$0xff]  ;;  %2878 = vst.msk [vmem:[#allocation3 + $0x4b] sm:$0xff] %vm41_vm2, %v5609_v7  ;;  %v2938_v58 = vpack.c.bf16 %v2921_v12, %v2920_v55 }
 0xa6b   :  { %v3134_v17 = vpack.c.bf16 %v3115_v50, %v3114_v19  ;;  %v2799_v35 = vadd.f32 %v5561_v10, %v2781_v54  ;;  %v3119_v54 = vld [vmem:[#allocation3 + $0x5e] sm:$0xff] }
 0xa6c   :  { %4459 = vmatmul.msk.bf16.gmra.mxu2 %vm41_vm2, %v2938_v58 }
 0xa6d   :  { %4489 = vmatmul.msk.bf16.vlgmr.msra.gmra.mxu3 %vm41_vm2, %v3134_v17  ;;  %v2815_v59 = vadd.f32 %v2799_v35, %v5474_v31  ;;  %v2646_v29 = vpop.f32.mrf.mxu3 }
 0xa6f   :  { %vm2831_vm5 = vcmp.ge.f32.partialorder %v2815_v59, 0.0  ;;  %v2847_v62 = vmul.f32 0.2, %v2815_v59  ;;  %v2561_v5 = vpop.f32.mrf.mxu0 }
 0xa70   :  { %v2754_v25 = vpop.f32.mrf.mxu1  ;;  %v2647_v28 = vadd.f32 %v2646_v29, %v2561_v5 }
 0xa71   :  { %v5617_v20 = vsel %vm2831_vm5, %v2815_v59, %v2847_v62  ;;  %v2782_v3 = vadd.f32 %v2754_v25, %v2642_v61  ;;  %v2922_v34 = vld [vmem:[#allocation3 + $0x4b] sm:$0xff] }
 0xa72   :  { %2879 = vst.msk [vmem:[#allocation3 + $0x53] sm:$0xff] %vm41_vm2, %v5617_v20  ;;  %v3116_v11 = vld [vmem:[#allocation3 + $0x46] sm:$0xff] }
 0xa73   :  { %v2800_v6 = vadd.f32 %v5561_v10, %v2782_v3 }
 0xa74   :  { %4477 = vmatmul.msk.bf16.gmra.mxu0 %vm41_vm2, %v2912_v63 }
 0xa75   :  { %v2816_v31 = vadd.f32 %v2800_v6, %v5481_v56  ;;  %v2648_v27 = vpop.f32.mrf.mxu3 }
 0xa77   :  { %vm2832_vm6 = vcmp.ge.f32.partialorder %v2816_v31, 0.0  ;;  %v2848_v4 = vmul.f32 0.2, %v2816_v31  ;;  %v2563_v53 = vpop.f32.mrf.mxu0 }
 0xa78   :  { %v2756_v13 = vpop.f32.mrf.mxu1  ;;  %v2649_v44 = vadd.f32 %v2648_v27, %v2563_v53 }
 0xa79   :  { %v5624_v15 = vsel %vm2832_vm6, %v2816_v31, %v2848_v4  ;;  %v2783_v46 = vadd.f32 %v2756_v13, %v2644_v37  ;;  %v2923_v33 = vld [vmem:[#allocation3 + $0x53] sm:$0xff]  ;;  %v3120_v4 = vld [vmem:[#allocation3 + $0x66] sm:$0xff] }
 0xa7a   :  { %v3117_v21 = vld [vmem:[#allocation3 + $0x4e] sm:$0xff]  ;;  %2880 = vst.msk [vmem:[#allocation3 + $0x93] sm:$0xff] %vm41_vm2, %v5624_v15  ;;  %v2939_v24 = vpack.c.bf16 %v2923_v33, %v2922_v34  ;;  %v3118_v55 = vld [vmem:[#allocation3 + $0x56] sm:$0xff] }
 0xa7b   :  { %v3135_v45 = vpack.c.bf16 %v3117_v21, %v3116_v11  ;;  %v2801_v14 = vadd.f32 %v5561_v10, %v2783_v46  ;;  %v3136_v59 = vpack.c.bf16 %v3119_v54, %v3118_v55  ;;  %v3121_v13 = vld [vmem:[#allocation3 + $0x6e] sm:$0xff] }
 0xa7c   :  { %4460 = vmatmul.msk.bf16.gmra.mxu2 %vm41_vm2, %v2939_v24  ;;  %v3137_v11 = vpack.c.bf16 %v3121_v13, %v3120_v4 }
 0xa7d   :  { %4490 = vmatmul.msk.bf16.gmra.mxu3 %vm41_vm2, %v3135_v45  ;;  %v2817_v56 = vadd.f32 %v2801_v14, %v5489_v9  ;;  %v2651_v12 = vpop.f32.mrf.mxu3 }
 0xa7f   :  { %vm2833_vm7 = vcmp.ge.f32.partialorder %v2817_v56, 0.0  ;;  %v2849_v52 = vmul.f32 0.2, %v2817_v56  ;;  %v2566_v22 = vpop.f32.mrf.mxu0 }
 0xa80   :  { %v2759_v8 = vpop.f32.mrf.mxu1  ;;  %v2652_v41 = vadd.f32 %v2651_v12, %v2566_v22  ;;  %v4651_v22 = vld [vmem:[%s6027_s0 + $0x288] sm:$0xff] }
 0xa81   :  { %v5632_v47 = vsel %vm2833_vm7, %v2817_v56, %v2849_v52  ;;  %v2784_v38 = vadd.f32 %v2759_v8, %v2647_v28  ;;  %v2899_v40 = vld [vmem:[#allocation3 + $0x90] sm:$0xff]  ;;  %3381 = vmatpush.bf16.msra.mxu1 %v4651_v22 }
 0xa82   :  { %2881 = vst.msk [vmem:[#allocation3 + $0x9b] sm:$0xff] %vm41_vm2, %v5632_v47  ;;  %v2913_v0 = vpack.c.bf16 %v2899_v40, %v2898_v30  ;;  %v2924_v58 = vld [vmem:[#allocation3 + $0x93] sm:$0xff] }
 0xa83   :  { %v2802_v39 = vadd.f32 %v5561_v10, %v2784_v38 }
 0xa84   :  { %4478 = vmatmul.msk.bf16.gmra.mxu0 %vm41_vm2, %v2913_v0 }
 0xa85   :  { %v2818_v9 = vadd.f32 %v2802_v39, %v5496_v49  ;;  %v2653_v29 = vpop.f32.mrf.mxu3 }
 0xa87   :  { %vm2834_vm9 = vcmp.ge.f32.partialorder %v2818_v9, 0.0  ;;  %v2850_v42 = vmul.f32 0.2, %v2818_v9  ;;  %v2568_v62 = vpop.f32.mrf.mxu0 }
 0xa88   :  { %v2761_v19 = vpop.f32.mrf.mxu1  ;;  %v2654_v34 = vadd.f32 %v2653_v29, %v2568_v62 }
 0xa89   :  { %v5639_v50 = vsel %vm2834_vm9, %v2818_v9, %v2850_v42  ;;  %v2785_v51 = vadd.f32 %v2761_v19, %v2649_v44  ;;  %v2925_v17 = vld [vmem:[#allocation3 + $0x9b] sm:$0xff] }
 0xa8a   :  { %2882 = vst.msk [vmem:[#allocation3 + $0xa3] sm:$0xff] %vm41_vm2, %v5639_v50  ;;  %v2940_v35 = vpack.c.bf16 %v2925_v17, %v2924_v58  ;;  %v2900_v5 = vld [vmem:[#allocation3 + $0x98] sm:$0xff] }
 0xa8b   :  { %v2803_v49 = vadd.f32 %v5561_v10, %v2785_v51 }
 0xa8c   :  { %4461 = vmatmul.msk.bf16.gmra.mxu2 %vm41_vm2, %v2940_v35 }
 0xa8d   :  { %4491 = vmatmul.msk.bf16.gmra.mxu3 %vm41_vm2, %v3136_v59  ;;  %v2819_v18 = vadd.f32 %v2803_v49, %v5504_v2 }
 0xa8f   :  { %vm2835_vm10 = vcmp.ge.f32.partialorder %v2819_v18, 0.0  ;;  %v2851_v61 = vmul.f32 0.2, %v2819_v18  ;;  %v2571_v53 = vpop.f32.mrf.mxu0 }
 0xa90   :  { %v2764_v25 = vpop.f32.mrf.mxu1 }
 0xa91   :  { %v5647_v63 = vsel %vm2835_vm10, %v2819_v18, %v2851_v61  ;;  %v2786_v3 = vadd.f32 %v2764_v25, %v2652_v41  ;;  %v2901_v6 = vld [vmem:[#allocation3 + $0xa0] sm:$0xff] }
 0xa92   :  { %2883 = vst.msk [vmem:[#allocation3 + $0xab] sm:$0xff] %vm41_vm2, %v5647_v63  ;;  %v2914_v31 = vpack.c.bf16 %v2901_v6, %v2900_v5  ;;  %v2926_v45 = vld [vmem:[#allocation3 + $0xa3] sm:$0xff] }
 0xa93   :  { %v2804_v37 = vadd.f32 %v5561_v10, %v2786_v3 }
 0xa94   :  { %4479 = vmatmul.msk.bf16.gmra.mxu0 %vm41_vm2, %v2914_v31 }
 0xa95   :  { %v2820_v2 = vadd.f32 %v2804_v37, %v5511_v57  ;;  %v2656_v57 = vpop.f32.mrf.mxu3 }
 0xa96   :  { %v2657_v52 = vadd.f32 %v2656_v57, %v2571_v53 }
 0xa97   :  { %vm2836_vm11 = vcmp.ge.f32.partialorder %v2820_v2, 0.0  ;;  %v2852_v46 = vmul.f32 0.2, %v2820_v2 }
 0xa98   :  { %v2766_v33 = vpop.f32.mrf.mxu1 }
 0xa99   :  { %v5654_v21 = vsel %vm2836_vm11, %v2820_v2, %v2852_v46  ;;  %v2787_v24 = vadd.f32 %v2766_v33, %v2654_v34  ;;  %v2927_v14 = vld [vmem:[#allocation3 + $0xab] sm:$0xff]  ;;  %v3127_v2 = vld [vmem:[#allocation3 + $0xd6] sm:$0xff]  ;;  %v3128_v34 = vld [vmem:[#allocation3 + $0xde] sm:$0xff] }
 0xa9a   :  { %2884 = vst.msk [vmem:[#allocation3 + $0xb3] sm:$0xff] %vm41_vm2, %v5654_v21  ;;  %v2941_v56 = vpack.c.bf16 %v2927_v14, %v2926_v45  ;;  %v2902_v0 = vld [vmem:[#allocation3 + $0xa8] sm:$0xff]  ;;  %v4650_v45 = vld [vmem:[%s6027_s0 + $0x280] sm:$0xff] }
 0xa9b   :  { %v2805_v27 = vadd.f32 %v5561_v10, %v2787_v24  ;;  %v3129_v46 = vld [vmem:[#allocation3 + $0xe6] sm:$0xff]  ;;  %3382 = vmatpush.bf16.msra.mxu1 %v4650_v45 }
 0xa9c   :  { %4462 = vmatmul.msk.bf16.gmra.mxu2 %vm41_vm2, %v2941_v56 }
 0xa9d   :  { %4492 = vmatmul.msk.bf16.gmra.mxu3 %vm41_vm2, %v3137_v11  ;;  %v2821_v28 = vadd.f32 %v2805_v27, %v5519_v36  ;;  %v2573_v36 = vpop.f32.mrf.mxu0  ;;  %v2658_v55 = vpop.f32.mrf.mxu3  ;;  %v3141_v11 = vpack.c.bf16 %v3129_v46, %v3128_v34 }
 0xa9e   :  { %v2659_v54 = vadd.f32 %v2658_v55, %v2573_v36 }
 0xa9f   :  { %vm2837_vm8 = vcmp.ge.f32.partialorder %v2821_v28, 0.0  ;;  %v2853_v30 = vmul.f32 0.2, %v2821_v28 }
 0xaa0   :  { %v2769_v8 = vpop.f32.mrf.mxu1 }
 0xaa1   :  { %v5662_v38 = vsel %vm2837_vm8, %v2821_v28, %v2853_v30  ;;  %v2788_v40 = vadd.f32 %v2769_v8, %v2657_v52  ;;  %v2903_v39 = vld [vmem:[#allocation3 + $0xb0] sm:$0xff]  ;;  %v5694_v30 = vld [vmem:[%s6028_s1 + $0xf] ss:$0 sm:$0xff] }
 0xaa2   :  { %2885 = vst.msk [vmem:[#allocation3 + $0xbb] sm:$0xff] %vm41_vm2, %v5662_v38  ;;  %v2915_v9 = vpack.c.bf16 %v2903_v39, %v2902_v0  ;;  %v2928_v51 = vld [vmem:[#allocation3 + $0xb3] sm:$0xff] }
 0xaa3   :  { %v2806_v44 = vadd.f32 %v5561_v10, %v2788_v40  ;;  %v3122_v59 = vld [vmem:[#allocation3 + $0xae] sm:$0xff] }
 0xaa4   :  { %4480 = vmatmul.msk.bf16.gmra.mxu0 %vm41_vm2, %v2915_v9 }
 0xaa5   :  { %v2822_v42 = vadd.f32 %v2806_v44, %v5526_v26  ;;  %v3074_v4 = vpop.f32.mrf.mxu0 }
 0xaa7   :  { %vm2838_vm12 = vcmp.ge.f32.partialorder %v2822_v42, 0.0  ;;  %v2854_v12 = vmul.f32 0.2, %v2822_v42 }
 0xaa8   :  { %v2771_v19 = vpop.f32.mrf.mxu1 }
 0xaa9   :  { %v5672_v58 = vsel %vm2838_vm12, %v2822_v42, %v2854_v12  ;;  %v2789_v17 = vadd.f32 %v2771_v19, %v2659_v54  ;;  %v2929_v35 = vld [vmem:[#allocation3 + $0xbb] sm:$0xff] }
 0xaaa   :  { %v3123_v49 = vld [vmem:[#allocation3 + $0xb6] sm:$0xff]  ;;  %2886 = vst.msk [vmem:[#allocation3 + $0xc3] sm:$0xff] %vm41_vm2, %v5672_v58  ;;  %v2942_v18 = vpack.c.bf16 %v2929_v35, %v2928_v51 }
 0xaab   :  { %v3138_v41 = vpack.c.bf16 %v3123_v49, %v3122_v59  ;;  %v2807_v61 = vadd.f32 %v5561_v10, %v2789_v17 }
 0xaac   :  { %4463 = vmatmul.msk.bf16.gmra.mxu2 %vm41_vm2, %v2942_v18 }
 0xaad   :  { %4493 = vmatmul.msk.bf16.gmra.mxu3 %vm41_vm2, %v3138_v41  ;;  %v2823_v26 = vadd.f32 %v2807_v61, %v5534_v32  ;;  %v3076_v24 = vpop.f32.mrf.mxu0 }
 0xaaf   :  { %vm2839_vm13 = vcmp.ge.f32.partialorder %v2823_v26, 0.0  ;;  %v2855_v62 = vmul.f32 0.2, %v2823_v26 }
 0xab1   :  { %v5680_v25 = vsel %vm2839_vm13, %v2823_v26, %v2855_v62  ;;  %v2930_v3 = vld [vmem:[#allocation3 + $0xc3] sm:$0xff] }
 0xab2   :  { %2887 = vst.msk [vmem:[#allocation3 + $0xcb] sm:$0xff] %vm41_vm2, %v5680_v25  ;;  %v3124_v6 = vld [vmem:[#allocation3 + $0xbe] sm:$0xff] }
 0xab9   :  { %v2931_v5 = vld [vmem:[#allocation3 + $0xcb] sm:$0xff] }
 0xaba   :  { %v3125_v29 = vld [vmem:[#allocation3 + $0xc6] sm:$0xff]  ;;  %v2943_v31 = vpack.c.bf16 %v2931_v5, %v2930_v3  ;;  %v3126_v10 = vld [vmem:[#allocation3 + $0xce] sm:$0xff] }
 0xabb   :  { %v3139_v37 = vpack.c.bf16 %v3125_v29, %v3124_v6  ;;  %v3140_v32 = vpack.c.bf16 %v3127_v2, %v3126_v10 }
 0xabc   :  { %4464 = vmatmul.msk.bf16.gmra.mxu2 %vm41_vm2, %v2943_v31 }
 0xabd   :  { %4494 = vmatmul.msk.bf16.gmra.mxu3 %vm41_vm2, %v3139_v37 }
 0xac1   :  { %v3079_v53 = vpop.f32.mrf.mxu0 }
 0xac9   :  { %v3081_v27 = vpop.f32.mrf.mxu0 }
 0xacd   :  { %4495 = vmatmul.msk.bf16.gmra.mxu3 %vm41_vm2, %v3140_v32 }
 0xacf   :  { %v2989_v13 = vpop.f32.mrf.mxu2 }
 0xad0   :  { %v3075_v57 = vadd.f32 %v3074_v4, %v2989_v13 }
 0xad1   :  { %v3084_v39 = vpop.f32.mrf.mxu0 }
 0xad7   :  { %v2991_v33 = vpop.f32.mrf.mxu2 }
 0xad8   :  { %v3077_v0 = vadd.f32 %v3076_v24, %v2991_v33 }
 0xad9   :  { %v3086_v49 = vpop.f32.mrf.mxu0 }
 0xadd   :  { %4496 = vmatmul.msk.bf16.gmra.mxu3 %vm41_vm2, %v3141_v11 }
 0xadf   :  { %v2994_v14 = vpop.f32.mrf.mxu2 }
 0xae0   :  { %v3080_v54 = vadd.f32 %v3079_v53, %v2994_v14 }
 0xae1   :  { %v3089_v5 = vpop.f32.mrf.mxu0 }
 0xae7   :  { %v2996_v56 = vpop.f32.mrf.mxu2 }
 0xae9   :  { %v3091_v46 = vpop.f32.mrf.mxu0 }
 0xaef   :  { %v2999_v40 = vpop.f32.mrf.mxu2 }
 0xaf0   :  { %v3187_v28 = vpop.f32.mrf.mxu3  ;;  %v3085_v31 = vadd.f32 %v3084_v39, %v2999_v40 }
 0xaf1   :  { %v3227_v52 = vadd.f32 %v3187_v28, %v3075_v57  ;;  %v3094_v28 = vpop.f32.mrf.mxu0 }
 0xaf3   :  { %v3245_v8 = vadd.f32 %v5694_v30, %v3227_v52 }
 0xaf5   :  { %v3261_v22 = vadd.f32 %v3245_v8, %v5565_v23 }
 0xaf7   :  { %v3293_v42 = vmul.f32 0.2, %v3261_v22  ;;  %vm3277_vm14 = vcmp.ge.f32.partialorder %v3261_v22, 0.0  ;;  %v3001_v19 = vpop.f32.mrf.mxu2 }
 0xaf8   :  { %v3189_v9 = vpop.f32.mrf.mxu3 }
 0xaf9   :  { %v3228_v44 = vadd.f32 %v3189_v9, %v3077_v0  ;;  %v5700_v17 = vsel %vm3277_vm14, %v3261_v22, %v3293_v42  ;;  %v3096_v42 = vpop.f32.mrf.mxu0 }
 0xafb   :  { %v3246_v36 = vadd.f32 %v5694_v30, %v3228_v44 }
 0xafd   :  { %v3262_v55 = vadd.f32 %v3246_v36, %v5571_v1  ;;  %v3082_v1 = vadd.f32 %v3081_v27, %v2996_v56 }
 0xaff   :  { %vm3278_vm15 = vcmp.ge.f32.partialorder %v3262_v55, 0.0  ;;  %v3294_v12 = vmul.f32 0.2, %v3262_v55  ;;  %v3004_v62 = vpop.f32.mrf.mxu2 }
 0xb00   :  { %v3192_v51 = vpop.f32.mrf.mxu3  ;;  %v3090_v27 = vadd.f32 %v3089_v5, %v3004_v62 }
 0xb01   :  { %v5702_v35 = vsel %vm3278_vm15, %v3262_v55, %v3294_v12  ;;  %v3229_v59 = vadd.f32 %v3192_v51, %v3080_v54 }
 0xb02   :  { %v3329_v23 = vpack.c.bf16 %v5702_v35, %v5700_v17 }
 0xb03   :  { %v3247_v18 = vadd.f32 %v5694_v30, %v3229_v59 }
 0xb04   :  { %4505 = vmatmul.msk.bf16.vlgmr.msra.gmra.mxu1 %vm41_vm2, %v3329_v23 }
 0xb05   :  { %v3263_v61 = vadd.f32 %v3247_v18, %v5578_v43 }
 0xb07   :  { %v3295_v6 = vmul.f32 0.2, %v3263_v61  ;;  %vm3279_vm0 = vcmp.ge.f32.partialorder %v3263_v61, 0.0  ;;  %v3006_v13 = vpop.f32.mrf.mxu2 }
 0xb08   :  { %v3194_v41 = vpop.f32.mrf.mxu3 }
 0xb09   :  { %v3230_v26 = vadd.f32 %v3194_v41, %v3082_v1  ;;  %v5711_v32 = vsel %vm3279_vm0, %v3263_v61, %v3295_v6  ;;  %v3099_v41 = vpop.f32.mrf.mxu0 }
 0xb0b   :  { %v3248_v3 = vadd.f32 %v5694_v30, %v3230_v26 }
 0xb0d   :  { %v3264_v29 = vadd.f32 %v3248_v3, %v5588_v48  ;;  %v3087_v48 = vadd.f32 %v3086_v49, %v3001_v19 }
 0xb0f   :  { %vm3280_vm1 = vcmp.ge.f32.partialorder %v3264_v29, 0.0  ;;  %v3296_v37 = vmul.f32 0.2, %v3264_v29  ;;  %v3009_v56 = vpop.f32.mrf.mxu2 }
 0xb10   :  { %v3197_v10 = vpop.f32.mrf.mxu3  ;;  %v3095_v19 = vadd.f32 %v3094_v28, %v3009_v56 }
 0xb11   :  { %v3231_v2 = vadd.f32 %v3197_v10, %v3085_v31  ;;  %v5713_v4 = vsel %vm3280_vm1, %v3264_v29, %v3296_v37  ;;  %v3101_v37 = vpop.f32.mrf.mxu0 }
 0xb12   :  { %v3330_v43 = vpack.c.bf16 %v5713_v4, %v5711_v32 }
 0xb13   :  { %v3249_v34 = vadd.f32 %v5694_v30, %v3231_v2 }
 0xb14   :  { %4506 = vmatmul.msk.bf16.gmra.mxu1 %vm41_vm2, %v3330_v43 }
 0xb15   :  { %v3265_v11 = vadd.f32 %v3249_v34, %v5595_v16 }
 0xb17   :  { %v3297_v14 = vmul.f32 0.2, %v3265_v11  ;;  %vm3281_vm3 = vcmp.ge.f32.partialorder %v3265_v11, 0.0  ;;  %v3011_v9 = vpop.f32.mrf.mxu2 }
 0xb18   :  { %v3199_v33 = vpop.f32.mrf.mxu3 }
 0xb19   :  { %v3232_v24 = vadd.f32 %v3199_v33, %v3087_v48  ;;  %v5722_v40 = vsel %vm3281_vm3, %v3265_v11, %v3297_v14  ;;  %v4655_v11 = vld [vmem:[%s6027_s0 + $0x2a8] sm:$0xff] }
 0xb1a   :  { %3602 = vmatpush.bf16.msrb.mxu2 %v4655_v11 }
 0xb1b   :  { %v3250_v45 = vadd.f32 %v5694_v30, %v3232_v24  ;;  %v4657_v24 = vld [vmem:[%s6027_s0 + $0x2b8] sm:$0xff] }
 0xb1c   :  { %3800 = vmatpush.bf16.msrb.mxu3 %v4657_v24 }
 0xb1d   :  { %v3266_v53 = vadd.f32 %v3250_v45, %v5602_v60  ;;  %v3092_v60 = vadd.f32 %v3091_v46, %v3006_v13  ;;  %v3104_v45 = vpop.f32.mrf.mxu0 }
 0xb1f   :  { %vm3282_vm4 = vcmp.ge.f32.partialorder %v3266_v53, 0.0  ;;  %v3298_v57 = vmul.f32 0.2, %v3266_v53  ;;  %v3014_v1 = vpop.f32.mrf.mxu2 }
 0xb20   :  { %v3202_v52 = vpop.f32.mrf.mxu3  ;;  %v3100_v10 = vadd.f32 %v3099_v41, %v3014_v1 }
 0xb21   :  { %v3233_v8 = vadd.f32 %v3202_v52, %v3090_v27  ;;  %v5724_v0 = vsel %vm3282_vm4, %v3266_v53, %v3298_v57 }
 0xb22   :  { %v3331_v16 = vpack.c.bf16 %v5724_v0, %v5722_v40 }
 0xb23   :  { %v3251_v39 = vadd.f32 %v5694_v30, %v3233_v8 }
 0xb24   :  { %4507 = vmatmul.msk.bf16.gmra.mxu1 %vm41_vm2, %v3331_v16  ;;  %v4653_v16 = vld [vmem:[%s6027_s0 + $0x298] sm:$0xff] }
 0xb25   :  { %v3267_v44 = vadd.f32 %v3251_v39, %v5609_v7  ;;  %3687 = vmatpush.bf16.msrb.mxu0 %v4653_v16 }
 0xb27   :  { %v3299_v54 = vmul.f32 0.2, %v3267_v44  ;;  %vm3283_vm5 = vcmp.ge.f32.partialorder %v3267_v44, 0.0  ;;  %v3016_v6 = vpop.f32.mrf.mxu2 }
 0xb28   :  { %v3204_v22 = vpop.f32.mrf.mxu3 }
 0xb29   :  { %v3234_v36 = vadd.f32 %v3204_v22, %v3092_v60  ;;  %v5733_v23 = vsel %vm3283_vm5, %v3267_v44, %v3299_v54  ;;  %v3106_v44 = vpop.f32.mrf.mxu0 }
 0xb2b   :  { %v3252_v55 = vadd.f32 %v5694_v30, %v3234_v36 }
 0xb2d   :  { %v3268_v12 = vadd.f32 %v3252_v55, %v5617_v20  ;;  %v3097_v20 = vadd.f32 %v3096_v42, %v3011_v9 }
 0xb2f   :  { %vm3284_vm6 = vcmp.ge.f32.partialorder %v3268_v12, 0.0  ;;  %v3300_v51 = vmul.f32 0.2, %v3268_v12  ;;  %v3019_v33 = vpop.f32.mrf.mxu2 }
 0xb30   :  { %v3207_v59 = vpop.f32.mrf.mxu3  ;;  %v3105_v52 = vadd.f32 %v3104_v45, %v3019_v33 }
 0xb31   :  { %v3235_v49 = vadd.f32 %v3207_v59, %v3095_v19  ;;  %v5735_v18 = vsel %vm3284_vm6, %v3268_v12, %v3300_v51  ;;  %v3109_v59 = vpop.f32.mrf.mxu0 }
 0xb32   :  { %v3332_v7 = vpack.c.bf16 %v5735_v18, %v5733_v23 }
 0xb33   :  { %v3253_v61 = vadd.f32 %v5694_v30, %v3235_v49 }
 0xb34   :  { %4508 = vmatmul.msk.bf16.gmra.mxu1 %vm41_vm2, %v3332_v7 }
 0xb35   :  { %v3269_v62 = vadd.f32 %v3253_v61, %v5624_v15 }
 0xb37   :  { %v3301_v29 = vmul.f32 0.2, %v3269_v62  ;;  %vm3285_vm7 = vcmp.ge.f32.partialorder %v3269_v62, 0.0  ;;  %v3021_v39 = vpop.f32.mrf.mxu2 }
 0xb38   :  { %v3209_v26 = vpop.f32.mrf.mxu3  ;;  %v3107_v42 = vadd.f32 %v3106_v44, %v3021_v39 }
 0xb39   :  { %v3236_v3 = vadd.f32 %v3209_v26, %v3097_v20  ;;  %v5744_v34 = vsel %vm3285_vm7, %v3269_v62, %v3301_v29 }
 0xb3b   :  { %v3254_v5 = vadd.f32 %v5694_v30, %v3236_v3 }
 0xb3d   :  { %v3270_v31 = vadd.f32 %v3254_v5, %v5632_v47  ;;  %v3102_v47 = vadd.f32 %v3101_v37, %v3016_v6  ;;  %v3111_v6 = vpop.f32.mrf.mxu0 }
 0xb3f   :  { %vm3286_vm9 = vcmp.ge.f32.partialorder %v3270_v31, 0.0  ;;  %v3302_v2 = vmul.f32 0.2, %v3270_v31  ;;  %v3024_v19 = vpop.f32.mrf.mxu2 }
 0xb40   :  { %v3212_v43 = vpop.f32.mrf.mxu3  ;;  %v3110_v7 = vadd.f32 %v3109_v59, %v3024_v19 }
 0xb41   :  { %v3237_v13 = vadd.f32 %v3212_v43, %v3100_v10  ;;  %v5746_v46 = vsel %vm3286_vm9, %v3270_v31, %v3302_v2 }
 0xb42   :  { %v3333_v15 = vpack.c.bf16 %v5746_v46, %v5744_v34 }
 0xb43   :  { %v3255_v48 = vadd.f32 %v5694_v30, %v3237_v13 }
 0xb44   :  { %4509 = vmatmul.msk.bf16.gmra.mxu1 %vm41_vm2, %v3333_v15 }
 0xb45   :  { %v3271_v53 = vadd.f32 %v3255_v48, %v5639_v50 }
 0xb47   :  { %v3303_v57 = vmul.f32 0.2, %v3271_v53  ;;  %vm3287_vm10 = vcmp.ge.f32.partialorder %v3271_v53, 0.0  ;;  %v3026_v3 = vpop.f32.mrf.mxu2 }
 0xb48   :  { %v3214_v14 = vpop.f32.mrf.mxu3 }
 0xb49   :  { %v3238_v56 = vadd.f32 %v3214_v14, %v3102_v47  ;;  %v5764_v50 = vsel %vm3287_vm10, %v3271_v53, %v3303_v57  ;;  %v4656_v47 = vld [vmem:[%s6027_s0 + $0x2b0] sm:$0xff] }
 0xb4a   :  { %3801 = vmatpush.bf16.msrb.mxu3 %v4656_v47 }
 0xb4b   :  { %v3256_v27 = vadd.f32 %v5694_v30, %v3238_v56 }
 0xb4d   :  { %v3272_v28 = vadd.f32 %v3256_v27, %v5647_v63 }
 0xb4f   :  { %vm3288_vm11 = vcmp.ge.f32.partialorder %v3272_v28, 0.0  ;;  %v3304_v8 = vmul.f32 0.2, %v3272_v28 }
 0xb50   :  { %v3217_v60 = vpop.f32.mrf.mxu3 }
 0xb51   :  { %v3239_v9 = vadd.f32 %v3217_v60, %v3105_v52  ;;  %v5766_v22 = vsel %vm3288_vm11, %v3272_v28, %v3304_v8 }
 0xb52   :  { %v3334_v63 = vpack.c.bf16 %v5766_v22, %v5764_v50 }
 0xb53   :  { %v3257_v36 = vadd.f32 %v5694_v30, %v3239_v9 }
 0xb54   :  { %4510 = vmatmul.msk.bf16.gmra.mxu1 %vm41_vm2, %v3334_v63 }
 0xb55   :  { %v3273_v54 = vadd.f32 %v3257_v36, %v5654_v21 }
 0xb57   :  { %v3305_v49 = vmul.f32 0.2, %v3273_v54  ;;  %vm3289_vm8 = vcmp.ge.f32.partialorder %v3273_v54, 0.0 }
 0xb58   :  { %v3219_v55 = vpop.f32.mrf.mxu3 }
 0xb59   :  { %v3240_v12 = vadd.f32 %v3219_v55, %v3107_v42  ;;  %v5775_v26 = vsel %vm3289_vm8, %v3273_v54, %v3305_v49 }
 0xb5b   :  { %v3258_v51 = vadd.f32 %v5694_v30, %v3240_v12 }
 0xb5d   :  { %v3274_v1 = vadd.f32 %v3258_v51, %v5662_v38  ;;  %v3112_v38 = vadd.f32 %v3111_v6, %v3026_v3 }
 0xb5f   :  { %vm3290_vm12 = vcmp.ge.f32.partialorder %v3274_v1, 0.0  ;;  %v3306_v41 = vmul.f32 0.2, %v3274_v1 }
 0xb60   :  { %v3222_v61 = vpop.f32.mrf.mxu3 }
 0xb61   :  { %v3241_v20 = vadd.f32 %v3222_v61, %v3110_v7  ;;  %v5777_v62 = vsel %vm3290_vm12, %v3274_v1, %v3306_v41 }
 0xb62   :  { %v3335_v21 = vpack.c.bf16 %v5777_v62, %v5775_v26 }
 0xb63   :  { %v3259_v5 = vadd.f32 %v5694_v30, %v3241_v20 }
 0xb64   :  { %4511 = vmatmul.msk.bf16.gmra.mxu1 %vm41_vm2, %v3335_v21 }
 0xb65   :  { %v3275_v31 = vadd.f32 %v3259_v5, %v5672_v58  ;;  %v4654_v58 = vld [vmem:[%s6027_s0 + $0x2a0] sm:$0xff] }
 0xb66   :  { %3603 = vmatpush.bf16.msrb.mxu2 %v4654_v58 }
 0xb67   :  { %v3307_v2 = vmul.f32 0.2, %v3275_v31  ;;  %vm3291_vm13 = vcmp.ge.f32.partialorder %v3275_v31, 0.0 }
 0xb68   :  { %v3224_v29 = vpop.f32.mrf.mxu3 }
 0xb69   :  { %v3242_v37 = vadd.f32 %v3224_v29, %v3112_v38  ;;  %v5786_v15 = vsel %vm3291_vm13, %v3275_v31, %v3307_v2 }
 0xb6b   :  { %v3260_v10 = vadd.f32 %v5694_v30, %v3242_v37  ;;  %v5802_v30 = vld [vmem:[%s6028_s1 + $0x10] ss:$0 sm:$0xff] }
 0xb6d   :  { %v3276_v43 = vadd.f32 %v3260_v10, %v5680_v25  ;;  %v4652_v25 = vld [vmem:[%s6027_s0 + $0x290] sm:$0xff] }
 0xb6e   :  { %3688 = vmatpush.bf16.msrb.mxu0 %v4652_v25 }
 0xb6f   :  { %vm3292_vm14 = vcmp.ge.f32.partialorder %v3276_v43, 0.0  ;;  %v3308_v13 = vmul.f32 0.2, %v3276_v43 }
 0xb71   :  { %v5788_v48 = vsel %vm3292_vm14, %v3276_v43, %v3308_v13 }
 0xb72   :  { %v3336_v33 = vpack.c.bf16 %v5788_v48, %v5786_v15 }
 0xb74   :  { %4512 = vmatmul.msk.bf16.gmra.mxu1 %vm41_vm2, %v3336_v33 }
 0xb81   :  { %v3384_v11 = vpop.f32.mrf.mxu1 }
 0xb82   :  { %v3385_v24 = vadd.f32 %v5802_v30, %v3384_v11 }
 0xb84   :  { %v3424_v45 = vadd.f32 %v3385_v24, %v5700_v17 }
 0xb86   :  { %vm3440_vm15 = vcmp.ge.f32.partialorder %v3424_v45, 0.0  ;;  %v3456_v14 = vmul.f32 0.2, %v3424_v45 }
 0xb88   :  { %v5809_v53 = vsel %vm3440_vm15, %v3424_v45, %v3456_v14 }
 0xb89   :  { %3488 = vst.msk [vmem:[#allocation3 + $0x1b] sm:$0xff] %vm41_vm2, %v5809_v53  ;;  %v3386_v56 = vpop.f32.mrf.mxu1 }
 0xb8a   :  { %v3387_v27 = vadd.f32 %v5802_v30, %v3386_v56 }
 0xb8c   :  { %v3425_v57 = vadd.f32 %v3387_v27, %v5702_v35 }
 0xb8e   :  { %vm3441_vm0 = vcmp.ge.f32.partialorder %v3425_v57, 0.0  ;;  %v3457_v28 = vmul.f32 0.2, %v3425_v57 }
 0xb90   :  { %v5815_v52 = vsel %vm3441_vm0, %v3425_v57, %v3457_v28  ;;  %v3532_v60 = vld [vmem:[#allocation3 + $0x1b] sm:$0xff] }
 0xb91   :  { %3489 = vst.msk [vmem:[#allocation3 + $0x23] sm:$0xff] %vm41_vm2, %v5815_v52  ;;  %v3389_v17 = vpop.f32.mrf.mxu1  ;;  %v3504_v63 = vld [vmem:[#allocation3 + $0x1a] sm:$0xff] }
 0xb92   :  { %v3390_v8 = vadd.f32 %v5802_v30, %v3389_v17 }
 0xb94   :  { %v3426_v16 = vadd.f32 %v3390_v8, %v5711_v32 }
 0xb96   :  { %vm3442_vm1 = vcmp.ge.f32.partialorder %v3426_v16, 0.0  ;;  %v3458_v39 = vmul.f32 0.2, %v3426_v16 }
 0xb98   :  { %v5821_v9 = vsel %vm3442_vm1, %v3426_v16, %v3458_v39  ;;  %v3533_v44 = vld [vmem:[#allocation3 + $0x23] sm:$0xff] }
 0xb99   :  { %v3505_v35 = vld [vmem:[#allocation3 + $0x22] sm:$0xff]  ;;  %3490 = vst.msk [vmem:[#allocation3 + $0x2b] sm:$0xff] %vm41_vm2, %v5821_v9  ;;  %v3391_v36 = vpop.f32.mrf.mxu1  ;;  %v3552_v42 = vpack.c.bf16 %v3533_v44, %v3532_v60 }
 0xb9a   :  { %v3524_v55 = vpack.c.bf16 %v3505_v35, %v3504_v63  ;;  %v3392_v54 = vadd.f32 %v5802_v30, %v3391_v36  ;;  %v3730_v51 = vld [vmem:[#allocation3 + $0x1c] sm:$0xff] }
 0xb9b   :  { %4521 = vmatmul.msk.bf16.vlgmr.msrb.gmra.mxu2 %vm41_vm2, %v3552_v42 }
 0xb9c   :  { %4537 = vmatmul.msk.bf16.vlgmr.msrb.gmra.mxu0 %vm41_vm2, %v3524_v55  ;;  %v3427_v32 = vadd.f32 %v3392_v54, %v5713_v4 }
 0xb9e   :  { %vm3443_vm3 = vcmp.ge.f32.partialorder %v3427_v32, 0.0  ;;  %v3459_v12 = vmul.f32 0.2, %v3427_v32 }
 0xba0   :  { %v5829_v19 = vsel %vm3443_vm3, %v3427_v32, %v3459_v12  ;;  %v3731_v59 = vld [vmem:[#allocation3 + $0x24] sm:$0xff] }
 0xba1   :  { %3491 = vst.msk [vmem:[#allocation3 + $0x33] sm:$0xff] %vm41_vm2, %v5829_v19  ;;  %v3394_v49 = vpop.f32.mrf.mxu1  ;;  %v3750_v1 = vpack.c.bf16 %v3731_v59, %v3730_v51  ;;  %v3534_v4 = vld [vmem:[#allocation3 + $0x2b] sm:$0xff] }
 0xba2   :  { %v3395_v7 = vadd.f32 %v5802_v30, %v3394_v49  ;;  %v3506_v3 = vld [vmem:[#allocation3 + $0x2a] sm:$0xff] }
 0xba3   :  { %4553 = vmatmul.msk.bf16.vlgmr.msrb.gmra.mxu3 %vm41_vm2, %v3750_v1 }
 0xba4   :  { %v3428_v41 = vadd.f32 %v3395_v7, %v5722_v40 }
 0xba6   :  { %vm3444_vm4 = vcmp.ge.f32.partialorder %v3428_v41, 0.0  ;;  %v3460_v61 = vmul.f32 0.2, %v3428_v41 }
 0xba8   :  { %v5836_v20 = vsel %vm3444_vm4, %v3428_v41, %v3460_v61  ;;  %v3535_v21 = vld [vmem:[#allocation3 + $0x33] sm:$0xff] }
 0xba9   :  { %v3507_v5 = vld [vmem:[#allocation3 + $0x32] sm:$0xff]  ;;  %3492 = vst.msk [vmem:[#allocation3 + $0x3b] sm:$0xff] %vm41_vm2, %v5836_v20  ;;  %v3396_v6 = vpop.f32.mrf.mxu1  ;;  %v3553_v38 = vpack.c.bf16 %v3535_v21, %v3534_v4 }
 0xbaa   :  { %v3525_v29 = vpack.c.bf16 %v3507_v5, %v3506_v3  ;;  %v3397_v31 = vadd.f32 %v5802_v30, %v3396_v6  ;;  %v3732_v2 = vld [vmem:[#allocation3 + $0x2c] sm:$0xff] }
 0xbab   :  { %4522 = vmatmul.msk.bf16.gmra.mxu2 %vm41_vm2, %v3553_v38 }
 0xbac   :  { %4538 = vmatmul.msk.bf16.gmra.mxu0 %vm41_vm2, %v3525_v29  ;;  %v3429_v40 = vadd.f32 %v3397_v31, %v5724_v0 }
 0xbae   :  { %vm3445_vm5 = vcmp.ge.f32.partialorder %v3429_v40, 0.0  ;;  %v3461_v37 = vmul.f32 0.2, %v3429_v40 }
 0xbb0   :  { %v5844_v10 = vsel %vm3445_vm5, %v3429_v40, %v3461_v37  ;;  %v3733_v43 = vld [vmem:[#allocation3 + $0x34] sm:$0xff] }
 0xbb1   :  { %3493 = vst.msk [vmem:[#allocation3 + $0x43] sm:$0xff] %vm41_vm2, %v5844_v10  ;;  %v3399_v13 = vpop.f32.mrf.mxu1  ;;  %v3751_v33 = vpack.c.bf16 %v3733_v43, %v3732_v2  ;;  %v3536_v0 = vld [vmem:[#allocation3 + $0x3b] sm:$0xff] }
 0xbb2   :  { %v3400_v58 = vadd.f32 %v5802_v30, %v3399_v13  ;;  %v3508_v45 = vld [vmem:[#allocation3 + $0x3a] sm:$0xff] }
 0xbb3   :  { %4554 = vmatmul.msk.bf16.gmra.mxu3 %vm41_vm2, %v3751_v33 }
 0xbb4   :  { %v3430_v25 = vadd.f32 %v3400_v58, %v5733_v23 }
 0xbb6   :  { %vm3446_vm6 = vcmp.ge.f32.partialorder %v3430_v25, 0.0  ;;  %v3462_v47 = vmul.f32 0.2, %v3430_v25 }
 0xbb8   :  { %v5851_v11 = vsel %vm3446_vm6, %v3430_v25, %v3462_v47  ;;  %v3537_v24 = vld [vmem:[#allocation3 + $0x43] sm:$0xff] }
 0xbb9   :  { %v3509_v14 = vld [vmem:[#allocation3 + $0x42] sm:$0xff]  ;;  %3494 = vst.msk [vmem:[#allocation3 + $0x4b] sm:$0xff] %vm41_vm2, %v5851_v11  ;;  %v3401_v56 = vpop.f32.mrf.mxu1  ;;  %v3554_v27 = vpack.c.bf16 %v3537_v24, %v3536_v0 }
 0xbba   :  { %v3526_v57 = vpack.c.bf16 %v3509_v14, %v3508_v45  ;;  %v3402_v28 = vadd.f32 %v5802_v30, %v3401_v56  ;;  %v3734_v16 = vld [vmem:[#allocation3 + $0x3c] sm:$0xff] }
 0xbbb   :  { %4523 = vmatmul.msk.bf16.gmra.mxu2 %vm41_vm2, %v3554_v27 }
 0xbbc   :  { %4539 = vmatmul.msk.bf16.gmra.mxu0 %vm41_vm2, %v3526_v57  ;;  %v3431_v23 = vadd.f32 %v3402_v28, %v5735_v18 }
 0xbbe   :  { %vm3447_vm7 = vcmp.ge.f32.partialorder %v3431_v23, 0.0  ;;  %v3463_v17 = vmul.f32 0.2, %v3431_v23 }
 0xbc0   :  { %v5859_v8 = vsel %vm3447_vm7, %v3431_v23, %v3463_v17  ;;  %v3735_v39 = vld [vmem:[#allocation3 + $0x44] sm:$0xff] }
 0xbc1   :  { %3495 = vst.msk [vmem:[#allocation3 + $0x53] sm:$0xff] %vm41_vm2, %v5859_v8  ;;  %v3404_v60 = vpop.f32.mrf.mxu1  ;;  %v3752_v44 = vpack.c.bf16 %v3735_v39, %v3734_v16  ;;  %v3538_v18 = vld [vmem:[#allocation3 + $0x4b] sm:$0xff] }
 0xbc2   :  { %v3405_v63 = vadd.f32 %v5802_v30, %v3404_v60  ;;  %v3510_v54 = vld [vmem:[#allocation3 + $0x4a] sm:$0xff] }
 0xbc3   :  { %4555 = vmatmul.msk.bf16.gmra.mxu3 %vm41_vm2, %v3752_v44 }
 0xbc4   :  { %v3432_v35 = vadd.f32 %v3405_v63, %v5744_v34 }
 0xbc6   :  { %vm3448_vm9 = vcmp.ge.f32.partialorder %v3432_v35, 0.0  ;;  %v3464_v36 = vmul.f32 0.2, %v3432_v35 }
 0xbc8   :  { %v5866_v42 = vsel %vm3448_vm9, %v3432_v35, %v3464_v36  ;;  %v3539_v55 = vld [vmem:[#allocation3 + $0x53] sm:$0xff] }
 0xbc9   :  { %v3511_v32 = vld [vmem:[#allocation3 + $0x52] sm:$0xff]  ;;  %3496 = vst.msk [vmem:[#allocation3 + $0x93] sm:$0xff] %vm41_vm2, %v5866_v42  ;;  %v3406_v12 = vpop.f32.mrf.mxu1  ;;  %v3555_v51 = vpack.c.bf16 %v3539_v55, %v3538_v18 }
 0xbca   :  { %v3527_v59 = vpack.c.bf16 %v3511_v32, %v3510_v54  ;;  %v3407_v49 = vadd.f32 %v5802_v30, %v3406_v12  ;;  %v3736_v7 = vld [vmem:[#allocation3 + $0x4c] sm:$0xff]  ;;  %v3737_v41 = vld [vmem:[#allocation3 + $0x54] sm:$0xff] }
 0xbcb   :  { %4524 = vmatmul.msk.bf16.gmra.mxu2 %vm41_vm2, %v3555_v51  ;;  %v3753_v21 = vpack.c.bf16 %v3737_v41, %v3736_v7 }
 0xbcc   :  { %4540 = vmatmul.msk.bf16.gmra.mxu0 %vm41_vm2, %v3527_v59  ;;  %v3433_v34 = vadd.f32 %v3407_v49, %v5746_v46 }
 0xbce   :  { %vm3449_vm10 = vcmp.ge.f32.partialorder %v3433_v34, 0.0  ;;  %v3465_v1 = vmul.f32 0.2, %v3433_v34 }
 0xbd0   :  { %v5874_v61 = vsel %vm3449_vm10, %v3433_v34, %v3465_v1  ;;  %v3540_v46 = vld [vmem:[#allocation3 + $0x93] sm:$0xff] }
 0xbd1   :  { %3497 = vst.msk [vmem:[#allocation3 + $0x9b] sm:$0xff] %vm41_vm2, %v5874_v61  ;;  %v3409_v4 = vpop.f32.mrf.mxu1  ;;  %v3512_v31 = vld [vmem:[#allocation3 + $0x92] sm:$0xff] }
 0xbd2   :  { %v3410_v3 = vadd.f32 %v5802_v30, %v3409_v4 }
 0xbd3   :  { %4556 = vmatmul.msk.bf16.gmra.mxu3 %vm41_vm2, %v3753_v21 }
 0xbd4   :  { %v3434_v5 = vadd.f32 %v3410_v3, %v5764_v50 }
 0xbd6   :  { %vm3450_vm11 = vcmp.ge.f32.partialorder %v3434_v5, 0.0  ;;  %v3466_v6 = vmul.f32 0.2, %v3434_v5 }
 0xbd8   :  { %v5881_v38 = vsel %vm3450_vm11, %v3434_v5, %v3466_v6  ;;  %v3541_v29 = vld [vmem:[#allocation3 + $0x9b] sm:$0xff] }
 0xbd9   :  { %v3513_v40 = vld [vmem:[#allocation3 + $0x9a] sm:$0xff]  ;;  %3498 = vst.msk [vmem:[#allocation3 + $0xa3] sm:$0xff] %vm41_vm2, %v5881_v38  ;;  %v3411_v37 = vpop.f32.mrf.mxu1  ;;  %v3556_v2 = vpack.c.bf16 %v3541_v29, %v3540_v46 }
 0xbda   :  { %v3528_v43 = vpack.c.bf16 %v3513_v40, %v3512_v31  ;;  %v3412_v13 = vadd.f32 %v5802_v30, %v3411_v37  ;;  %v3738_v25 = vld [vmem:[#allocation3 + $0x94] sm:$0xff] }
 0xbdb   :  { %4525 = vmatmul.msk.bf16.gmra.mxu2 %vm41_vm2, %v3556_v2 }
 0xbdc   :  { %4541 = vmatmul.msk.bf16.gmra.mxu0 %vm41_vm2, %v3528_v43  ;;  %v3435_v50 = vadd.f32 %v3412_v13, %v5766_v22 }
 0xbde   :  { %vm3451_vm8 = vcmp.ge.f32.partialorder %v3435_v50, 0.0  ;;  %v3467_v33 = vmul.f32 0.2, %v3435_v50 }
 0xbe0   :  { %v5889_v58 = vsel %vm3451_vm8, %v3435_v50, %v3467_v33  ;;  %v3739_v47 = vld [vmem:[#allocation3 + $0x9c] sm:$0xff] }
 0xbe1   :  { %3499 = vst.msk [vmem:[#allocation3 + $0xab] sm:$0xff] %vm41_vm2, %v5889_v58  ;;  %v3414_v0 = vpop.f32.mrf.mxu1  ;;  %v3754_v24 = vpack.c.bf16 %v3739_v47, %v3738_v25  ;;  %v3542_v22 = vld [vmem:[#allocation3 + $0xa3] sm:$0xff] }
 0xbe2   :  { %v3415_v45 = vadd.f32 %v5802_v30, %v3414_v0  ;;  %v3514_v28 = vld [vmem:[#allocation3 + $0xa2] sm:$0xff] }
 0xbe3   :  { %4557 = vmatmul.msk.bf16.gmra.mxu3 %vm41_vm2, %v3754_v24 }
 0xbe4   :  { %v3436_v14 = vadd.f32 %v3415_v45, %v5775_v26 }
 0xbe6   :  { %vm3452_vm12 = vcmp.ge.f32.partialorder %v3436_v14, 0.0  ;;  %v3468_v56 = vmul.f32 0.2, %v3436_v14 }
 0xbe8   :  { %v5896_v27 = vsel %vm3452_vm12, %v3436_v14, %v3468_v56  ;;  %v3543_v57 = vld [vmem:[#allocation3 + $0xab] sm:$0xff] }
 0xbe9   :  { %v3515_v23 = vld [vmem:[#allocation3 + $0xaa] sm:$0xff]  ;;  %3500 = vst.msk [vmem:[#allocation3 + $0xb3] sm:$0xff] %vm41_vm2, %v5896_v27  ;;  %v3416_v17 = vpop.f32.mrf.mxu1  ;;  %v3557_v16 = vpack.c.bf16 %v3543_v57, %v3542_v22 }
 0xbea   :  { %v3529_v39 = vpack.c.bf16 %v3515_v23, %v3514_v28  ;;  %v3417_v60 = vadd.f32 %v5802_v30, %v3416_v17  ;;  %v3740_v35 = vld [vmem:[#allocation3 + $0xa4] sm:$0xff]  ;;  %v5930_v56 = vld [vmem:[%s6028_s1 + $0x11] ss:$0 sm:$0xff] }
 0xbeb   :  { %4526 = vmatmul.msk.bf16.gmra.mxu2 %vm41_vm2, %v3557_v16 }
 0xbec   :  { %4542 = vmatmul.msk.bf16.gmra.mxu0 %vm41_vm2, %v3529_v39  ;;  %v3437_v26 = vadd.f32 %v3417_v60, %v5777_v62 }
 0xbee   :  { %vm3453_vm13 = vcmp.ge.f32.partialorder %v3437_v26, 0.0  ;;  %v3469_v44 = vmul.f32 0.2, %v3437_v26 }
 0xbf0   :  { %v5904_v63 = vsel %vm3453_vm13, %v3437_v26, %v3469_v44  ;;  %v3741_v36 = vld [vmem:[#allocation3 + $0xac] sm:$0xff] }
 0xbf1   :  { %3501 = vst.msk [vmem:[#allocation3 + $0xbb] sm:$0xff] %vm41_vm2, %v5904_v63  ;;  %v3419_v18 = vpop.f32.mrf.mxu1  ;;  %v3755_v55 = vpack.c.bf16 %v3741_v36, %v3740_v35  ;;  %v3544_v62 = vld [vmem:[#allocation3 + $0xb3] sm:$0xff] }
 0xbf2   :  { %v3420_v54 = vadd.f32 %v5802_v30, %v3419_v18  ;;  %v3516_v49 = vld [vmem:[#allocation3 + $0xb2] sm:$0xff] }
 0xbf3   :  { %4558 = vmatmul.msk.bf16.gmra.mxu3 %vm41_vm2, %v3755_v55 }
 0xbf4   :  { %v3438_v32 = vadd.f32 %v3420_v54, %v5786_v15 }
 0xbf6   :  { %vm3454_vm14 = vcmp.ge.f32.partialorder %v3438_v32, 0.0  ;;  %v3470_v12 = vmul.f32 0.2, %v3438_v32 }
 0xbf8   :  { %v5911_v51 = vsel %vm3454_vm14, %v3438_v32, %v3470_v12  ;;  %v3545_v59 = vld [vmem:[#allocation3 + $0xbb] sm:$0xff] }
 0xbf9   :  { %v3517_v34 = vld [vmem:[#allocation3 + $0xba] sm:$0xff]  ;;  %3502 = vst.msk [vmem:[#allocation3 + $0xc3] sm:$0xff] %vm41_vm2, %v5911_v51  ;;  %v3421_v1 = vpop.f32.mrf.mxu1  ;;  %v3558_v7 = vpack.c.bf16 %v3545_v59, %v3544_v62 }
 0xbfa   :  { %v3530_v41 = vpack.c.bf16 %v3517_v34, %v3516_v49  ;;  %v3422_v4 = vadd.f32 %v5802_v30, %v3421_v1  ;;  %v3742_v5 = vld [vmem:[#allocation3 + $0xb4] sm:$0xff] }
 0xbfb   :  { %4527 = vmatmul.msk.bf16.gmra.mxu2 %vm41_vm2, %v3558_v7 }
 0xbfc   :  { %4543 = vmatmul.msk.bf16.gmra.mxu0 %vm41_vm2, %v3530_v41  ;;  %v3439_v15 = vadd.f32 %v3422_v4, %v5788_v48 }
 0xbfe   :  { %vm3455_vm15 = vcmp.ge.f32.partialorder %v3439_v15, 0.0  ;;  %v3471_v21 = vmul.f32 0.2, %v3439_v15 }
 0xc00   :  { %v5919_v3 = vsel %vm3455_vm15, %v3439_v15, %v3471_v21  ;;  %v3743_v6 = vld [vmem:[#allocation3 + $0xbc] sm:$0xff] }
 0xc01   :  { %3503 = vst.msk [vmem:[#allocation3 + $0xcb] sm:$0xff] %vm41_vm2, %v5919_v3  ;;  %v3756_v46 = vpack.c.bf16 %v3743_v6, %v3742_v5  ;;  %v3546_v29 = vld [vmem:[#allocation3 + $0xc3] sm:$0xff] }
 0xc02   :  { %v3518_v31 = vld [vmem:[#allocation3 + $0xc2] sm:$0xff] }
 0xc03   :  { %4559 = vmatmul.msk.bf16.gmra.mxu3 %vm41_vm2, %v3756_v46 }
 0xc08   :  { %v3547_v30 = vld [vmem:[#allocation3 + $0xcb] sm:$0xff] }
 0xc09   :  { %v3519_v40 = vld [vmem:[#allocation3 + $0xca] sm:$0xff]  ;;  %v3559_v37 = vpack.c.bf16 %v3547_v30, %v3546_v29 }
 0xc0a   :  { %v3531_v2 = vpack.c.bf16 %v3519_v40, %v3518_v31  ;;  %v3744_v48 = vld [vmem:[#allocation3 + $0xc4] sm:$0xff]  ;;  %v3745_v43 = vld [vmem:[#allocation3 + $0xcc] sm:$0xff] }
 0xc0b   :  { %4528 = vmatmul.msk.bf16.gmra.mxu2 %vm41_vm2, %v3559_v37  ;;  %v3757_v13 = vpack.c.bf16 %v3745_v43, %v3744_v48 }
 0xc0c   :  { %4544 = vmatmul.msk.bf16.gmra.mxu0 %vm41_vm2, %v3531_v2 }
 0xc13   :  { %4560 = vmatmul.msk.bf16.gmra.mxu3 %vm41_vm2, %v3757_v13 }
 0xc19   :  { %v3690_v50 = vpop.f32.mrf.mxu0 }
 0xc1e   :  { %v3605_v33 = vpop.f32.mrf.mxu2 }
 0xc1f   :  { %v3691_v25 = vadd.f32 %v3690_v50, %v3605_v33 }
 0xc21   :  { %v3692_v47 = vpop.f32.mrf.mxu0 }
 0xc26   :  { %v3607_v0 = vpop.f32.mrf.mxu2  ;;  %v3803_v24 = vpop.f32.mrf.mxu3 }
 0xc27   :  { %v3693_v45 = vadd.f32 %v3692_v47, %v3607_v0  ;;  %v3843_v14 = vadd.f32 %v3803_v24, %v3691_v25 }
 0xc29   :  { %v3695_v22 = vpop.f32.mrf.mxu0  ;;  %v3861_v57 = vadd.f32 %v5930_v56, %v3843_v14 }
 0xc2b   :  { %v3877_v17 = vadd.f32 %v3861_v57, %v5809_v53 }
 0xc2d   :  { %v3909_v44 = vmul.f32 0.2, %v3877_v17  ;;  %vm3893_vm0 = vcmp.ge.f32.partialorder %v3877_v17, 0.0 }
 0xc2e   :  { %v3610_v28 = vpop.f32.mrf.mxu2  ;;  %v3805_v23 = vpop.f32.mrf.mxu3 }
 0xc2f   :  { %v3696_v16 = vadd.f32 %v3695_v22, %v3610_v28  ;;  %v3844_v39 = vadd.f32 %v3805_v23, %v3693_v45  ;;  %v5936_v12 = vsel %vm3893_vm0, %v3877_v17, %v3909_v44 }
 0xc31   :  { %v3697_v60 = vpop.f32.mrf.mxu0  ;;  %v3862_v26 = vadd.f32 %v5930_v56, %v3844_v39 }
 0xc33   :  { %v3878_v35 = vadd.f32 %v3862_v26, %v5815_v52 }
 0xc35   :  { %v3910_v36 = vmul.f32 0.2, %v3878_v35  ;;  %vm3894_vm1 = vcmp.ge.f32.partialorder %v3878_v35, 0.0 }
 0xc36   :  { %v3612_v18 = vpop.f32.mrf.mxu2  ;;  %v3808_v55 = vpop.f32.mrf.mxu3 }
 0xc37   :  { %v3698_v54 = vadd.f32 %v3697_v60, %v3612_v18  ;;  %v3845_v32 = vadd.f32 %v3808_v55, %v3696_v16  ;;  %v5938_v62 = vsel %vm3894_vm1, %v3878_v35, %v3910_v36 }
 0xc38   :  { %v3942_v59 = vpack.c.bf16 %v5938_v62, %v5936_v12 }
 0xc39   :  { %v3700_v53 = vpop.f32.mrf.mxu0  ;;  %v3863_v49 = vadd.f32 %v5930_v56, %v3845_v32 }
 0xc3b   :  { %v3879_v52 = vadd.f32 %v3863_v49, %v5821_v9 }
 0xc3d   :  { %v3911_v21 = vmul.f32 0.2, %v3879_v52  ;;  %vm3895_vm3 = vcmp.ge.f32.partialorder %v3879_v52, 0.0 }
 0xc3e   :  { %v3615_v34 = vpop.f32.mrf.mxu2  ;;  %v3810_v1 = vpop.f32.mrf.mxu3 }
 0xc3f   :  { %v3701_v7 = vadd.f32 %v3700_v53, %v3615_v34  ;;  %v3846_v41 = vadd.f32 %v3810_v1, %v3698_v54  ;;  %v5946_v40 = vsel %vm3895_vm3, %v3879_v52, %v3911_v21 }
 0xc41   :  { %v3702_v4 = vpop.f32.mrf.mxu0  ;;  %v3864_v15 = vadd.f32 %v5930_v56, %v3846_v41 }
 0xc43   :  { %v3880_v5 = vadd.f32 %v3864_v15, %v5829_v19 }
 0xc45   :  { %v3912_v6 = vmul.f32 0.2, %v3880_v5  ;;  %vm3896_vm4 = vcmp.ge.f32.partialorder %v3880_v5, 0.0 }
 0xc46   :  { %v3617_v46 = vpop.f32.mrf.mxu2  ;;  %v3813_v29 = vpop.f32.mrf.mxu3 }
 0xc47   :  { %v3703_v30 = vadd.f32 %v3702_v4, %v3617_v46  ;;  %v3847_v31 = vadd.f32 %v3813_v29, %v3701_v7  ;;  %v5948_v37 = vsel %vm3896_vm4, %v3880_v5, %v3912_v6 }
 0xc48   :  { %v3943_v2 = vpack.c.bf16 %v5948_v37, %v5946_v40 }
 0xc49   :  { %v3705_v9 = vpop.f32.mrf.mxu0  ;;  %v3865_v48 = vadd.f32 %v5930_v56, %v3847_v31 }
 0xc4b   :  { %v3881_v19 = vadd.f32 %v3865_v48, %v5836_v20 }
 0xc4d   :  { %v3913_v0 = vmul.f32 0.2, %v3881_v19  ;;  %vm3897_vm5 = vcmp.ge.f32.partialorder %v3881_v19, 0.0 }
 0xc4e   :  { %v3620_v43 = vpop.f32.mrf.mxu2  ;;  %v3815_v13 = vpop.f32.mrf.mxu3 }
 0xc4f   :  { %v3706_v50 = vadd.f32 %v3705_v9, %v3620_v43  ;;  %v3848_v33 = vadd.f32 %v3815_v13, %v3703_v30  ;;  %v5956_v23 = vsel %vm3897_vm5, %v3881_v19, %v3913_v0 }
 0xc51   :  { %v3707_v25 = vpop.f32.mrf.mxu0  ;;  %v3866_v47 = vadd.f32 %v5930_v56, %v3848_v33 }
 0xc53   :  { %v3882_v24 = vadd.f32 %v3866_v47, %v5844_v10 }
 0xc55   :  { %v3914_v45 = vmul.f32 0.2, %v3882_v24  ;;  %vm3898_vm6 = vcmp.ge.f32.partialorder %v3882_v24, 0.0 }
 0xc56   :  { %v3622_v14 = vpop.f32.mrf.mxu2  ;;  %v3818_v22 = vpop.f32.mrf.mxu3 }
 0xc57   :  { %v3708_v57 = vadd.f32 %v3707_v25, %v3622_v14  ;;  %v3849_v28 = vadd.f32 %v3818_v22, %v3706_v50  ;;  %v5958_v17 = vsel %vm3898_vm6, %v3882_v24, %v3914_v45 }
 0xc58   :  { %v3944_v16 = vpack.c.bf16 %v5958_v17, %v5956_v23  ;;  %v3941_v23 = vld [vmem:[%s6037_s9] sm:$0x1] }
 0xc59   :  { %v3710_v20 = vpop.f32.mrf.mxu0  ;;  %v3867_v39 = vadd.f32 %v5930_v56, %v3849_v28 }
 0xc5b   :  { %v3883_v10 = vadd.f32 %v3867_v39, %v5851_v11 }
 0xc5d   :  { %v3915_v55 = vmul.f32 0.2, %v3883_v10  ;;  %vm3899_vm7 = vcmp.ge.f32.partialorder %v3883_v10, 0.0 }
 0xc5e   :  { %v3625_v60 = vpop.f32.mrf.mxu2  ;;  %v3820_v26 = vpop.f32.mrf.mxu3 }
 0xc5f   :  { %v3711_v44 = vadd.f32 %v3710_v20, %v3625_v60  ;;  %v3850_v35 = vadd.f32 %v3820_v26, %v3708_v57  ;;  %v5966_v52 = vsel %vm3899_vm7, %v3883_v10, %v3915_v55 }
 0xc61   :  { %v3712_v36 = vpop.f32.mrf.mxu0  ;;  %v3868_v18 = vadd.f32 %v5930_v56, %v3850_v35 }
 0xc63   :  { %v3884_v54 = vadd.f32 %v3868_v18, %v5859_v8 }
 0xc65   :  { %v3916_v32 = vmul.f32 0.2, %v3884_v54  ;;  %vm3900_vm9 = vcmp.ge.f32.partialorder %v3884_v54, 0.0 }
 0xc66   :  { %v3627_v53 = vpop.f32.mrf.mxu2  ;;  %v3823_v49 = vpop.f32.mrf.mxu3 }
 0xc67   :  { %v3713_v34 = vadd.f32 %v3712_v36, %v3627_v53  ;;  %v3851_v1 = vadd.f32 %v3823_v49, %v3711_v44  ;;  %v5968_v7 = vsel %vm3900_vm9, %v3884_v54, %v3916_v32 }
 0xc68   :  { %v3945_v11 = vpack.c.bf16 %v5968_v7, %v5966_v52  ;;  %v3964_v52 = vsel %vm41_vm2, %v3943_v2, 0  ;;  %v3961_v7 = vsel %vm41_vm2, %v3942_v59, 0 }
 0xc69   :  { %v3715_v41 = vpop.f32.mrf.mxu0  ;;  %v3869_v4 = vadd.f32 %v5930_v56, %v3851_v1 }
 0xc6b   :  { %v3885_v8 = vadd.f32 %v3869_v4, %v5866_v42 }
 0xc6d   :  { %v3917_v46 = vmul.f32 0.2, %v3885_v8  ;;  %vm3901_vm10 = vcmp.ge.f32.partialorder %v3885_v8, 0.0 }
 0xc6e   :  { %v3630_v15 = vpop.f32.mrf.mxu2  ;;  %v3825_v21 = vpop.f32.mrf.mxu3 }
 0xc6f   :  { %v3852_v5 = vadd.f32 %v3825_v21, %v3713_v34  ;;  %v5976_v43 = vsel %vm3901_vm10, %v3885_v8, %v3917_v46  ;;  %v3716_v34 = vadd.f32 %v3715_v41, %v3630_v15 }
 0xc71   :  { %v3870_v6 = vadd.f32 %v5930_v56, %v3852_v5  ;;  %v3717_v30 = vpop.f32.mrf.mxu0 }
 0xc73   :  { %v3886_v29 = vadd.f32 %v3870_v6, %v5874_v61 }
 0xc75   :  { %v3918_v31 = vmul.f32 0.2, %v3886_v29  ;;  %vm3902_vm11 = vcmp.ge.f32.partialorder %v3886_v29, 0.0 }
 0xc76   :  { %v3632_v9 = vpop.f32.mrf.mxu2  ;;  %v3828_v48 = vpop.f32.mrf.mxu3 }
 0xc77   :  { %v5978_v13 = vsel %vm3902_vm11, %v3886_v29, %v3918_v31  ;;  %v3718_v32 = vadd.f32 %v3717_v30, %v3632_v9  ;;  %v3853_v5 = vadd.f32 %v3828_v48, %v3716_v34 }
 0xc78   :  { %v3946_v19 = vpack.c.bf16 %v5978_v13, %v5976_v43  ;;  %v3967_v43 = vsel %vm41_vm2, %v3944_v16, 0 }
 0xc79   :  { %v3720_v42 = vpop.f32.mrf.mxu0  ;;  %v3871_v41 = vadd.f32 %v5930_v56, %v3853_v5 }
 0xc7e   :  { %v3635_v50 = vpop.f32.mrf.mxu2  ;;  %v3830_v33 = vpop.f32.mrf.mxu3 }
 0xc7f   :  { %v3721_v39 = vadd.f32 %v3720_v42, %v3635_v50  ;;  %v3854_v1 = vadd.f32 %v3830_v33, %v3718_v32 }
 0xc81   :  { %v3722_v0 = vpop.f32.mrf.mxu0 }
 0xc86   :  { %v3637_v25 = vpop.f32.mrf.mxu2  ;;  %v3833_v47 = vpop.f32.mrf.mxu3 }
 0xc87   :  { %v3723_v28 = vadd.f32 %v3722_v0, %v3637_v25  ;;  %v3855_v44 = vadd.f32 %v3833_v47, %v3721_v39 }
 0xc89   :  { %v3725_v45 = vpop.f32.mrf.mxu0  ;;  %v3873_v53 = vadd.f32 %v5930_v56, %v3855_v44 }
 0xc8b   :  { %v3889_v6 = vadd.f32 %v3873_v53, %v5896_v27  ;;  %v3887_v27 = vadd.f32 %v3871_v41, %v5881_v38  ;;  %v3973_v38 = vsel %vm41_vm2, %v3946_v19, 0 }
 0xc8d   :  { %v3921_v15 = vmul.f32 0.2, %v3889_v6  ;;  %vm3905_vm14 = vcmp.ge.f32.partialorder %v3889_v6, 0.0  ;;  %v3919_v25 = vmul.f32 0.2, %v3887_v27  ;;  %vm3903_vm0 = vcmp.ge.f32.partialorder %v3887_v27, 0.0 }
 0xc8e   :  { %v3835_v61 = vpop.f32.mrf.mxu3  ;;  %v3640_v24 = vpop.f32.mrf.mxu2 }
 0xc8f   :  { %v3726_v14 = vadd.f32 %v3725_v45, %v3640_v24  ;;  %v3856_v60 = vadd.f32 %v3835_v61, %v3723_v28  ;;  %v3937_v42 = vsel %vm3905_vm14, %v3889_v6, %v3921_v15  ;;  %v3935_v0 = vsel %vm3903_vm0, %v3887_v27, %v3919_v25 }
 0xc90   :  { %v16_v45 = vstv %s6036_s10 }
 0xc91   :  { %v3727_v10 = vpop.f32.mrf.mxu0  ;;  %v3874_v18 = vadd.f32 %v5930_v56, %v3856_v60  ;;  %17 = vst [vmem:[#allocation4] sm:$0x1] %v16_v45 }
 0xc93   :  { %v3890_v4 = vadd.f32 %v3874_v18, %v5904_v63 }
 0xc95   :  { %v3922_v29 = vmul.f32 0.2, %v3890_v4  ;;  %vm3906_vm13 = vcmp.ge.f32.partialorder %v3890_v4, 0.0 }
 0xc96   :  { %v3838_v22 = vpop.f32.mrf.mxu3  ;;  %v3642_v20 = vpop.f32.mrf.mxu2 }
 0xc97   :  { %v3857_v57 = vadd.f32 %v3838_v22, %v3726_v14  ;;  %v3728_v35 = vadd.f32 %v3727_v10, %v3642_v20  ;;  %v3938_v48 = vsel %vm3906_vm13, %v3890_v4, %v3922_v29  ;;  %v4682_v14 = vmov 0  }
 0xc98   :  { %v3948_v50 = vpack.c.bf16 %v3938_v48, %v3937_v42  ;;  %4663 = vset.pattern.permute.xlu0 %v4682_v14  ;;  %v3950_v13 = vld [vmem:[#allocation4] sm:$0x1] }
 0xc99   :  { %v3875_v26 = vadd.f32 %v5930_v56, %v3857_v57  ;;  %3953 = vperm.xlu0 %4663, %v3950_v13  }
 0xc9a   :  { %v3979_v47 = vsel %vm41_vm2, %v3948_v50, 0 }
 0xc9b   :  { %v3891_v55 = vadd.f32 %v3875_v26, %v5911_v51  ;;  %v3872_v51 = vadd.f32 %v5930_v56, %v3854_v1 }
 0xc9d   :  { %v3923_v21 = vmul.f32 0.2, %v3891_v55  ;;  %vm3907_vm8 = vcmp.ge.f32.partialorder %v3891_v55, 0.0 }
 0xc9e   :  { %v3840_v36 = vpop.f32.mrf.mxu3 }
 0xc9f   :  { %v3858_v54 = vadd.f32 %v3840_v36, %v3728_v35  ;;  %v3939_v30 = vsel %vm3907_vm8, %v3891_v55, %v3923_v21 }
 0xca1   :  { %v3876_v49 = vadd.f32 %v5930_v56, %v3858_v54 }
 0xca3   :  { %v3892_v8 = vadd.f32 %v3876_v49, %v5919_v3  ;;  %v3888_v3 = vadd.f32 %v3872_v51, %v5889_v58  ;;  %v3970_v58 = vsel %vm41_vm2, %v3945_v11, 0 }
 0xca5   :  { %v3924_v46 = vmul.f32 0.2, %v3892_v8  ;;  %vm3908_vm12 = vcmp.ge.f32.partialorder %v3892_v8, 0.0  ;;  %v3920_v33 = vmul.f32 0.2, %v3888_v3  ;;  %vm3904_vm15 = vcmp.ge.f32.partialorder %v3888_v3, 0.0 }
 0xca7   :  { %v3940_v31 = vsel %vm3908_vm12, %v3892_v8, %v3924_v46  ;;  %v3936_v56 = vsel %vm3904_vm15, %v3888_v3, %v3920_v33 }
 0xca8   :  { %v3949_v9 = vpack.c.bf16 %v3940_v31, %v3939_v30  ;;  %v3947_v61 = vpack.c.bf16 %v3936_v56, %v3935_v0 }
 0xcaa   :  { %v3982_v63 = vsel %vm41_vm2, %v3949_v9, 0  ;;  %v3976_v24 = vsel %vm41_vm2, %v3947_v61, 0 }
 0xcab   :  { %3984 = vmatpush.bf16.xpose.msrb.mxu1 %v3982_v63 }
 0xcb3   :  { %3985 = vmatpush.bf16.xpose.msrb.mxu1 %v3979_v47 }
 0xcbb   :  { %3986 = vmatpush.bf16.xpose.msrb.mxu1 %v3976_v24 }
 0xcc3   :  { %3987 = vmatpush.bf16.xpose.msrb.mxu1 %v3973_v38 }
 0xccb   :  { %3988 = vmatpush.bf16.xpose.msrb.mxu1 %v3970_v58 }
 0xcd3   :  { %3989 = vmatpush.bf16.xpose.msrb.mxu1 %v3967_v43 }
 0xcdb   :  { %3990 = vmatpush.bf16.xpose.msrb.mxu1 %v3964_v52 }
 0xce3   :  { %3991 = vmatpush.bf16.xpose.msrb.mxu1 %v3961_v7 }
 0xcea   :  { %4561 = vmatmul.msk.bf16.vlgmr.msrb.gmra.mxu1 %vm41_vm2, %v3941_v23 }
 0xd0b   :  { %v3954_v17 = vpop.permute.xlu0 %3953 }
 0xd0c   :  { %v3956_v16 = vperm.slane %v3954_v17, 0 }
 0xd67   :  { %v3993_v11 = vpop.f32.mrf.mxu1 }
 0xd68   :  { %v3994_v19 = vadd.f32 %v3993_v11, %v3956_v16 }
 0xd6a   :  { %3997 = vst [vmem:[%s6038_s11] sm:$0x1] %v3994_v19 }
 0xd6f   :  { %v3995_v40 = vpop.f32.mrf.mxu1 }

</bundles_post_ra>
